<compile_context>
chip_gen: v5e
topology: v5e:2x2
jax: 0.10.0
libtpu: 0.0.40
codegen_flags: <defaults>
</compile_context>

<pallas_src>
import functools

import numpy as np
import jax
import jax.numpy as jnp
from jax.experimental import pallas as pl
from jax.experimental.pallas import tpu as pltpu


# ------------------------------ tiling knobs -------------------------------

_ROW_TILE = 512                   # pixel rows per block for linear / layernorm
_Q_TILE = 128                     # query positions per block for attention
_VMEM_LIMIT = 32 * 1024 * 1024    # safe on v5e/v6e (128 MiB) and v7x (64 MiB)
_NEG_INF = -1e30


def _compiler_params(semantics):
    return pltpu.CompilerParams(dimension_semantics=semantics,
                                vmem_limit_bytes=_VMEM_LIMIT)


def _row_tile(n, target):
    # Full extent when small (always legal), else a multiple-of-8 row tile;
    # Pallas masks the ragged final block.
    return n if n <= target else target


def _activate(x, activation):
    if activation == "gelu":
        # TODO(synk): PyTorch nn.GELU() is exact (erf); tanh approximation is used
        # here (Mosaic-friendly), accepted ~1e-3-level deviation.
        c = 0.7978845608028654  # sqrt(2/pi)
        return 0.5 * x * (1.0 + jnp.tanh(c * (x + 0.044715 * x * x * x)))
    return x


# ----------------------------- Pallas kernels ------------------------------

def _linear_kernel(*refs, activation, has_residual):
    if has_residual:
        x_ref, w_ref, b_ref, r_ref, o_ref = refs
    else:
        x_ref, w_ref, b_ref, o_ref = refs
        r_ref = None
    acc = jnp.dot(x_ref[...], w_ref[...], preferred_element_type=jnp.float32)
    acc = acc + b_ref[...].astype(jnp.float32)
    acc = _activate(acc, activation)
    if r_ref is not None:
        acc = acc + r_ref[...].astype(jnp.float32)
    o_ref[...] = acc.astype(o_ref.dtype)


def pallas_linear(x, w, b, activation=None, residual=None):
    """y = act(x @ w + b) (+ residual), row-tiled with pipelined BlockSpecs."""
    n, cin = x.shape
    cout = w.shape[1]
    tm = _row_tile(n, _ROW_TILE)
    grid = (pl.cdiv(n, tm),)
    in_specs = [
        pl.BlockSpec((tm, cin), lambda i: (i, 0)),
        pl.BlockSpec((cin, cout), lambda i: (0, 0)),   # grid-invariant: fetched once
        pl.BlockSpec((1, cout), lambda i: (0, 0)),
    ]
    args = [x, w, b.reshape(1, cout)]
    if residual is not None:
        in_specs.append(pl.BlockSpec((tm, cout), lambda i: (i, 0)))
        args.append(residual)
    cost = pl.CostEstimate(
        flops=2 * n * cin * cout,
        transcendentals=(n * cout) if activation == "gelu" else 0,
        bytes_accessed=4 * (n * cin + cin * cout + 2 * n * cout))
    return pl.pallas_call(
        functools.partial(_linear_kernel, activation=activation,
                          has_residual=residual is not None),
        out_shape=jax.ShapeDtypeStruct((n, cout), x.dtype),
        grid=grid,
        in_specs=in_specs,
        out_specs=pl.BlockSpec((tm, cout), lambda i: (i, 0)),
        compiler_params=_compiler_params(("parallel",)),
        cost_estimate=cost,
    )(*args)


def _ln_linear_kernel(x_ref, g_ref, bl_ref, w_ref, b_ref, o_ref, *, eps, activation):
    x = x_ref[...].astype(jnp.float32)
    mu = jnp.mean(x, axis=-1, keepdims=True)
    xc = x - mu
    var = jnp.mean(xc * xc, axis=-1, keepdims=True)
    y = xc * jax.lax.rsqrt(var + eps)
    y = y * g_ref[...].astype(jnp.float32) + bl_ref[...].astype(jnp.float32)
    acc = jnp.dot(y, w_ref[...].astype(jnp.float32),
                  preferred_element_type=jnp.float32)
    acc = acc + b_ref[...].astype(jnp.float32)
    acc = _activate(acc, activation)
    o_ref[...] = acc.astype(o_ref.dtype)


def pallas_ln_linear(x, g, b_ln, w, b, activation=None, eps=1e-5):
    """Fused LayerNorm (over channels) + Linear (+ optional GELU), row-tiled."""
    n, cin = x.shape
    cout = w.shape[1]
    tm = _row_tile(n, _ROW_TILE)
    cost = pl.CostEstimate(
        flops=2 * n * cin * cout + 8 * n * cin,
        transcendentals=n + ((n * cout) if activation == "gelu" else 0),
        bytes_accessed=4 * (n * cin + cin * cout + n * cout))
    return pl.pallas_call(
        functools.partial(_ln_linear_kernel, eps=eps, activation=activation),
        out_shape=jax.ShapeDtypeStruct((n, cout), x.dtype),
        grid=(pl.cdiv(n, tm),),
        in_specs=[
            pl.BlockSpec((tm, cin), lambda i: (i, 0)),
            pl.BlockSpec((1, cin), lambda i: (0, 0)),
            pl.BlockSpec((1, cin), lambda i: (0, 0)),
            pl.BlockSpec((cin, cout), lambda i: (0, 0)),
            pl.BlockSpec((1, cout), lambda i: (0, 0)),
        ],
        out_specs=pl.BlockSpec((tm, cout), lambda i: (i, 0)),
        compiler_params=_compiler_params(("parallel",)),
        cost_estimate=cost,
    )(x, g.reshape(1, cin), b_ln.reshape(1, cin), w, b.reshape(1, cout))


def _layernorm_kernel(x_ref, g_ref, b_ref, o_ref, *, eps):
    x = x_ref[...].astype(jnp.float32)
    mu = jnp.mean(x, axis=-1, keepdims=True)
    xc = x - mu
    var = jnp.mean(xc * xc, axis=-1, keepdims=True)
    y = xc * jax.lax.rsqrt(var + eps)
    o_ref[...] = (y * g_ref[...] + b_ref[...]).astype(o_ref.dtype)


def pallas_layernorm(x, g, b, eps=1e-5):
    n, c = x.shape
    tm = _row_tile(n, _ROW_TILE)
    return pl.pallas_call(
        functools.partial(_layernorm_kernel, eps=eps),
        out_shape=jax.ShapeDtypeStruct((n, c), x.dtype),
        grid=(pl.cdiv(n, tm),),
        in_specs=[pl.BlockSpec((tm, c), lambda i: (i, 0)),
                  pl.BlockSpec((1, c), lambda i: (0, 0)),
                  pl.BlockSpec((1, c), lambda i: (0, 0))],
        out_specs=pl.BlockSpec((tm, c), lambda i: (i, 0)),
        compiler_params=_compiler_params(("parallel",)),
    )(x, g.reshape(1, c), b.reshape(1, c))


def pallas_conv3x3(x, w, b, residual=None):
    """3x3 conv, stride 1, pad 1, as one K=9*cin MXU matmul over im2col patches.

    x: (B,H,W,Cin), w: (9,Cin,Cout) with idx = ki*3+kj, b: (Cout,)."""
    B, H, W, cin = x.shape
    cout = w.shape[-1]
    xp = jnp.pad(x, ((0, 0), (1, 1), (1, 1), (0, 0)))
    patches = jnp.concatenate(
        [xp[:, i:i + H, j:j + W, :] for i in range(3) for j in range(3)], axis=-1)
    out = pallas_linear(
        patches.reshape(B * H * W, 9 * cin), w.reshape(9 * cin, cout), b,
        residual=None if residual is None else residual.reshape(B * H * W, cout))
    return out.reshape(B, H, W, cout)


def _na_dense_kernel(q_ref, k_ref, v_ref, bias_ref, o_ref, *, scale):
    q = q_ref[...].astype(jnp.float32) * scale             # (tq, hd)
    k = k_ref[...].astype(jnp.float32)                     # (P,  hd)
    v = v_ref[...].astype(jnp.float32)                     # (P,  hd)
    # q @ k^T on the MXU (contract over head_dim).
    s = jax.lax.dot_general(q, k,
                            dimension_numbers=(((1,), (1,)), ((), ())),
                            preferred_element_type=jnp.float32)   # (tq, P)
    s = s + bias_ref[...].astype(jnp.float32)               # rpb + window mask
    m = jnp.max(s, axis=-1, keepdims=True)
    p = jnp.exp(s - m)
    l = jnp.sum(p, axis=-1, keepdims=True)
    attn = p * pl.reciprocal(l, approx=True)                # EUP reciprocal
    out = jnp.dot(attn, v, preferred_element_type=jnp.float32)   # (tq, hd) on MXU
    o_ref[...] = out.astype(o_ref.dtype)


def pallas_neighborhood_attention(q, k, v, bias, scale):
    """q,k,v: (B, nh, P, hd); bias: (nh, P, P) additive (rpb + -inf outside window)."""
    B, nh, P, hd = q.shape
    tq = _row_tile(P, _Q_TILE)
    grid = (B, nh, pl.cdiv(P, tq))      # innermost = query tiles -> K/V stay resident
    return pl.pallas_call(
        functools.partial(_na_dense_kernel, scale=scale),
        out_shape=jax.ShapeDtypeStruct((B, nh, P, hd), q.dtype),
        grid=grid,
        in_specs=[
            pl.BlockSpec((None, None, tq, hd), lambda b, h, i: (b, h, i, 0)),
            pl.BlockSpec((None, None, P, hd), lambda b, h, i: (b, h, 0, 0)),
            pl.BlockSpec((None, None, P, hd), lambda b, h, i: (b, h, 0, 0)),
            pl.BlockSpec((None, tq, P), lambda b, h, i: (h, i, 0)),
        ],
        out_specs=pl.BlockSpec((None, None, tq, hd), lambda b, h, i: (b, h, i, 0)),
        compiler_params=_compiler_params(("parallel", "parallel", "parallel")),
    )(q, k, v, bias)


# ------------------------------- model glue --------------------------------

@functools.lru_cache(maxsize=None)
def _natten_dense_tables(H, W, k):
    """Dense NATTEN (dilation=1, clamped windows) validity mask + RPB indices."""
    r = k // 2

    def axis(L):
        q = np.arange(L)
        start = np.clip(q - r, 0, L - k)                 # clamped window start
        pos = np.arange(L)
        valid = (pos[None, :] >= start[:, None]) & (pos[None, :] < start[:, None] + k)
        rel = np.clip(pos[None, :] - q[:, None] + (k - 1), 0, 2 * k - 2)
        return valid, rel

    vi, ri = axis(H)
    vj, rj = axis(W)
    valid = (vi[:, None, :, None] & vj[None, :, None, :]).reshape(H * W, H * W)
    rpb_idx = (ri[:, None, :, None] * (2 * k - 1) + rj[None, :, None, :]).reshape(H * W, H * W)
    return valid, rpb_idx.astype(np.int32)


def hydra_na(x, p, num_heads, kernel_size, shortcut):
    """HydraNA with a single kernel-size split (clean partition), dilation=1.

    norm1 is fused into the qkv matmul; the block residual (shortcut) is fused
    into the output-projection matmul.  Returns shortcut + attn(norm1(x))."""
    B, H, W, C = x.shape
    nh = num_heads
    hd = C // nh
    P = H * W
    scale = hd ** (-0.5)

    qkv = pallas_ln_linear(x.reshape(B * P, C), p["norm1_g"], p["norm1_b"],
                           p["qkv_w"], p["qkv_b"])
    qkv = qkv.reshape(B, P, 3, nh, hd)
    q = jnp.transpose(qkv[:, :, 0], (0, 2, 1, 3))      # (B, nh, P, hd)
    k = jnp.transpose(qkv[:, :, 1], (0, 2, 1, 3))
    v = jnp.transpose(qkv[:, :, 2], (0, 2, 1, 3))

    valid_np, rpb_idx_np = _natten_dense_tables(H, W, kernel_size)
    valid = jnp.asarray(valid_np)
    rpb_idx = jnp.asarray(rpb_idx_np)
    rpb_flat = p["rpb"].reshape(nh, (2 * kernel_size - 1) ** 2)
    bias = jnp.where(valid[None], jnp.take(rpb_flat, rpb_idx, axis=1), _NEG_INF)

    out = pallas_neighborhood_attention(q, k, v, bias, scale)   # (B, nh, P, hd)
    out = jnp.transpose(out, (0, 2, 1, 3)).reshape(B * P, C)
    out = pallas_linear(out, p["proj_w"], p["proj_b"], residual=shortcut)
    return out


def hnat_block(x, p, num_heads, kernel_size):
    # attn_drop / proj_drop / drop / DropPath are identity at inference.
    B, H, W, C = x.shape
    x_flat = x.reshape(B * H * W, C)
    x_attn = hydra_na(x, p, num_heads, kernel_size, shortcut=x_flat)  # x + attn(norm1 x)
    h = pallas_ln_linear(x_attn, p["norm2_g"], p["norm2_b"],
                         p["fc1_w"], p["fc1_b"], activation="gelu")   # norm2 -> fc1 -> gelu
    out = pallas_linear(h, p["fc2_w"], p["fc2_b"], residual=x_attn)   # fc2 + residual
    return out.reshape(B, H, W, C)


def hnatir_forward(x_nchw, params, cfg):
    """_HNATIR.forward for upsampler='' , resi_connection='1conv', upscale=1."""
    B, _, H, W = x_nchw.shape
    C = cfg["embed_dim"]
    img_range = cfg["img_range"]

    x = jnp.transpose(x_nchw, (0, 2, 3, 1))                  # NCHW -> NHWC
    x = (x - params["mean"]) * img_range

    x_first = pallas_conv3x3(x, params["conv_first_w"], params["conv_first_b"])

    # forward_features
    feat = pallas_layernorm(x_first.reshape(-1, C),
                            params["first_norm_g"], params["first_norm_b"]).reshape(B, H, W, C)
    for lp in params["layers"]:                              # RHNATB layers
        res_in = feat
        for bp in lp["blocks"]:                              # HydraNATBlocks
            feat = hnat_block(feat, bp, cfg["num_heads"], cfg["kernel_size"])
        feat = pallas_conv3x3(feat, lp["conv_w"], lp["conv_b"], residual=res_in)
    feat = pallas_layernorm(feat.reshape(-1, C),
                            params["norm_g"], params["norm_b"]).reshape(B, H, W, C)

    res = pallas_conv3x3(feat, params["conv_after_body_w"], params["conv_after_body_b"],
                         residual=x_first)
    out = pallas_conv3x3(res, params["conv_last_w"], params["conv_last_b"], residual=x)
    out = out / img_range + params["mean"]
    out = jnp.transpose(out, (0, 3, 1, 2))                   # NHWC -> NCHW
    return out[:, :, : H * cfg["upscale"], : W * cfg["upscale"]]


# --------------------------- deterministic init ----------------------------

def init_params(seed, cfg):
    key = jax.random.PRNGKey(seed)
    C = cfg["embed_dim"]
    nh = cfg["num_heads"]
    k = cfg["kernel_size"]
    cin = cfg["num_in_ch"]
    cout = cfg["num_out_ch"]
    hidden = int(C * cfg["mlp_ratio"])

    def nxt():
        nonlocal key
        key, sub = jax.random.split(key)
        return sub

    def tn(shape, std=0.02):  # trunc_normal(std) ~ normal(std) for |bound| >> std
        return std * jax.random.normal(nxt(), shape, jnp.float32)

    def conv_w(ci, co):
        return tn((9, ci, co), std=0.05)

    params = {
        "mean": jnp.array([0.4488, 0.4371, 0.4040], jnp.float32).reshape(1, 1, 1, 3),
        "conv_first_w": conv_w(cin, C),
        "conv_first_b": jnp.zeros((C,), jnp.float32),
        "first_norm_g": jnp.ones((C,), jnp.float32),
        "first_norm_b": jnp.zeros((C,), jnp.float32),
        "norm_g": jnp.ones((C,), jnp.float32),
        "norm_b": jnp.zeros((C,), jnp.float32),
        "conv_after_body_w": conv_w(C, C),
        "conv_after_body_b": jnp.zeros((C,), jnp.float32),
        "conv_last_w": conv_w(C, cout),
        "conv_last_b": jnp.zeros((cout,), jnp.float32),
        "layers": [],
    }
    for _ in range(cfg["num_layers"]):
        blocks = []
        for _ in range(cfg["depth"]):
            blocks.append({
                "norm1_g": jnp.ones((C,), jnp.float32),
                "norm1_b": jnp.zeros((C,), jnp.float32),
                "qkv_w": tn((C, 3 * C)),
                "qkv_b": jnp.zeros((3 * C,), jnp.float32),
                "rpb": tn((nh, 2 * k - 1, 2 * k - 1)),
                "proj_w": tn((C, C)),
                "proj_b": jnp.zeros((C,), jnp.float32),
                "norm2_g": jnp.ones((C,), jnp.float32),
                "norm2_b": jnp.zeros((C,), jnp.float32),
                "fc1_w": tn((C, hidden)),
                "fc1_b": jnp.zeros((hidden,), jnp.float32),
                "fc2_w": tn((hidden, C)),
                "fc2_b": jnp.zeros((C,), jnp.float32),
            })
        params["layers"].append({
            "blocks": blocks,
            "conv_w": conv_w(C, C),
            "conv_b": jnp.zeros((C,), jnp.float32),
        })
    return params


# ---------------------------------- main -----------------------------------

if __name__ == "__main__":
    cfg = dict(
        upscale=1, num_in_ch=3, num_out_ch=3, embed_dim=32,
        num_layers=1, depth=1, num_heads=2, kernel_size=3,
        mlp_ratio=2.0, img_range=1.0,
    )
    x = jax.random.uniform(jax.random.PRNGKey(0), (2, 3, 8, 8), jnp.float32)
    params = init_params(0, cfg)

    fwd = jax.jit(lambda xx, pp: hnatir_forward(xx, pp, cfg))
    out = fwd(x, params)
    out = jax.block_until_ready(out)

    assert out.shape == (2, 3, 8, 8), out.shape
    assert bool(jnp.all(jnp.isfinite(out)))
    print("KERNEL_OK")
</pallas_src>

<mosaic_0001>
module attributes {stable_mosaic.version = 11 : i64} {
  func.func @_linear_kernel(%arg0: i32, %arg1: memref<128x27xf32, #tpu.memory_space<vmem>>, %arg2: memref<27x32xf32, #tpu.memory_space<vmem>>, %arg3: memref<1x32xf32, #tpu.memory_space<vmem>>, %arg4: memref<128x32xf32, #tpu.memory_space<vmem>>) attributes {dimension_semantics = [#tpu.dimension_semantics<parallel>], iteration_bounds = array<i64: 1>, scalar_prefetch = 0 : i64, scratch_operands = 0 : i64, tpu.core_type = #tpu.core_type<tc>, window_params = [{transform_indices = @transform_0, window_bounds = array<i64: 128, 27>}, {pipeline_mode = #tpu.pipeline_mode<synchronous>, transform_indices = @transform_1, window_bounds = array<i64: 27, 32>}, {pipeline_mode = #tpu.pipeline_mode<synchronous>, transform_indices = @transform_2, window_bounds = array<i64: 1, 32>}, {transform_indices = @transform_3, window_bounds = array<i64: 128, 32>}]} {
    %c0 = arith.constant 0 : index
    %c0_0 = arith.constant 0 : index
    %0 = vector.load %arg1[%c0, %c0_0] : memref<128x27xf32, #tpu.memory_space<vmem>>, vector<128x27xf32>
    %c0_1 = arith.constant 0 : index
    %c0_2 = arith.constant 0 : index
    %1 = vector.load %arg2[%c0_1, %c0_2] : memref<27x32xf32, #tpu.memory_space<vmem>>, vector<27x32xf32>
    %cst = arith.constant dense<0.000000e+00> : vector<128x32xf32>
    %2 = tpu.matmul %0, %1, %cst {dimension_numbers = #tpu.dot_dimension_numbers<[1], [0], [0], [1], [0, 0, 1, 1], [], []>} : vector<128x27xf32>, vector<27x32xf32>, vector<128x32xf32> -> vector<128x32xf32>
    %c0_3 = arith.constant 0 : index
    %c0_4 = arith.constant 0 : index
    %3 = vector.load %arg3[%c0_3, %c0_4] : memref<1x32xf32, #tpu.memory_space<vmem>>, vector<1x32xf32>
    %4 = vector.broadcast %3 : vector<1x32xf32> to vector<128x32xf32>
    %5 = arith.addf %2, %4 : vector<128x32xf32>
    %c0_5 = arith.constant 0 : index
    %c0_6 = arith.constant 0 : index
    %6 = vector.load %arg4[%c0_5, %c0_6] : memref<128x32xf32, #tpu.memory_space<vmem>>, vector<128x32xf32>
    tpu.vector_store %arg4[%c0_5, %c0_6], %5 {strides = array<i32>} : memref<128x32xf32, #tpu.memory_space<vmem>>, vector<128x32xf32>,
    return
  }
  func.func @transform_0(%arg0: i32) -> (i32, i32) {
    %c0_i32 = arith.constant 0 : i32
    %c0_i32_0 = arith.constant 0 : i32
    return %arg0, %c0_i32 : i32, i32
  }
  func.func @transform_1(%arg0: i32) -> (i32, i32) {
    %c0_i32 = arith.constant 0 : i32
    %c0_i32_0 = arith.constant 0 : i32
    %c0_i32_1 = arith.constant 0 : i32
    return %c0_i32, %c0_i32_0 : i32, i32
  }
  func.func @transform_2(%arg0: i32) -> (i32, i32) {
    %c0_i32 = arith.constant 0 : i32
    %c0_i32_0 = arith.constant 0 : i32
    %c0_i32_1 = arith.constant 0 : i32
    return %c0_i32, %c0_i32_0 : i32, i32
  }
  func.func @transform_3(%arg0: i32) -> (i32, i32) {
    %c0_i32 = arith.constant 0 : i32
    %c0_i32_0 = arith.constant 0 : i32
    return %arg0, %c0_i32 : i32, i32
  }
}

module attributes {stable_mosaic.version = 11 : i64} {
  func.func @_layernorm_kernel(%arg0: i32, %arg1: memref<128x32xf32, #tpu.memory_space<vmem>>, %arg2: memref<1x32xf32, #tpu.memory_space<vmem>>, %arg3: memref<1x32xf32, #tpu.memory_space<vmem>>, %arg4: memref<128x32xf32, #tpu.memory_space<vmem>>) attributes {dimension_semantics = [#tpu.dimension_semantics<parallel>], iteration_bounds = array<i64: 1>, scalar_prefetch = 0 : i64, scratch_operands = 0 : i64, tpu.core_type = #tpu.core_type<tc>, window_params = [{transform_indices = @transform_0, window_bounds = array<i64: 128, 32>}, {pipeline_mode = #tpu.pipeline_mode<synchronous>, transform_indices = @transform_1, window_bounds = array<i64: 1, 32>}, {pipeline_mode = #tpu.pipeline_mode<synchronous>, transform_indices = @transform_2, window_bounds = array<i64: 1, 32>}, {transform_indices = @transform_3, window_bounds = array<i64: 128, 32>}]} {
    %c0 = arith.constant 0 : index
    %c0_0 = arith.constant 0 : index
    %0 = vector.load %arg1[%c0, %c0_0] : memref<128x32xf32, #tpu.memory_space<vmem>>, vector<128x32xf32>
    %cst = arith.constant dense<0.000000e+00> : vector<128xf32>
    %1 = vector.multi_reduction <add>, %0, %cst [1] : vector<128x32xf32> to vector<128xf32>
    %2 = vector.shape_cast %1 : vector<128xf32> to vector<128x1xf32>
    %cst_1 = arith.constant 3.200000e+01 : f32
    %3 = vector.broadcast %cst_1 : f32 to vector<128x1xf32>
    %4 = arith.divf %2, %3 : vector<128x1xf32>
    %5 = vector.broadcast %4 : vector<128x1xf32> to vector<128x32xf32>
    %6 = arith.subf %0, %5 : vector<128x32xf32>
    %7 = arith.mulf %6, %6 : vector<128x32xf32>
    %cst_2 = arith.constant dense<0.000000e+00> : vector<128xf32>
    %8 = vector.multi_reduction <add>, %7, %cst_2 [1] : vector<128x32xf32> to vector<128xf32>
    %9 = vector.shape_cast %8 : vector<128xf32> to vector<128x1xf32>
    %cst_3 = arith.constant 3.200000e+01 : f32
    %10 = vector.broadcast %cst_3 : f32 to vector<128x1xf32>
    %11 = arith.divf %9, %10 : vector<128x1xf32>
    %cst_4 = arith.constant 9.99999974E-6 : f32
    %12 = vector.broadcast %cst_4 : f32 to vector<128x1xf32>
    %13 = arith.addf %11, %12 : vector<128x1xf32>
    %14 = math.rsqrt %13 : vector<128x1xf32>
    %15 = vector.broadcast %14 : vector<128x1xf32> to vector<128x32xf32>
    %16 = arith.mulf %6, %15 : vector<128x32xf32>
    %c0_5 = arith.constant 0 : index
    %c0_6 = arith.constant 0 : index
    %17 = vector.load %arg2[%c0_5, %c0_6] : memref<1x32xf32, #tpu.memory_space<vmem>>, vector<1x32xf32>
    %18 = vector.broadcast %17 : vector<1x32xf32> to vector<128x32xf32>
    %19 = arith.mulf %16, %18 : vector<128x32xf32>
    %c0_7 = arith.constant 0 : index
    %c0_8 = arith.constant 0 : index
    %20 = vector.load %arg3[%c0_7, %c0_8] : memref<1x32xf32, #tpu.memory_space<vmem>>, vector<1x32xf32>
    %21 = vector.broadcast %20 : vector<1x32xf32> to vector<128x32xf32>
    %22 = arith.addf %19, %21 : vector<128x32xf32>
    %c0_9 = arith.constant 0 : index
    %c0_10 = arith.constant 0 : index
    %23 = vector.load %arg4[%c0_9, %c0_10] : memref<128x32xf32, #tpu.memory_space<vmem>>, vector<128x32xf32>
    tpu.vector_store %arg4[%c0_9, %c0_10], %22 {strides = array<i32>} : memref<128x32xf32, #tpu.memory_space<vmem>>, vector<128x32xf32>,
    return
  }
  func.func @transform_0(%arg0: i32) -> (i32, i32) {
    %c0_i32 = arith.constant 0 : i32
    %c0_i32_0 = arith.constant 0 : i32
    return %arg0, %c0_i32 : i32, i32
  }
  func.func @transform_1(%arg0: i32) -> (i32, i32) {
    %c0_i32 = arith.constant 0 : i32
    %c0_i32_0 = arith.constant 0 : i32
    %c0_i32_1 = arith.constant 0 : i32
    return %c0_i32, %c0_i32_0 : i32, i32
  }
  func.func @transform_2(%arg0: i32) -> (i32, i32) {
    %c0_i32 = arith.constant 0 : i32
    %c0_i32_0 = arith.constant 0 : i32
    %c0_i32_1 = arith.constant 0 : i32
    return %c0_i32, %c0_i32_0 : i32, i32
  }
  func.func @transform_3(%arg0: i32) -> (i32, i32) {
    %c0_i32 = arith.constant 0 : i32
    %c0_i32_0 = arith.constant 0 : i32
    return %arg0, %c0_i32 : i32, i32
  }
}

module attributes {stable_mosaic.version = 11 : i64} {
  func.func @_ln_linear_kernel(%arg0: i32, %arg1: memref<128x32xf32, #tpu.memory_space<vmem>>, %arg2: memref<1x32xf32, #tpu.memory_space<vmem>>, %arg3: memref<1x32xf32, #tpu.memory_space<vmem>>, %arg4: memref<32x96xf32, #tpu.memory_space<vmem>>, %arg5: memref<1x96xf32, #tpu.memory_space<vmem>>, %arg6: memref<128x96xf32, #tpu.memory_space<vmem>>) attributes {dimension_semantics = [#tpu.dimension_semantics<parallel>], iteration_bounds = array<i64: 1>, scalar_prefetch = 0 : i64, scratch_operands = 0 : i64, tpu.core_type = #tpu.core_type<tc>, window_params = [{transform_indices = @transform_0, window_bounds = array<i64: 128, 32>}, {pipeline_mode = #tpu.pipeline_mode<synchronous>, transform_indices = @transform_1, window_bounds = array<i64: 1, 32>}, {pipeline_mode = #tpu.pipeline_mode<synchronous>, transform_indices = @transform_2, window_bounds = array<i64: 1, 32>}, {pipeline_mode = #tpu.pipeline_mode<synchronous>, transform_indices = @transform_3, window_bounds = array<i64: 32, 96>}, {pipeline_mode = #tpu.pipeline_mode<synchronous>, transform_indices = @transform_4, window_bounds = array<i64: 1, 96>}, {transform_indices = @transform_5, window_bounds = array<i64: 128, 96>}]} {
    %c0 = arith.constant 0 : index
    %c0_0 = arith.constant 0 : index
    %0 = vector.load %arg1[%c0, %c0_0] : memref<128x32xf32, #tpu.memory_space<vmem>>, vector<128x32xf32>
    %cst = arith.constant dense<0.000000e+00> : vector<128xf32>
    %1 = vector.multi_reduction <add>, %0, %cst [1] : vector<128x32xf32> to vector<128xf32>
    %2 = vector.shape_cast %1 : vector<128xf32> to vector<128x1xf32>
    %cst_1 = arith.constant 3.200000e+01 : f32
    %3 = vector.broadcast %cst_1 : f32 to vector<128x1xf32>
    %4 = arith.divf %2, %3 : vector<128x1xf32>
    %5 = vector.broadcast %4 : vector<128x1xf32> to vector<128x32xf32>
    %6 = arith.subf %0, %5 : vector<128x32xf32>
    %7 = arith.mulf %6, %6 : vector<128x32xf32>
    %cst_2 = arith.constant dense<0.000000e+00> : vector<128xf32>
    %8 = vector.multi_reduction <add>, %7, %cst_2 [1] : vector<128x32xf32> to vector<128xf32>
    %9 = vector.shape_cast %8 : vector<128xf32> to vector<128x1xf32>
    %cst_3 = arith.constant 3.200000e+01 : f32
    %10 = vector.broadcast %cst_3 : f32 to vector<128x1xf32>
    %11 = arith.divf %9, %10 : vector<128x1xf32>
    %cst_4 = arith.constant 9.99999974E-6 : f32
    %12 = vector.broadcast %cst_4 : f32 to vector<128x1xf32>
    %13 = arith.addf %11, %12 : vector<128x1xf32>
    %14 = math.rsqrt %13 : vector<128x1xf32>
    %15 = vector.broadcast %14 : vector<128x1xf32> to vector<128x32xf32>
    %16 = arith.mulf %6, %15 : vector<128x32xf32>
    %c0_5 = arith.constant 0 : index
    %c0_6 = arith.constant 0 : index
    %17 = vector.load %arg2[%c0_5, %c0_6] : memref<1x32xf32, #tpu.memory_space<vmem>>, vector<1x32xf32>
    %18 = vector.broadcast %17 : vector<1x32xf32> to vector<128x32xf32>
    %19 = arith.mulf %16, %18 : vector<128x32xf32>
    %c0_7 = arith.constant 0 : index
    %c0_8 = arith.constant 0 : index
    %20 = vector.load %arg3[%c0_7, %c0_8] : memref<1x32xf32, #tpu.memory_space<vmem>>, vector<1x32xf32>
    %21 = vector.broadcast %20 : vector<1x32xf32> to vector<128x32xf32>
    %22 = arith.addf %19, %21 : vector<128x32xf32>
    %c0_9 = arith.constant 0 : index
    %c0_10 = arith.constant 0 : index
    %23 = vector.load %arg4[%c0_9, %c0_10] : memref<32x96xf32, #tpu.memory_space<vmem>>, vector<32x96xf32>
    %cst_11 = arith.constant dense<0.000000e+00> : vector<128x96xf32>
    %24 = tpu.matmul %22, %23, %cst_11 {dimension_numbers = #tpu.dot_dimension_numbers<[1], [0], [0], [1], [0, 0, 1, 1], [], []>} : vector<128x32xf32>, vector<32x96xf32>, vector<128x96xf32> -> vector<128x96xf32>
    %c0_12 = arith.constant 0 : index
    %c0_13 = arith.constant 0 : index
    %25 = vector.load %arg5[%c0_12, %c0_13] : memref<1x96xf32, #tpu.memory_space<vmem>>, vector<1x96xf32>
    %26 = vector.broadcast %25 : vector<1x96xf32> to vector<128x96xf32>
    %27 = arith.addf %24, %26 : vector<128x96xf32>
    %c0_14 = arith.constant 0 : index
    %c0_15 = arith.constant 0 : index
    %28 = vector.load %arg6[%c0_14, %c0_15] : memref<128x96xf32, #tpu.memory_space<vmem>>, vector<128x96xf32>
    tpu.vector_store %arg6[%c0_14, %c0_15], %27 {strides = array<i32>} : memref<128x96xf32, #tpu.memory_space<vmem>>, vector<128x96xf32>,
    return
  }
  func.func @transform_0(%arg0: i32) -> (i32, i32) {
    %c0_i32 = arith.constant 0 : i32
    %c0_i32_0 = arith.constant 0 : i32
    return %arg0, %c0_i32 : i32, i32
  }
  func.func @transform_1(%arg0: i32) -> (i32, i32) {
    %c0_i32 = arith.constant 0 : i32
    %c0_i32_0 = arith.constant 0 : i32
    %c0_i32_1 = arith.constant 0 : i32
    return %c0_i32, %c0_i32_0 : i32, i32
  }
  func.func @transform_2(%arg0: i32) -> (i32, i32) {
    %c0_i32 = arith.constant 0 : i32
    %c0_i32_0 = arith.constant 0 : i32
    %c0_i32_1 = arith.constant 0 : i32
    return %c0_i32, %c0_i32_0 : i32, i32
  }
  func.func @transform_3(%arg0: i32) -> (i32, i32) {
    %c0_i32 = arith.constant 0 : i32
    %c0_i32_0 = arith.constant 0 : i32
    %c0_i32_1 = arith.constant 0 : i32
    return %c0_i32, %c0_i32_0 : i32, i32
  }
  func.func @transform_4(%arg0: i32) -> (i32, i32) {
    %c0_i32 = arith.constant 0 : i32
    %c0_i32_0 = arith.constant 0 : i32
    %c0_i32_1 = arith.constant 0 : i32
    return %c0_i32, %c0_i32_0 : i32, i32
  }
  func.func @transform_5(%arg0: i32) -> (i32, i32) {
    %c0_i32 = arith.constant 0 : i32
    %c0_i32_0 = arith.constant 0 : i32
    return %arg0, %c0_i32 : i32, i32
  }
}

module attributes {stable_mosaic.version = 11 : i64} {
  func.func @_na_dense_kernel(%arg0: i32, %arg1: i32, %arg2: i32, %arg3: memref<1x1x64x16xf32, #tpu.memory_space<vmem>>, %arg4: memref<1x1x64x16xf32, #tpu.memory_space<vmem>>, %arg5: memref<1x1x64x16xf32, #tpu.memory_space<vmem>>, %arg6: memref<1x64x64xf32, #tpu.memory_space<vmem>>, %arg7: memref<1x1x64x16xf32, #tpu.memory_space<vmem>>) attributes {dimension_semantics = [#tpu.dimension_semantics<parallel>, #tpu.dimension_semantics<parallel>, #tpu.dimension_semantics<parallel>], iteration_bounds = array<i64: 2, 2, 1>, scalar_prefetch = 0 : i64, scratch_operands = 0 : i64, tpu.core_type = #tpu.core_type<tc>, window_params = [{transform_indices = @transform_0, window_bounds = array<i64: 1, 1, 64, 16>}, {transform_indices = @transform_1, window_bounds = array<i64: 1, 1, 64, 16>}, {transform_indices = @transform_2, window_bounds = array<i64: 1, 1, 64, 16>}, {transform_indices = @transform_3, window_bounds = array<i64: 1, 64, 64>}, {transform_indices = @transform_4, window_bounds = array<i64: 1, 1, 64, 16>}]} {
    %c0 = arith.constant 0 : index
    %c0_0 = arith.constant 0 : index
    %c0_1 = arith.constant 0 : index
    %c0_2 = arith.constant 0 : index
    %0 = vector.load %arg3[%c0, %c0_0, %c0_1, %c0_2] : memref<1x1x64x16xf32, #tpu.memory_space<vmem>>, vector<1x1x64x16xf32>
    %1 = vector.shape_cast %0 : vector<1x1x64x16xf32> to vector<64x16xf32>
    %cst = arith.constant 2.500000e-01 : f32
    %2 = vector.broadcast %cst : f32 to vector<64x16xf32>
    %3 = arith.mulf %1, %2 : vector<64x16xf32>
    %c0_3 = arith.constant 0 : index
    %c0_4 = arith.constant 0 : index
    %c0_5 = arith.constant 0 : index
    %c0_6 = arith.constant 0 : index
    %4 = vector.load %arg4[%c0_3, %c0_4, %c0_5, %c0_6] : memref<1x1x64x16xf32, #tpu.memory_space<vmem>>, vector<1x1x64x16xf32>
    %5 = vector.shape_cast %4 : vector<1x1x64x16xf32> to vector<64x16xf32>
    %c0_7 = arith.constant 0 : index
    %c0_8 = arith.constant 0 : index
    %c0_9 = arith.constant 0 : index
    %c0_10 = arith.constant 0 : index
    %6 = vector.load %arg5[%c0_7, %c0_8, %c0_9, %c0_10] : memref<1x1x64x16xf32, #tpu.memory_space<vmem>>, vector<1x1x64x16xf32>
    %7 = vector.shape_cast %6 : vector<1x1x64x16xf32> to vector<64x16xf32>
    %cst_11 = arith.constant dense<0.000000e+00> : vector<64x64xf32>
    %8 = tpu.matmul %3, %5, %cst_11 {dimension_numbers = #tpu.dot_dimension_numbers<[1], [1], [0], [0], [0, 0, 1, 0], [], []>} : vector<64x16xf32>, vector<64x16xf32>, vector<64x64xf32> -> vector<64x64xf32>
    %c0_12 = arith.constant 0 : index
    %c0_13 = arith.constant 0 : index
    %c0_14 = arith.constant 0 : index
    %9 = vector.load %arg6[%c0_12, %c0_13, %c0_14] : memref<1x64x64xf32, #tpu.memory_space<vmem>>, vector<1x64x64xf32>
    %10 = vector.shape_cast %9 : vector<1x64x64xf32> to vector<64x64xf32>
    %11 = arith.addf %8, %10 : vector<64x64xf32>
    %cst_15 = arith.constant dense<0xFF800000> : vector<64xf32>
    %12 = vector.multi_reduction <maximumf>, %11, %cst_15 [1] : vector<64x64xf32> to vector<64xf32>
    %13 = vector.shape_cast %12 : vector<64xf32> to vector<64x1xf32>
    %14 = vector.broadcast %13 : vector<64x1xf32> to vector<64x64xf32>
    %15 = arith.subf %11, %14 : vector<64x64xf32>
    %16 = math.exp %15 : vector<64x64xf32>
    %cst_16 = arith.constant dense<0.000000e+00> : vector<64xf32>
    %17 = vector.multi_reduction <add>, %16, %cst_16 [1] : vector<64x64xf32> to vector<64xf32>
    %18 = vector.shape_cast %17 : vector<64xf32> to vector<64x1xf32>
    %19 = tpu.reciprocal %18 {approx = true} : vector<64x1xf32> -> vector<64x1xf32>
    %20 = vector.broadcast %19 : vector<64x1xf32> to vector<64x64xf32>
    %21 = arith.mulf %16, %20 : vector<64x64xf32>
    %cst_17 = arith.constant dense<0.000000e+00> : vector<64x16xf32>
    %22 = tpu.matmul %21, %7, %cst_17 {dimension_numbers = #tpu.dot_dimension_numbers<[1], [0], [0], [1], [0, 0, 1, 1], [], []>} : vector<64x64xf32>, vector<64x16xf32>, vector<64x16xf32> -> vector<64x16xf32>
    %c0_18 = arith.constant 0 : index
    %c0_19 = arith.constant 0 : index
    %c0_20 = arith.constant 0 : index
    %c0_21 = arith.constant 0 : index
    %23 = vector.load %arg7[%c0_18, %c0_19, %c0_20, %c0_21] : memref<1x1x64x16xf32, #tpu.memory_space<vmem>>, vector<1x1x64x16xf32>
    %24 = vector.shape_cast %23 : vector<1x1x64x16xf32> to vector<64x16xf32>
    %25 = vector.shape_cast %22 : vector<64x16xf32> to vector<1x1x64x16xf32>
    tpu.vector_store %arg7[%c0_18, %c0_19, %c0_20, %c0_21], %25 {strides = array<i32>} : memref<1x1x64x16xf32, #tpu.memory_space<vmem>>, vector<1x1x64x16xf32>,
    return
  }
  func.func @transform_0(%arg0: i32, %arg1: i32, %arg2: i32) -> (i32, i32, i32, i32) {
    %c0_i32 = arith.constant 0 : i32
    %c0_i32_0 = arith.constant 0 : i32
    return %arg0, %arg1, %arg2, %c0_i32 : i32, i32, i32, i32
  }
  func.func @transform_1(%arg0: i32, %arg1: i32, %arg2: i32) -> (i32, i32, i32, i32) {
    %c0_i32 = arith.constant 0 : i32
    %c0_i32_0 = arith.constant 0 : i32
    %c0_i32_1 = arith.constant 0 : i32
    return %arg0, %arg1, %c0_i32, %c0_i32_0 : i32, i32, i32, i32
  }
  func.func @transform_2(%arg0: i32, %arg1: i32, %arg2: i32) -> (i32, i32, i32, i32) {
    %c0_i32 = arith.constant 0 : i32
    %c0_i32_0 = arith.constant 0 : i32
    %c0_i32_1 = arith.constant 0 : i32
    return %arg0, %arg1, %c0_i32, %c0_i32_0 : i32, i32, i32, i32
  }
  func.func @transform_3(%arg0: i32, %arg1: i32, %arg2: i32) -> (i32, i32, i32) {
    %c0_i32 = arith.constant 0 : i32
    %c0_i32_0 = arith.constant 0 : i32
    return %arg1, %arg2, %c0_i32 : i32, i32, i32
  }
  func.func @transform_4(%arg0: i32, %arg1: i32, %arg2: i32) -> (i32, i32, i32, i32) {
    %c0_i32 = arith.constant 0 : i32
    %c0_i32_0 = arith.constant 0 : i32
    return %arg0, %arg1, %arg2, %c0_i32 : i32, i32, i32, i32
  }
}

module attributes {stable_mosaic.version = 11 : i64} {
  func.func @_linear_kernel(%arg0: i32, %arg1: memref<128x32xf32, #tpu.memory_space<vmem>>, %arg2: memref<32x32xf32, #tpu.memory_space<vmem>>, %arg3: memref<1x32xf32, #tpu.memory_space<vmem>>, %arg4: memref<128x32xf32, #tpu.memory_space<vmem>>, %arg5: memref<128x32xf32, #tpu.memory_space<vmem>>) attributes {dimension_semantics = [#tpu.dimension_semantics<parallel>], iteration_bounds = array<i64: 1>, scalar_prefetch = 0 : i64, scratch_operands = 0 : i64, tpu.core_type = #tpu.core_type<tc>, window_params = [{transform_indices = @transform_0, window_bounds = array<i64: 128, 32>}, {pipeline_mode = #tpu.pipeline_mode<synchronous>, transform_indices = @transform_1, window_bounds = array<i64: 32, 32>}, {pipeline_mode = #tpu.pipeline_mode<synchronous>, transform_indices = @transform_2, window_bounds = array<i64: 1, 32>}, {transform_indices = @transform_3, window_bounds = array<i64: 128, 32>}, {transform_indices = @transform_4, window_bounds = array<i64: 128, 32>}]} {
    %c0 = arith.constant 0 : index
    %c0_0 = arith.constant 0 : index
    %0 = vector.load %arg1[%c0, %c0_0] : memref<128x32xf32, #tpu.memory_space<vmem>>, vector<128x32xf32>
    %c0_1 = arith.constant 0 : index
    %c0_2 = arith.constant 0 : index
    %1 = vector.load %arg2[%c0_1, %c0_2] : memref<32x32xf32, #tpu.memory_space<vmem>>, vector<32x32xf32>
    %cst = arith.constant dense<0.000000e+00> : vector<128x32xf32>
    %2 = tpu.matmul %0, %1, %cst {dimension_numbers = #tpu.dot_dimension_numbers<[1], [0], [0], [1], [0, 0, 1, 1], [], []>} : vector<128x32xf32>, vector<32x32xf32>, vector<128x32xf32> -> vector<128x32xf32>
    %c0_3 = arith.constant 0 : index
    %c0_4 = arith.constant 0 : index
    %3 = vector.load %arg3[%c0_3, %c0_4] : memref<1x32xf32, #tpu.memory_space<vmem>>, vector<1x32xf32>
    %4 = vector.broadcast %3 : vector<1x32xf32> to vector<128x32xf32>
    %5 = arith.addf %2, %4 : vector<128x32xf32>
    %c0_5 = arith.constant 0 : index
    %c0_6 = arith.constant 0 : index
    %6 = vector.load %arg4[%c0_5, %c0_6] : memref<128x32xf32, #tpu.memory_space<vmem>>, vector<128x32xf32>
    %7 = arith.addf %5, %6 : vector<128x32xf32>
    %c0_7 = arith.constant 0 : index
    %c0_8 = arith.constant 0 : index
    %8 = vector.load %arg5[%c0_7, %c0_8] : memref<128x32xf32, #tpu.memory_space<vmem>>, vector<128x32xf32>
    tpu.vector_store %arg5[%c0_7, %c0_8], %7 {strides = array<i32>} : memref<128x32xf32, #tpu.memory_space<vmem>>, vector<128x32xf32>,
    return
  }
  func.func @transform_0(%arg0: i32) -> (i32, i32) {
    %c0_i32 = arith.constant 0 : i32
    %c0_i32_0 = arith.constant 0 : i32
    return %arg0, %c0_i32 : i32, i32
  }
  func.func @transform_1(%arg0: i32) -> (i32, i32) {
    %c0_i32 = arith.constant 0 : i32
    %c0_i32_0 = arith.constant 0 : i32
    %c0_i32_1 = arith.constant 0 : i32
    return %c0_i32, %c0_i32_0 : i32, i32
  }
  func.func @transform_2(%arg0: i32) -> (i32, i32) {
    %c0_i32 = arith.constant 0 : i32
    %c0_i32_0 = arith.constant 0 : i32
    %c0_i32_1 = arith.constant 0 : i32
    return %c0_i32, %c0_i32_0 : i32, i32
  }
  func.func @transform_3(%arg0: i32) -> (i32, i32) {
    %c0_i32 = arith.constant 0 : i32
    %c0_i32_0 = arith.constant 0 : i32
    return %arg0, %c0_i32 : i32, i32
  }
  func.func @transform_4(%arg0: i32) -> (i32, i32) {
    %c0_i32 = arith.constant 0 : i32
    %c0_i32_0 = arith.constant 0 : i32
    return %arg0, %c0_i32 : i32, i32
  }
}

module attributes {stable_mosaic.version = 11 : i64} {
  func.func @_ln_linear_kernel(%arg0: i32, %arg1: memref<128x32xf32, #tpu.memory_space<vmem>>, %arg2: memref<1x32xf32, #tpu.memory_space<vmem>>, %arg3: memref<1x32xf32, #tpu.memory_space<vmem>>, %arg4: memref<32x64xf32, #tpu.memory_space<vmem>>, %arg5: memref<1x64xf32, #tpu.memory_space<vmem>>, %arg6: memref<128x64xf32, #tpu.memory_space<vmem>>) attributes {dimension_semantics = [#tpu.dimension_semantics<parallel>], iteration_bounds = array<i64: 1>, scalar_prefetch = 0 : i64, scratch_operands = 0 : i64, tpu.core_type = #tpu.core_type<tc>, window_params = [{transform_indices = @transform_0, window_bounds = array<i64: 128, 32>}, {pipeline_mode = #tpu.pipeline_mode<synchronous>, transform_indices = @transform_1, window_bounds = array<i64: 1, 32>}, {pipeline_mode = #tpu.pipeline_mode<synchronous>, transform_indices = @transform_2, window_bounds = array<i64: 1, 32>}, {pipeline_mode = #tpu.pipeline_mode<synchronous>, transform_indices = @transform_3, window_bounds = array<i64: 32, 64>}, {pipeline_mode = #tpu.pipeline_mode<synchronous>, transform_indices = @transform_4, window_bounds = array<i64: 1, 64>}, {transform_indices = @transform_5, window_bounds = array<i64: 128, 64>}]} {
    %c0 = arith.constant 0 : index
    %c0_0 = arith.constant 0 : index
    %0 = vector.load %arg1[%c0, %c0_0] : memref<128x32xf32, #tpu.memory_space<vmem>>, vector<128x32xf32>
    %cst = arith.constant dense<0.000000e+00> : vector<128xf32>
    %1 = vector.multi_reduction <add>, %0, %cst [1] : vector<128x32xf32> to vector<128xf32>
    %2 = vector.shape_cast %1 : vector<128xf32> to vector<128x1xf32>
    %cst_1 = arith.constant 3.200000e+01 : f32
    %3 = vector.broadcast %cst_1 : f32 to vector<128x1xf32>
    %4 = arith.divf %2, %3 : vector<128x1xf32>
    %5 = vector.broadcast %4 : vector<128x1xf32> to vector<128x32xf32>
    %6 = arith.subf %0, %5 : vector<128x32xf32>
    %7 = arith.mulf %6, %6 : vector<128x32xf32>
    %cst_2 = arith.constant dense<0.000000e+00> : vector<128xf32>
    %8 = vector.multi_reduction <add>, %7, %cst_2 [1] : vector<128x32xf32> to vector<128xf32>
    %9 = vector.shape_cast %8 : vector<128xf32> to vector<128x1xf32>
    %cst_3 = arith.constant 3.200000e+01 : f32
    %10 = vector.broadcast %cst_3 : f32 to vector<128x1xf32>
    %11 = arith.divf %9, %10 : vector<128x1xf32>
    %cst_4 = arith.constant 9.99999974E-6 : f32
    %12 = vector.broadcast %cst_4 : f32 to vector<128x1xf32>
    %13 = arith.addf %11, %12 : vector<128x1xf32>
    %14 = math.rsqrt %13 : vector<128x1xf32>
    %15 = vector.broadcast %14 : vector<128x1xf32> to vector<128x32xf32>
    %16 = arith.mulf %6, %15 : vector<128x32xf32>
    %c0_5 = arith.constant 0 : index
    %c0_6 = arith.constant 0 : index
    %17 = vector.load %arg2[%c0_5, %c0_6] : memref<1x32xf32, #tpu.memory_space<vmem>>, vector<1x32xf32>
    %18 = vector.broadcast %17 : vector<1x32xf32> to vector<128x32xf32>
    %19 = arith.mulf %16, %18 : vector<128x32xf32>
    %c0_7 = arith.constant 0 : index
    %c0_8 = arith.constant 0 : index
    %20 = vector.load %arg3[%c0_7, %c0_8] : memref<1x32xf32, #tpu.memory_space<vmem>>, vector<1x32xf32>
    %21 = vector.broadcast %20 : vector<1x32xf32> to vector<128x32xf32>
    %22 = arith.addf %19, %21 : vector<128x32xf32>
    %c0_9 = arith.constant 0 : index
    %c0_10 = arith.constant 0 : index
    %23 = vector.load %arg4[%c0_9, %c0_10] : memref<32x64xf32, #tpu.memory_space<vmem>>, vector<32x64xf32>
    %cst_11 = arith.constant dense<0.000000e+00> : vector<128x64xf32>
    %24 = tpu.matmul %22, %23, %cst_11 {dimension_numbers = #tpu.dot_dimension_numbers<[1], [0], [0], [1], [0, 0, 1, 1], [], []>} : vector<128x32xf32>, vector<32x64xf32>, vector<128x64xf32> -> vector<128x64xf32>
    %c0_12 = arith.constant 0 : index
    %c0_13 = arith.constant 0 : index
    %25 = vector.load %arg5[%c0_12, %c0_13] : memref<1x64xf32, #tpu.memory_space<vmem>>, vector<1x64xf32>
    %26 = vector.broadcast %25 : vector<1x64xf32> to vector<128x64xf32>
    %27 = arith.addf %24, %26 : vector<128x64xf32>
    %cst_14 = arith.constant 5.000000e-01 : f32
    %28 = vector.broadcast %cst_14 : f32 to vector<128x64xf32>
    %29 = arith.mulf %28, %27 : vector<128x64xf32>
    %cst_15 = arith.constant 4.471500e-02 : f32
    %30 = vector.broadcast %cst_15 : f32 to vector<128x64xf32>
    %31 = arith.mulf %30, %27 : vector<128x64xf32>
    %32 = arith.mulf %31, %27 : vector<128x64xf32>
    %33 = arith.mulf %32, %27 : vector<128x64xf32>
    %34 = arith.addf %27, %33 : vector<128x64xf32>
    %cst_16 = arith.constant 0.797884583 : f32
    %35 = vector.broadcast %cst_16 : f32 to vector<128x64xf32>
    %36 = arith.mulf %35, %34 : vector<128x64xf32>
    %37 = math.tanh %36 : vector<128x64xf32>
    %cst_17 = arith.constant 1.000000e+00 : f32
    %38 = vector.broadcast %cst_17 : f32 to vector<128x64xf32>
    %39 = arith.addf %38, %37 : vector<128x64xf32>
    %40 = arith.mulf %29, %39 : vector<128x64xf32>
    %c0_18 = arith.constant 0 : index
    %c0_19 = arith.constant 0 : index
    %41 = vector.load %arg6[%c0_18, %c0_19] : memref<128x64xf32, #tpu.memory_space<vmem>>, vector<128x64xf32>
    tpu.vector_store %arg6[%c0_18, %c0_19], %40 {strides = array<i32>} : memref<128x64xf32, #tpu.memory_space<vmem>>, vector<128x64xf32>,
    return
  }
  func.func @transform_0(%arg0: i32) -> (i32, i32) {
    %c0_i32 = arith.constant 0 : i32
    %c0_i32_0 = arith.constant 0 : i32
    return %arg0, %c0_i32 : i32, i32
  }
  func.func @transform_1(%arg0: i32) -> (i32, i32) {
    %c0_i32 = arith.constant 0 : i32
    %c0_i32_0 = arith.constant 0 : i32
    %c0_i32_1 = arith.constant 0 : i32
    return %c0_i32, %c0_i32_0 : i32, i32
  }
  func.func @transform_2(%arg0: i32) -> (i32, i32) {
    %c0_i32 = arith.constant 0 : i32
    %c0_i32_0 = arith.constant 0 : i32
    %c0_i32_1 = arith.constant 0 : i32
    return %c0_i32, %c0_i32_0 : i32, i32
  }
  func.func @transform_3(%arg0: i32) -> (i32, i32) {
    %c0_i32 = arith.constant 0 : i32
    %c0_i32_0 = arith.constant 0 : i32
    %c0_i32_1 = arith.constant 0 : i32
    return %c0_i32, %c0_i32_0 : i32, i32
  }
  func.func @transform_4(%arg0: i32) -> (i32, i32) {
    %c0_i32 = arith.constant 0 : i32
    %c0_i32_0 = arith.constant 0 : i32
    %c0_i32_1 = arith.constant 0 : i32
    return %c0_i32, %c0_i32_0 : i32, i32
  }
  func.func @transform_5(%arg0: i32) -> (i32, i32) {
    %c0_i32 = arith.constant 0 : i32
    %c0_i32_0 = arith.constant 0 : i32
    return %arg0, %c0_i32 : i32, i32
  }
}

module attributes {stable_mosaic.version = 11 : i64} {
  func.func @_linear_kernel(%arg0: i32, %arg1: memref<128x64xf32, #tpu.memory_space<vmem>>, %arg2: memref<64x32xf32, #tpu.memory_space<vmem>>, %arg3: memref<1x32xf32, #tpu.memory_space<vmem>>, %arg4: memref<128x32xf32, #tpu.memory_space<vmem>>, %arg5: memref<128x32xf32, #tpu.memory_space<vmem>>) attributes {dimension_semantics = [#tpu.dimension_semantics<parallel>], iteration_bounds = array<i64: 1>, scalar_prefetch = 0 : i64, scratch_operands = 0 : i64, tpu.core_type = #tpu.core_type<tc>, window_params = [{transform_indices = @transform_0, window_bounds = array<i64: 128, 64>}, {pipeline_mode = #tpu.pipeline_mode<synchronous>, transform_indices = @transform_1, window_bounds = array<i64: 64, 32>}, {pipeline_mode = #tpu.pipeline_mode<synchronous>, transform_indices = @transform_2, window_bounds = array<i64: 1, 32>}, {transform_indices = @transform_3, window_bounds = array<i64: 128, 32>}, {transform_indices = @transform_4, window_bounds = array<i64: 128, 32>}]} {
    %c0 = arith.constant 0 : index
    %c0_0 = arith.constant 0 : index
    %0 = vector.load %arg1[%c0, %c0_0] : memref<128x64xf32, #tpu.memory_space<vmem>>, vector<128x64xf32>
    %c0_1 = arith.constant 0 : index
    %c0_2 = arith.constant 0 : index
    %1 = vector.load %arg2[%c0_1, %c0_2] : memref<64x32xf32, #tpu.memory_space<vmem>>, vector<64x32xf32>
    %cst = arith.constant dense<0.000000e+00> : vector<128x32xf32>
    %2 = tpu.matmul %0, %1, %cst {dimension_numbers = #tpu.dot_dimension_numbers<[1], [0], [0], [1], [0, 0, 1, 1], [], []>} : vector<128x64xf32>, vector<64x32xf32>, vector<128x32xf32> -> vector<128x32xf32>
    %c0_3 = arith.constant 0 : index
    %c0_4 = arith.constant 0 : index
    %3 = vector.load %arg3[%c0_3, %c0_4] : memref<1x32xf32, #tpu.memory_space<vmem>>, vector<1x32xf32>
    %4 = vector.broadcast %3 : vector<1x32xf32> to vector<128x32xf32>
    %5 = arith.addf %2, %4 : vector<128x32xf32>
    %c0_5 = arith.constant 0 : index
    %c0_6 = arith.constant 0 : index
    %6 = vector.load %arg4[%c0_5, %c0_6] : memref<128x32xf32, #tpu.memory_space<vmem>>, vector<128x32xf32>
    %7 = arith.addf %5, %6 : vector<128x32xf32>
    %c0_7 = arith.constant 0 : index
    %c0_8 = arith.constant 0 : index
    %8 = vector.load %arg5[%c0_7, %c0_8] : memref<128x32xf32, #tpu.memory_space<vmem>>, vector<128x32xf32>
    tpu.vector_store %arg5[%c0_7, %c0_8], %7 {strides = array<i32>} : memref<128x32xf32, #tpu.memory_space<vmem>>, vector<128x32xf32>,
    return
  }
  func.func @transform_0(%arg0: i32) -> (i32, i32) {
    %c0_i32 = arith.constant 0 : i32
    %c0_i32_0 = arith.constant 0 : i32
    return %arg0, %c0_i32 : i32, i32
  }
  func.func @transform_1(%arg0: i32) -> (i32, i32) {
    %c0_i32 = arith.constant 0 : i32
    %c0_i32_0 = arith.constant 0 : i32
    %c0_i32_1 = arith.constant 0 : i32
    return %c0_i32, %c0_i32_0 : i32, i32
  }
  func.func @transform_2(%arg0: i32) -> (i32, i32) {
    %c0_i32 = arith.constant 0 : i32
    %c0_i32_0 = arith.constant 0 : i32
    %c0_i32_1 = arith.constant 0 : i32
    return %c0_i32, %c0_i32_0 : i32, i32
  }
  func.func @transform_3(%arg0: i32) -> (i32, i32) {
    %c0_i32 = arith.constant 0 : i32
    %c0_i32_0 = arith.constant 0 : i32
    return %arg0, %c0_i32 : i32, i32
  }
  func.func @transform_4(%arg0: i32) -> (i32, i32) {
    %c0_i32 = arith.constant 0 : i32
    %c0_i32_0 = arith.constant 0 : i32
    return %arg0, %c0_i32 : i32, i32
  }
}

module attributes {stable_mosaic.version = 11 : i64} {
  func.func @_linear_kernel(%arg0: i32, %arg1: memref<128x288xf32, #tpu.memory_space<vmem>>, %arg2: memref<288x32xf32, #tpu.memory_space<vmem>>, %arg3: memref<1x32xf32, #tpu.memory_space<vmem>>, %arg4: memref<128x32xf32, #tpu.memory_space<vmem>>, %arg5: memref<128x32xf32, #tpu.memory_space<vmem>>) attributes {dimension_semantics = [#tpu.dimension_semantics<parallel>], iteration_bounds = array<i64: 1>, scalar_prefetch = 0 : i64, scratch_operands = 0 : i64, tpu.core_type = #tpu.core_type<tc>, window_params = [{transform_indices = @transform_0, window_bounds = array<i64: 128, 288>}, {pipeline_mode = #tpu.pipeline_mode<synchronous>, transform_indices = @transform_1, window_bounds = array<i64: 288, 32>}, {pipeline_mode = #tpu.pipeline_mode<synchronous>, transform_indices = @transform_2, window_bounds = array<i64: 1, 32>}, {transform_indices = @transform_3, window_bounds = array<i64: 128, 32>}, {transform_indices = @transform_4, window_bounds = array<i64: 128, 32>}]} {
    %c0 = arith.constant 0 : index
    %c0_0 = arith.constant 0 : index
    %0 = vector.load %arg1[%c0, %c0_0] : memref<128x288xf32, #tpu.memory_space<vmem>>, vector<128x288xf32>
    %c0_1 = arith.constant 0 : index
    %c0_2 = arith.constant 0 : index
    %1 = vector.load %arg2[%c0_1, %c0_2] : memref<288x32xf32, #tpu.memory_space<vmem>>, vector<288x32xf32>
    %cst = arith.constant dense<0.000000e+00> : vector<128x32xf32>
    %2 = tpu.matmul %0, %1, %cst {dimension_numbers = #tpu.dot_dimension_numbers<[1], [0], [0], [1], [0, 0, 1, 1], [], []>} : vector<128x288xf32>, vector<288x32xf32>, vector<128x32xf32> -> vector<128x32xf32>
    %c0_3 = arith.constant 0 : index
    %c0_4 = arith.constant 0 : index
    %3 = vector.load %arg3[%c0_3, %c0_4] : memref<1x32xf32, #tpu.memory_space<vmem>>, vector<1x32xf32>
    %4 = vector.broadcast %3 : vector<1x32xf32> to vector<128x32xf32>
    %5 = arith.addf %2, %4 : vector<128x32xf32>
    %c0_5 = arith.constant 0 : index
    %c0_6 = arith.constant 0 : index
    %6 = vector.load %arg4[%c0_5, %c0_6] : memref<128x32xf32, #tpu.memory_space<vmem>>, vector<128x32xf32>
    %7 = arith.addf %5, %6 : vector<128x32xf32>
    %c0_7 = arith.constant 0 : index
    %c0_8 = arith.constant 0 : index
    %8 = vector.load %arg5[%c0_7, %c0_8] : memref<128x32xf32, #tpu.memory_space<vmem>>, vector<128x32xf32>
    tpu.vector_store %arg5[%c0_7, %c0_8], %7 {strides = array<i32>} : memref<128x32xf32, #tpu.memory_space<vmem>>, vector<128x32xf32>,
    return
  }
  func.func @transform_0(%arg0: i32) -> (i32, i32) {
    %c0_i32 = arith.constant 0 : i32
    %c0_i32_0 = arith.constant 0 : i32
    return %arg0, %c0_i32 : i32, i32
  }
  func.func @transform_1(%arg0: i32) -> (i32, i32) {
    %c0_i32 = arith.constant 0 : i32
    %c0_i32_0 = arith.constant 0 : i32
    %c0_i32_1 = arith.constant 0 : i32
    return %c0_i32, %c0_i32_0 : i32, i32
  }
  func.func @transform_2(%arg0: i32) -> (i32, i32) {
    %c0_i32 = arith.constant 0 : i32
    %c0_i32_0 = arith.constant 0 : i32
    %c0_i32_1 = arith.constant 0 : i32
    return %c0_i32, %c0_i32_0 : i32, i32
  }
  func.func @transform_3(%arg0: i32) -> (i32, i32) {
    %c0_i32 = arith.constant 0 : i32
    %c0_i32_0 = arith.constant 0 : i32
    return %arg0, %c0_i32 : i32, i32
  }
  func.func @transform_4(%arg0: i32) -> (i32, i32) {
    %c0_i32 = arith.constant 0 : i32
    %c0_i32_0 = arith.constant 0 : i32
    return %arg0, %c0_i32 : i32, i32
  }
}

module attributes {stable_mosaic.version = 11 : i64} {
  func.func @_layernorm_kernel(%arg0: i32, %arg1: memref<128x32xf32, #tpu.memory_space<vmem>>, %arg2: memref<1x32xf32, #tpu.memory_space<vmem>>, %arg3: memref<1x32xf32, #tpu.memory_space<vmem>>, %arg4: memref<128x32xf32, #tpu.memory_space<vmem>>) attributes {dimension_semantics = [#tpu.dimension_semantics<parallel>], iteration_bounds = array<i64: 1>, scalar_prefetch = 0 : i64, scratch_operands = 0 : i64, tpu.core_type = #tpu.core_type<tc>, window_params = [{transform_indices = @transform_0, window_bounds = array<i64: 128, 32>}, {pipeline_mode = #tpu.pipeline_mode<synchronous>, transform_indices = @transform_1, window_bounds = array<i64: 1, 32>}, {pipeline_mode = #tpu.pipeline_mode<synchronous>, transform_indices = @transform_2, window_bounds = array<i64: 1, 32>}, {transform_indices = @transform_3, window_bounds = array<i64: 128, 32>}]} {
    %c0 = arith.constant 0 : index
    %c0_0 = arith.constant 0 : index
    %0 = vector.load %arg1[%c0, %c0_0] : memref<128x32xf32, #tpu.memory_space<vmem>>, vector<128x32xf32>
    %cst = arith.constant dense<0.000000e+00> : vector<128xf32>
    %1 = vector.multi_reduction <add>, %0, %cst [1] : vector<128x32xf32> to vector<128xf32>
    %2 = vector.shape_cast %1 : vector<128xf32> to vector<128x1xf32>
    %cst_1 = arith.constant 3.200000e+01 : f32
    %3 = vector.broadcast %cst_1 : f32 to vector<128x1xf32>
    %4 = arith.divf %2, %3 : vector<128x1xf32>
    %5 = vector.broadcast %4 : vector<128x1xf32> to vector<128x32xf32>
    %6 = arith.subf %0, %5 : vector<128x32xf32>
    %7 = arith.mulf %6, %6 : vector<128x32xf32>
    %cst_2 = arith.constant dense<0.000000e+00> : vector<128xf32>
    %8 = vector.multi_reduction <add>, %7, %cst_2 [1] : vector<128x32xf32> to vector<128xf32>
    %9 = vector.shape_cast %8 : vector<128xf32> to vector<128x1xf32>
    %cst_3 = arith.constant 3.200000e+01 : f32
    %10 = vector.broadcast %cst_3 : f32 to vector<128x1xf32>
    %11 = arith.divf %9, %10 : vector<128x1xf32>
    %cst_4 = arith.constant 9.99999974E-6 : f32
    %12 = vector.broadcast %cst_4 : f32 to vector<128x1xf32>
    %13 = arith.addf %11, %12 : vector<128x1xf32>
    %14 = math.rsqrt %13 : vector<128x1xf32>
    %15 = vector.broadcast %14 : vector<128x1xf32> to vector<128x32xf32>
    %16 = arith.mulf %6, %15 : vector<128x32xf32>
    %c0_5 = arith.constant 0 : index
    %c0_6 = arith.constant 0 : index
    %17 = vector.load %arg2[%c0_5, %c0_6] : memref<1x32xf32, #tpu.memory_space<vmem>>, vector<1x32xf32>
    %18 = vector.broadcast %17 : vector<1x32xf32> to vector<128x32xf32>
    %19 = arith.mulf %16, %18 : vector<128x32xf32>
    %c0_7 = arith.constant 0 : index
    %c0_8 = arith.constant 0 : index
    %20 = vector.load %arg3[%c0_7, %c0_8] : memref<1x32xf32, #tpu.memory_space<vmem>>, vector<1x32xf32>
    %21 = vector.broadcast %20 : vector<1x32xf32> to vector<128x32xf32>
    %22 = arith.addf %19, %21 : vector<128x32xf32>
    %c0_9 = arith.constant 0 : index
    %c0_10 = arith.constant 0 : index
    %23 = vector.load %arg4[%c0_9, %c0_10] : memref<128x32xf32, #tpu.memory_space<vmem>>, vector<128x32xf32>
    tpu.vector_store %arg4[%c0_9, %c0_10], %22 {strides = array<i32>} : memref<128x32xf32, #tpu.memory_space<vmem>>, vector<128x32xf32>,
    return
  }
  func.func @transform_0(%arg0: i32) -> (i32, i32) {
    %c0_i32 = arith.constant 0 : i32
    %c0_i32_0 = arith.constant 0 : i32
    return %arg0, %c0_i32 : i32, i32
  }
  func.func @transform_1(%arg0: i32) -> (i32, i32) {
    %c0_i32 = arith.constant 0 : i32
    %c0_i32_0 = arith.constant 0 : i32
    %c0_i32_1 = arith.constant 0 : i32
    return %c0_i32, %c0_i32_0 : i32, i32
  }
  func.func @transform_2(%arg0: i32) -> (i32, i32) {
    %c0_i32 = arith.constant 0 : i32
    %c0_i32_0 = arith.constant 0 : i32
    %c0_i32_1 = arith.constant 0 : i32
    return %c0_i32, %c0_i32_0 : i32, i32
  }
  func.func @transform_3(%arg0: i32) -> (i32, i32) {
    %c0_i32 = arith.constant 0 : i32
    %c0_i32_0 = arith.constant 0 : i32
    return %arg0, %c0_i32 : i32, i32
  }
}

module attributes {stable_mosaic.version = 11 : i64} {
  func.func @_linear_kernel(%arg0: i32, %arg1: memref<128x288xf32, #tpu.memory_space<vmem>>, %arg2: memref<288x3xf32, #tpu.memory_space<vmem>>, %arg3: memref<1x3xf32, #tpu.memory_space<vmem>>, %arg4: memref<128x3xf32, #tpu.memory_space<vmem>>, %arg5: memref<128x3xf32, #tpu.memory_space<vmem>>) attributes {dimension_semantics = [#tpu.dimension_semantics<parallel>], iteration_bounds = array<i64: 1>, scalar_prefetch = 0 : i64, scratch_operands = 0 : i64, tpu.core_type = #tpu.core_type<tc>, window_params = [{transform_indices = @transform_0, window_bounds = array<i64: 128, 288>}, {pipeline_mode = #tpu.pipeline_mode<synchronous>, transform_indices = @transform_1, window_bounds = array<i64: 288, 3>}, {pipeline_mode = #tpu.pipeline_mode<synchronous>, transform_indices = @transform_2, window_bounds = array<i64: 1, 3>}, {transform_indices = @transform_3, window_bounds = array<i64: 128, 3>}, {transform_indices = @transform_4, window_bounds = array<i64: 128, 3>}]} {
    %c0 = arith.constant 0 : index
    %c0_0 = arith.constant 0 : index
    %0 = vector.load %arg1[%c0, %c0_0] : memref<128x288xf32, #tpu.memory_space<vmem>>, vector<128x288xf32>
    %c0_1 = arith.constant 0 : index
    %c0_2 = arith.constant 0 : index
    %1 = vector.load %arg2[%c0_1, %c0_2] : memref<288x3xf32, #tpu.memory_space<vmem>>, vector<288x3xf32>
    %cst = arith.constant dense<0.000000e+00> : vector<128x3xf32>
    %2 = tpu.matmul %0, %1, %cst {dimension_numbers = #tpu.dot_dimension_numbers<[1], [0], [0], [1], [0, 0, 1, 1], [], []>} : vector<128x288xf32>, vector<288x3xf32>, vector<128x3xf32> -> vector<128x3xf32>
    %c0_3 = arith.constant 0 : index
    %c0_4 = arith.constant 0 : index
    %3 = vector.load %arg3[%c0_3, %c0_4] : memref<1x3xf32, #tpu.memory_space<vmem>>, vector<1x3xf32>
    %4 = vector.broadcast %3 : vector<1x3xf32> to vector<128x3xf32>
    %5 = arith.addf %2, %4 : vector<128x3xf32>
    %c0_5 = arith.constant 0 : index
    %c0_6 = arith.constant 0 : index
    %6 = vector.load %arg4[%c0_5, %c0_6] : memref<128x3xf32, #tpu.memory_space<vmem>>, vector<128x3xf32>
    %7 = arith.addf %5, %6 : vector<128x3xf32>
    %c0_7 = arith.constant 0 : index
    %c0_8 = arith.constant 0 : index
    %8 = vector.load %arg5[%c0_7, %c0_8] : memref<128x3xf32, #tpu.memory_space<vmem>>, vector<128x3xf32>
    tpu.vector_store %arg5[%c0_7, %c0_8], %7 {strides = array<i32>} : memref<128x3xf32, #tpu.memory_space<vmem>>, vector<128x3xf32>,
    return
  }
  func.func @transform_0(%arg0: i32) -> (i32, i32) {
    %c0_i32 = arith.constant 0 : i32
    %c0_i32_0 = arith.constant 0 : i32
    return %arg0, %c0_i32 : i32, i32
  }
  func.func @transform_1(%arg0: i32) -> (i32, i32) {
    %c0_i32 = arith.constant 0 : i32
    %c0_i32_0 = arith.constant 0 : i32
    %c0_i32_1 = arith.constant 0 : i32
    return %c0_i32, %c0_i32_0 : i32, i32
  }
  func.func @transform_2(%arg0: i32) -> (i32, i32) {
    %c0_i32 = arith.constant 0 : i32
    %c0_i32_0 = arith.constant 0 : i32
    %c0_i32_1 = arith.constant 0 : i32
    return %c0_i32, %c0_i32_0 : i32, i32
  }
  func.func @transform_3(%arg0: i32) -> (i32, i32) {
    %c0_i32 = arith.constant 0 : i32
    %c0_i32_0 = arith.constant 0 : i32
    return %arg0, %c0_i32 : i32, i32
  }
  func.func @transform_4(%arg0: i32) -> (i32, i32) {
    %c0_i32 = arith.constant 0 : i32
    %c0_i32_0 = arith.constant 0 : i32
    return %arg0, %c0_i32 : i32, i32
  }
}

</mosaic_0001>

<bundles_post_ra>
// kernel: _lambda_.11
= control target key start
LH: loop header
LB: loop body
LE: loop exit
PB: predicated region body
PF: predicated region fallthrough
CT: control target
= control target key end

     0   :  { %8 = vsyncpa [#allocation3], 0  ;;  %s249_s15 = smov [#allocation2]   ;;  %s413_s0 = inlined_call_operand.vmem [shape: f32[128,27], index: 0, kind: input, shape index: {}]   ;;  %s414_s1 = inlined_call_operand.vmem [shape: f32[27,32], index: 1, kind: input, shape index: {}]   ;;  %s415_s2 = inlined_call_operand.hbm [shape: f32[1,32], index: 2, kind: input, shape index: {}]   ;;  %s416_s3 = inlined_call_operand.vmem [shape: f32[128,32], index: 3, kind: output, shape index: {}]  }
   0x1   :  { %s18_s14 = sshll.u32 %s415_s2, 4  ;;  %s20_s16 = sshll.u32 %s249_s15, 4  ;;  %s19_s14 = int_to_ptr.hbm [resolvable:$true] %s18_s14  ;;  %s21_s16 = int_to_ptr.vmem [resolvable:$true] %s20_s16 }
   0x2   :  { %23 = dma.hbm_to_vmem [thread:$0]  %s19_s14, 16, %s21_s16, [#allocation3]  }
   0x3   :  { %247 = dma.done.wait [#allocation3], 16  }
   0x4   :  { %248 = vsyncadd [#allocation3], 4294967280  ;;  %vm101_vm0 = vcmask 1042432   ;;  %v47_v0 = vld [vmem:[%s414_s1 + $0x18] sm:$0x7]  ;;  %v46_v1 = vld [vmem:[%s414_s1 + $0x10] sm:$0xff] }
   0x5   :  { %210 = vmatpush.msk.msra.mxu2 %vm101_vm0, %v47_v0  ;;  %211 = vmatpush.msk.msra.mxu3 %vm101_vm0, %v47_v0  ;;  %v45_v2 = vld [vmem:[%s414_s1 + $0x8] sm:$0xff]  ;;  %v44_v3 = vld [vmem:[%s414_s1] sm:$0xff]  ;;  %vm52_vm1 = vcmask 220160   ;;  %v38_v12 = vld [vmem:[%s413_s0 + $0x50] sm:$0xff]  ;;  %vm170_vm2 = vcmask 261120  }
   0x6   :  { %192 = vmatpush.msk.msra.mxu0 %vm101_vm0, %v47_v0  ;;  %209 = vmatpush.msk.msra.mxu1 %vm101_vm0, %v47_v0  ;;  %v36_v4 = vld [vmem:[%s413_s0 + $0x40] sm:$0xff]  ;;  %v37_v8 = vld [vmem:[%s413_s0 + $0x48] sm:$0xff]  ;;  %v42_v13 = vld [vmem:[%s413_s0 + $0x70] sm:$0xff] }
   0x7   :  { %213 = vmatpush.msra.mxu2 %v46_v1  ;;  %214 = vmatpush.msra.mxu3 %v46_v1  ;;  %v40_v5 = vld [vmem:[%s413_s0 + $0x60] sm:$0xff]  ;;  %v41_v9 = vld [vmem:[%s413_s0 + $0x68] sm:$0xff]  ;;  %v30_v14 = vld [vmem:[%s413_s0 + $0x10] sm:$0xff] }
   0x8   :  { %118 = vmatpush.msra.mxu0 %v46_v1  ;;  %212 = vmatpush.msra.mxu1 %v46_v1  ;;  %v28_v6 = vld [vmem:[%s413_s0] sm:$0xff]  ;;  %v29_v10 = vld [vmem:[%s413_s0 + $0x8] sm:$0xff]  ;;  %v34_v15 = vld [vmem:[%s413_s0 + $0x30] sm:$0xff] }
   0x9   :  { %216 = vmatpush.msra.mxu2 %v45_v2  ;;  %217 = vmatpush.msra.mxu3 %v45_v2  ;;  %v32_v7 = vld [vmem:[%s413_s0 + $0x20] sm:$0xff]  ;;  %v33_v11 = vld [vmem:[%s413_s0 + $0x28] sm:$0xff]  ;;  %v39_v16 = vld [vmem:[%s413_s0 + $0x58] sm:$0xff] }
   0xa   :  { %119 = vmatpush.msra.mxu0 %v45_v2  ;;  %215 = vmatpush.msra.mxu1 %v45_v2  ;;  %v43_v17 = vld [vmem:[%s413_s0 + $0x78] sm:$0xff]  ;;  %v222_v20 = vld [vmem:[#allocation2] ss:$0 sm:$0xff] }
   0xb   :  { %219 = vmatpush.msra.mxu2 %v44_v3  ;;  %220 = vmatpush.msra.mxu3 %v44_v3  ;;  %v31_v18 = vld [vmem:[%s413_s0 + $0x18] sm:$0xff] }
   0xc   :  { %201 = vmatmul.msk.f32.vlgmr.msra.gmra.mxu2 %vm52_vm1, %v36_v4  ;;  %205 = vmatmul.msk.f32.vlgmr.msra.gmra.mxu3 %vm52_vm1, %v40_v5  ;;  %v35_v19 = vld [vmem:[%s413_s0 + $0x38] sm:$0xff] }
   0xd   :  { %120 = vmatpush.msra.mxu0 %v44_v3  ;;  %218 = vmatpush.msra.mxu1 %v44_v3 }
   0xe   :  { %193 = vmatmul.msk.f32.vlgmr.msra.gmra.mxu0 %vm52_vm1, %v28_v6  ;;  %197 = vmatmul.msk.f32.vlgmr.msra.gmra.mxu1 %vm52_vm1, %v32_v7 }
  0x14   :  { %202 = vmatmul.msk.f32.gmra.mxu2 %vm52_vm1, %v37_v8  ;;  %206 = vmatmul.msk.f32.gmra.mxu3 %vm52_vm1, %v41_v9 }
  0x16   :  { %194 = vmatmul.msk.f32.gmra.mxu0 %vm52_vm1, %v29_v10  ;;  %198 = vmatmul.msk.f32.gmra.mxu1 %vm52_vm1, %v33_v11 }
  0x1c   :  { %203 = vmatmul.msk.f32.gmra.mxu2 %vm52_vm1, %v38_v12  ;;  %207 = vmatmul.msk.f32.gmra.mxu3 %vm52_vm1, %v42_v13 }
  0x1e   :  { %195 = vmatmul.msk.f32.gmra.mxu0 %vm52_vm1, %v30_v14  ;;  %199 = vmatmul.msk.f32.gmra.mxu1 %vm52_vm1, %v34_v15 }
  0x24   :  { %204 = vmatmul.msk.f32.gmra.mxu2 %vm52_vm1, %v39_v16  ;;  %208 = vmatmul.msk.f32.gmra.mxu3 %vm52_vm1, %v43_v17 }
  0x26   :  { %196 = vmatmul.msk.f32.gmra.mxu0 %vm52_vm1, %v31_v18  ;;  %200 = vmatmul.msk.f32.gmra.mxu1 %vm52_vm1, %v35_v19 }
  0x8b   :  { %v122_v21 = vpop.f32.mrf.mxu0  ;;  %v134_v22 = vpop.f32.mrf.mxu1 }
  0x8c   :  { %v123_v23 = vadd.f32 %v222_v20, %v122_v21  ;;  %v135_v24 = vadd.f32 %v222_v20, %v134_v22 }
  0x8e   :  { %171 = vst.msk [vmem:[%s416_s3] sm:$0xff] %vm170_vm2, %v123_v23 }
  0x8f   :  { %175 = vst.msk [vmem:[%s416_s3 + $0x20] sm:$0xff] %vm170_vm2, %v135_v24  ;;  %v146_v25 = vpop.f32.mrf.mxu2  ;;  %v158_v26 = vpop.f32.mrf.mxu3 }
  0x90   :  { %v147_v27 = vadd.f32 %v222_v20, %v146_v25  ;;  %v159_v28 = vadd.f32 %v222_v20, %v158_v26 }
  0x92   :  { %179 = vst.msk [vmem:[%s416_s3 + $0x40] sm:$0xff] %vm170_vm2, %v147_v27 }
  0x93   :  { %183 = vst.msk [vmem:[%s416_s3 + $0x60] sm:$0xff] %vm170_vm2, %v159_v28  ;;  %v125_v29 = vpop.f32.mrf.mxu0  ;;  %v137_v30 = vpop.f32.mrf.mxu1 }
  0x94   :  { %v126_v31 = vadd.f32 %v222_v20, %v125_v29  ;;  %v138_v32 = vadd.f32 %v222_v20, %v137_v30 }
  0x96   :  { %172 = vst.msk [vmem:[%s416_s3 + $0x8] sm:$0xff] %vm170_vm2, %v126_v31 }
  0x97   :  { %176 = vst.msk [vmem:[%s416_s3 + $0x28] sm:$0xff] %vm170_vm2, %v138_v32  ;;  %v149_v33 = vpop.f32.mrf.mxu2  ;;  %v161_v34 = vpop.f32.mrf.mxu3 }
  0x98   :  { %v150_v35 = vadd.f32 %v222_v20, %v149_v33  ;;  %v162_v36 = vadd.f32 %v222_v20, %v161_v34 }
  0x9a   :  { %180 = vst.msk [vmem:[%s416_s3 + $0x48] sm:$0xff] %vm170_vm2, %v150_v35 }
  0x9b   :  { %184 = vst.msk [vmem:[%s416_s3 + $0x68] sm:$0xff] %vm170_vm2, %v162_v36  ;;  %v128_v37 = vpop.f32.mrf.mxu0  ;;  %v140_v38 = vpop.f32.mrf.mxu1 }
  0x9c   :  { %v129_v39 = vadd.f32 %v222_v20, %v128_v37  ;;  %v141_v40 = vadd.f32 %v222_v20, %v140_v38 }
  0x9e   :  { %173 = vst.msk [vmem:[%s416_s3 + $0x10] sm:$0xff] %vm170_vm2, %v129_v39 }
  0x9f   :  { %177 = vst.msk [vmem:[%s416_s3 + $0x30] sm:$0xff] %vm170_vm2, %v141_v40  ;;  %v152_v41 = vpop.f32.mrf.mxu2  ;;  %v164_v42 = vpop.f32.mrf.mxu3 }
  0xa0   :  { %v153_v43 = vadd.f32 %v222_v20, %v152_v41  ;;  %v165_v44 = vadd.f32 %v222_v20, %v164_v42 }
  0xa2   :  { %181 = vst.msk [vmem:[%s416_s3 + $0x50] sm:$0xff] %vm170_vm2, %v153_v43 }
  0xa3   :  { %185 = vst.msk [vmem:[%s416_s3 + $0x70] sm:$0xff] %vm170_vm2, %v165_v44  ;;  %v131_v45 = vpop.f32.mrf.mxu0  ;;  %v143_v46 = vpop.f32.mrf.mxu1 }
  0xa4   :  { %v132_v47 = vadd.f32 %v222_v20, %v131_v45  ;;  %v144_v48 = vadd.f32 %v222_v20, %v143_v46 }
  0xa6   :  { %174 = vst.msk [vmem:[%s416_s3 + $0x18] sm:$0xff] %vm170_vm2, %v132_v47 }
  0xa7   :  { %178 = vst.msk [vmem:[%s416_s3 + $0x38] sm:$0xff] %vm170_vm2, %v144_v48  ;;  %v155_v49 = vpop.f32.mrf.mxu2  ;;  %v167_v50 = vpop.f32.mrf.mxu3 }
  0xa8   :  { %v156_v51 = vadd.f32 %v222_v20, %v155_v49  ;;  %v168_v52 = vadd.f32 %v222_v20, %v167_v50 }
  0xaa   :  { %182 = vst.msk [vmem:[%s416_s3 + $0x58] sm:$0xff] %vm170_vm2, %v156_v51 }
  0xab   :  { %186 = vst.msk [vmem:[%s416_s3 + $0x78] sm:$0xff] %vm170_vm2, %v168_v52 }
  0xac   :  { %191 = vsyncpa [#allocation3], 1 }

// kernel: _lambda_.13
= control target key start
LH: loop header
LB: loop body
LE: loop exit
PB: predicated region body
PF: predicated region fallthrough
CT: control target
= control target key end

     0   :  { %10 = vsyncpa [#allocation3], 0  ;;  %s1540_s0 = inlined_call_operand.vmem [shape: f32[128,32], index: 0, kind: input, shape index: {}]   ;;  %s1541_s1 = inlined_call_operand.hbm [shape: f32[1,32], index: 1, kind: input, shape index: {}]   ;;  %s1542_s2 = inlined_call_operand.hbm [shape: f32[1,32], index: 2, kind: input, shape index: {}]   ;;  %s1543_s3 = inlined_call_operand.hbm [shape: f32[32,96], index: 3, kind: input, shape index: {}]   ;;  %s1544_s4 = inlined_call_operand.hbm [shape: f32[1,96], index: 4, kind: input, shape index: {}]   ;;  %s1545_s5 = inlined_call_operand.vmem [shape: f32[128,96], index: 5, kind: output, shape index: {}]  }
   0x1   :  { %11 = vsyncpa [#allocation5], 0  ;;  %s31_s20 = sshll.u32 %s1542_s2, 4  ;;  %s32_s20 = int_to_ptr.hbm [resolvable:$true] %s31_s20 }
   0x2   :  { %12 = vsyncpa [#allocation8], 0  ;;  %s812_s21 = smov [#allocation4]   ;;  %s20_s25 = sshll.u32 %s1541_s1, 4  ;;  %s21_s25 = int_to_ptr.hbm [resolvable:$true] %s20_s25 }
   0x3   :  { %s33_s22 = sshll.u32 %s812_s21, 4  ;;  %s813_s26 = smov [#allocation2]   ;;  %s34_s22 = int_to_ptr.vmem [resolvable:$true] %s33_s22 }
   0x4   :  { %36 = dma.hbm_to_vmem [thread:$0]  %s32_s20, 16, %s34_s22, [#allocation5]  }
   0x5   :  { %s22_s27 = sshll.u32 %s813_s26, 4  ;;  %s41_s30 = sshll.u32 %s1543_s3, 4  ;;  %s23_s27 = int_to_ptr.vmem [resolvable:$true] %s22_s27  ;;  %s42_s30 = int_to_ptr.hbm [resolvable:$true] %s41_s30 }
   0x6   :  { %25 = dma.hbm_to_vmem [thread:$0]  %s21_s25, 16, %s23_s27, [#allocation3]  }
   0x7   :  { %s814_s2 = smov [#allocation6]   ;;  %s55_s9 = sshll.u32 %s1544_s4, 4  ;;  %s56_s9 = int_to_ptr.hbm [resolvable:$true] %s55_s9 }
   0x8   :  { %s43_s6 = sshll.u32 %s814_s2, 4  ;;  %s815_s10 = smov 128   ;;  %s44_s6 = int_to_ptr.vmem [resolvable:$true] %s43_s6 }
   0x9   :  { %s816_s1 = smov 8   ;;  %s817_s11 = smov [#allocation7]  }
   0xa   :  { %49 = dma.hbm_to_vmem [thread:$0]  %s42_s30, 512, %s44_s6, [#allocation5], %s815_s10, %s815_s10, %s816_s1  }
   0xb   :  { %s57_s12 = sshll.u32 %s817_s11, 4  ;;  %s58_s12 = int_to_ptr.vmem [resolvable:$true] %s57_s12 }
   0xc   :  { %60 = dma.hbm_to_vmem [thread:$0]  %s56_s9, 16, %s58_s12, [#allocation8]  }
   0xd   :  { %806 = dma.done.wait [#allocation3], 16  }
   0xe   :  { %807 = vsyncadd [#allocation3], 4294967280 }
   0xf   :  { %808 = dma.done.wait [#allocation5], 528  }
  0x10   :  { %809 = vsyncadd [#allocation5], 4294966768 }
  0x11   :  { %810 = dma.done.wait [#allocation8], 16  }
  0x12   :  { %811 = vsyncadd [#allocation8], 4294967280  ;;  %vm93_vm0 = vcmask 261120   ;;  %v864_v0 = vld [vmem:[%s1540_s0 + $0x48] sm:$0xff]  ;;  %v85_v1 = vld [vmem:[%s1540_s0 + $0x40] sm:$0xff]  ;;  %v818_v32 = vmov 32.0  }
  0x13   :  { %v77_v2 = vld [vmem:[%s1540_s0] sm:$0xff]  ;;  %v121_v3 = vsel %vm93_vm0, %v864_v0, 0.0  ;;  %v118_v4 = vsel %vm93_vm0, %v85_v1, 0.0  ;;  %v879_v6 = vld [vmem:[%s1540_s0 + $0x68] sm:$0xff]  ;;  %v900_v12 = vld [vmem:[%s1540_s0 + $0x50] sm:$0xff]  ;;  %676 = vrcp.f32 %v818_v32 }
  0x14   :  { %v94_v5 = vsel %vm93_vm0, %v77_v2, 0.0  ;;  %122 = vadd.xlane.f32.xlu2 %v121_v3  ;;  %119 = vadd.xlane.f32.xlu0 %v118_v4  ;;  %v884_v7 = vld [vmem:[%s1540_s0 + $0x60] sm:$0xff]  ;;  %v133_v9 = vsel %vm93_vm0, %v879_v6, 0.0  ;;  %v905_v13 = vld [vmem:[%s1540_s0 + $0x8] sm:$0xff]  ;;  %v124_v15 = vsel %vm93_vm0, %v900_v12, 0.0  ;;  %v921_v18 = vld [vmem:[%s1540_s0 + $0x30] sm:$0xff] }
  0x15   :  { %95 = vadd.xlane.f32.xlu1 %v94_v5  ;;  %v889_v8 = vld [vmem:[%s1540_s0 + $0x20] sm:$0xff]  ;;  %v130_v10 = vsel %vm93_vm0, %v884_v7, 0.0  ;;  %v910_v14 = vld [vmem:[%s1540_s0 + $0x28] sm:$0xff]  ;;  %v97_v16 = vsel %vm93_vm0, %v905_v13, 0.0  ;;  %v926_v19 = vld [vmem:[%s1540_s0 + $0x70] sm:$0xff]  ;;  %v112_v21 = vsel %vm93_vm0, %v921_v18, 0.0 }
  0x16   :  { %v106_v11 = vsel %vm93_vm0, %v889_v8, 0.0  ;;  %v109_v17 = vsel %vm93_vm0, %v910_v14, 0.0  ;;  %v931_v20 = vld [vmem:[%s1540_s0 + $0x10] sm:$0xff]  ;;  %v136_v22 = vsel %vm93_vm0, %v926_v19, 0.0  ;;  %v942_v24 = vld [vmem:[%s1540_s0 + $0x18] sm:$0xff] }
  0x17   :  { %v100_v23 = vsel %vm93_vm0, %v931_v20, 0.0  ;;  %v947_v25 = vld [vmem:[%s1540_s0 + $0x58] sm:$0xff]  ;;  %v103_v27 = vsel %vm93_vm0, %v942_v24, 0.0 }
  0x18   :  { %v952_v26 = vld [vmem:[%s1540_s0 + $0x78] sm:$0xff]  ;;  %v127_v28 = vsel %vm93_vm0, %v947_v25, 0.0 }
  0x19   :  { %v139_v29 = vsel %vm93_vm0, %v952_v26, 0.0  ;;  %v963_v30 = vld [vmem:[%s1540_s0 + $0x38] sm:$0xff]  ;;  %v677_v33 = vpop.eup %676 }
  0x1a   :  { %v115_v31 = vsel %vm93_vm0, %v963_v30, 0.0  ;;  %v143_v34 = vmul.f32 32.0, %v677_v33  ;;  %vm147_vm1 = vweird.f32 %v677_v33 }
  0x1c   :  { %134 = vadd.xlane.f32.xlu2 %v133_v9  ;;  %131 = vadd.xlane.f32.xlu0 %v130_v10  ;;  %v144_v35 = vsub.f32 1.0, %v143_v34 }
  0x1d   :  { %107 = vadd.xlane.f32.xlu1 %v106_v11 }
  0x1e   :  { %v145_v36 = vmul.f32 %v677_v33, %v144_v35 }
  0x20   :  { %v146_v37 = vadd.f32 %v677_v33, %v145_v36 }
  0x22   :  { %v967_v38 = vsel %vm147_vm1, %v677_v33, %v146_v37 }
  0x24   :  { %125 = vadd.xlane.f32.xlu2 %v124_v15  ;;  %98 = vadd.xlane.f32.xlu0 %v97_v16 }
  0x25   :  { %110 = vadd.xlane.f32.xlu1 %v109_v17 }
  0x2c   :  { %113 = vadd.xlane.f32.xlu2 %v112_v21  ;;  %137 = vadd.xlane.f32.xlu0 %v136_v22 }
  0x2d   :  { %101 = vadd.xlane.f32.xlu1 %v100_v23 }
  0x34   :  { %104 = vadd.xlane.f32.xlu2 %v103_v27  ;;  %128 = vadd.xlane.f32.xlu0 %v127_v28 }
  0x35   :  { %140 = vadd.xlane.f32.xlu1 %v139_v29 }
  0x3c   :  { %116 = vadd.xlane.f32.xlu0 %v115_v31 }
  0x87   :  { %v123_v39 = vpop.xlane.xlu2 %122  ;;  %v120_v40 = vpop.xlane.xlu0 %119 }
  0x88   :  { %v157_v41 = vmul.f32 %v967_v38, %v120_v40  ;;  %v96_v42 = vpop.xlane.xlu1 %95  ;;  %v158_v56 = vmul.f32 %v967_v38, %v123_v39 }
  0x89   :  { %v149_v43 = vmul.f32 %v967_v38, %v96_v42 }
  0x8a   :  { %v971_v44 = vsub.f32 %v85_v1, %v157_v41  ;;  %v1001_v63 = vsub.f32 %v864_v0, %v158_v56 }
  0x8b   :  { %v973_v45 = vsub.f32 %v77_v2, %v149_v43 }
  0x8c   :  { %v189_v46 = vmul.f32 %v971_v44, %v971_v44  ;;  %v190_v11 = vmul.f32 %v1001_v63, %v1001_v63 }
  0x8d   :  { %v181_v47 = vmul.f32 %v973_v45, %v973_v45 }
  0x8e   :  { %v221_v48 = vsel %vm93_vm0, %v189_v46, 0.0  ;;  %v224_v21 = vsel %vm93_vm0, %v190_v11, 0.0 }
  0x8f   :  { %v135_v49 = vpop.xlane.xlu2 %134  ;;  %v132_v50 = vpop.xlane.xlu0 %131  ;;  %222 = vadd.xlane.f32.xlu1 %v221_v48  ;;  %v197_v51 = vsel %vm93_vm0, %v181_v47, 0.0 }
  0x90   :  { %v162_v52 = vmul.f32 %v967_v38, %v135_v49  ;;  %v161_v53 = vmul.f32 %v967_v38, %v132_v50  ;;  %198 = vadd.xlane.f32.xlu0 %v197_v51  ;;  %v108_v54 = vpop.xlane.xlu1 %107 }
  0x91   :  { %v153_v55 = vmul.f32 %v967_v38, %v108_v54 }
  0x92   :  { %v986_v57 = vsub.f32 %v879_v6, %v162_v52  ;;  %v989_v58 = vsub.f32 %v884_v7, %v161_v53 }
  0x93   :  { %v992_v59 = vsub.f32 %v889_v8, %v153_v55 }
  0x94   :  { %v193_v60 = vmul.f32 %v989_v58, %v989_v58  ;;  %v194_v61 = vmul.f32 %v986_v57, %v986_v57 }
  0x95   :  { %v185_v62 = vmul.f32 %v992_v59, %v992_v59 }
  0x96   :  { %v233_v1 = vsel %vm93_vm0, %v193_v60, 0.0  ;;  %v236_v2 = vsel %vm93_vm0, %v194_v61, 0.0 }
  0x97   :  { %v126_v3 = vpop.xlane.xlu2 %125  ;;  %234 = vadd.xlane.f32.xlu2 %v233_v1  ;;  %v99_v4 = vpop.xlane.xlu0 %98  ;;  %v209_v5 = vsel %vm93_vm0, %v185_v62, 0.0  ;;  %v496_v62 = vld [vmem:[#allocation6 + $0x18] sm:$0xff]  ;;  %v495_v1 = vld [vmem:[#allocation6 + $0x10] sm:$0xff] }
  0x98   :  { %v159_v6 = vmul.f32 %v967_v38, %v126_v3  ;;  %v150_v7 = vmul.f32 %v967_v38, %v99_v4  ;;  %237 = vadd.xlane.f32.xlu0 %v236_v2  ;;  %210 = vadd.xlane.f32.xlu1 %v209_v5  ;;  %v111_v8 = vpop.xlane.xlu1 %110  ;;  %v494_v2 = vld [vmem:[#allocation6 + $0x8] sm:$0xff]  ;;  %v493_v3 = vld [vmem:[#allocation6] sm:$0xff] }
  0x99   :  { %v154_v9 = vmul.f32 %v967_v38, %v111_v8  ;;  %561 = vmatpush.msra.mxu0 %v496_v62  ;;  %655 = vmatpush.msra.mxu2 %v496_v62 }
  0x9a   :  { %v1010_v0 = vsub.f32 %v900_v12, %v159_v6  ;;  %v1013_v10 = vsub.f32 %v905_v13, %v150_v7  ;;  %654 = vmatpush.msra.mxu1 %v496_v62  ;;  %656 = vmatpush.msra.mxu3 %v496_v62 }
  0x9b   :  { %v1022_v17 = vsub.f32 %v910_v14, %v154_v9  ;;  %562 = vmatpush.msra.mxu0 %v495_v1  ;;  %658 = vmatpush.msra.mxu2 %v495_v1 }
  0x9c   :  { %v191_v15 = vmul.f32 %v1010_v0, %v1010_v0  ;;  %v182_v16 = vmul.f32 %v1013_v10, %v1013_v10  ;;  %657 = vmatpush.msra.mxu1 %v495_v1  ;;  %659 = vmatpush.msra.mxu3 %v495_v1 }
  0x9d   :  { %v186_v29 = vmul.f32 %v1022_v17, %v1022_v17  ;;  %563 = vmatpush.msra.mxu0 %v494_v2  ;;  %661 = vmatpush.msra.mxu2 %v494_v2 }
  0x9e   :  { %v227_v12 = vsel %vm93_vm0, %v191_v15, 0.0  ;;  %v200_v22 = vsel %vm93_vm0, %v182_v16, 0.0  ;;  %660 = vmatpush.msra.mxu1 %v494_v2  ;;  %662 = vmatpush.msra.mxu3 %v494_v2 }
  0x9f   :  { %v114_v13 = vpop.xlane.xlu2 %113  ;;  %225 = vadd.xlane.f32.xlu2 %v224_v21  ;;  %v138_v23 = vpop.xlane.xlu0 %137  ;;  %v212_v36 = vsel %vm93_vm0, %v186_v29, 0.0  ;;  %564 = vmatpush.msra.mxu0 %v493_v3 }
  0xa0   :  { %v155_v27 = vmul.f32 %v967_v38, %v114_v13  ;;  %v163_v28 = vmul.f32 %v967_v38, %v138_v23  ;;  %228 = vadd.xlane.f32.xlu0 %v227_v12  ;;  %201 = vadd.xlane.f32.xlu1 %v200_v22  ;;  %v102_v14 = vpop.xlane.xlu1 %101 }
  0xa1   :  { %v151_v31 = vmul.f32 %v967_v38, %v102_v14  ;;  %664 = vmatpush.msra.mxu2 %v493_v3  ;;  %663 = vmatpush.msra.mxu1 %v493_v3 }
  0xa2   :  { %v1033_v32 = vsub.f32 %v921_v18, %v155_v27  ;;  %v1036_v33 = vsub.f32 %v926_v19, %v163_v28  ;;  %665 = vmatpush.msra.mxu3 %v493_v3 }
  0xa3   :  { %v1044_v37 = vsub.f32 %v931_v20, %v151_v31 }
  0xa4   :  { %v187_v34 = vmul.f32 %v1033_v32, %v1033_v32  ;;  %v195_v35 = vmul.f32 %v1036_v33, %v1036_v33 }
  0xa5   :  { %v183_v43 = vmul.f32 %v1044_v37, %v1044_v37 }
  0xa6   :  { %v215_v39 = vsel %vm93_vm0, %v187_v34, 0.0  ;;  %v239_v40 = vsel %vm93_vm0, %v195_v35, 0.0 }
  0xa7   :  { %v105_v18 = vpop.xlane.xlu2 %104  ;;  %v129_v41 = vpop.xlane.xlu0 %128  ;;  %213 = vadd.xlane.f32.xlu2 %v212_v36  ;;  %v203_v51 = vsel %vm93_vm0, %v183_v43, 0.0 }
  0xa8   :  { %v152_v19 = vmul.f32 %v967_v38, %v105_v18  ;;  %v160_v42 = vmul.f32 %v967_v38, %v129_v41  ;;  %216 = vadd.xlane.f32.xlu0 %v215_v39  ;;  %240 = vadd.xlane.f32.xlu1 %v239_v40  ;;  %v141_v46 = vpop.xlane.xlu1 %140 }
  0xa9   :  { %v164_v20 = vmul.f32 %v967_v38, %v141_v46 }
  0xaa   :  { %v1054_v47 = vsub.f32 %v942_v24, %v152_v19  ;;  %v1057_v48 = vsub.f32 %v947_v25, %v160_v42 }
  0xab   :  { %v1065_v52 = vsub.f32 %v952_v26, %v164_v20 }
  0xac   :  { %v184_v49 = vmul.f32 %v1054_v47, %v1054_v47  ;;  %v192_v50 = vmul.f32 %v1057_v48, %v1057_v48 }
  0xad   :  { %v196_v55 = vmul.f32 %v1065_v52, %v1065_v52 }
  0xae   :  { %v206_v53 = vsel %vm93_vm0, %v184_v49, 0.0  ;;  %v230_v54 = vsel %vm93_vm0, %v192_v50, 0.0 }
  0xaf   :  { %v117_v24 = vpop.xlane.xlu0 %116  ;;  %204 = vadd.xlane.f32.xlu2 %v203_v51  ;;  %v242_v60 = vsel %vm93_vm0, %v196_v55, 0.0 }
  0xb0   :  { %v156_v25 = vmul.f32 %v967_v38, %v117_v24  ;;  %207 = vadd.xlane.f32.xlu0 %v206_v53  ;;  %231 = vadd.xlane.f32.xlu1 %v230_v54 }
  0xb2   :  { %v1073_v56 = vsub.f32 %v963_v30, %v156_v25 }
  0xb4   :  { %v188_v26 = vmul.f32 %v1073_v56, %v1073_v56 }
  0xb6   :  { %v218_v61 = vsel %vm93_vm0, %v188_v26, 0.0 }
  0xb7   :  { %243 = vadd.xlane.f32.xlu2 %v242_v60 }
  0xb8   :  { %219 = vadd.xlane.f32.xlu1 %v218_v61 }
 0x102   :  { %v223_v30 = vpop.xlane.xlu1 %222 }
 0x103   :  { %v199_v4 = vpop.xlane.xlu0 %198  ;;  %v253_v5 = vmul.f32 %v223_v30, %v967_v38 }
 0x104   :  { %v245_v6 = vmul.f32 %v199_v4, %v967_v38 }
 0x105   :  { %v269_v7 = vadd.f32 1e-05, %v253_v5 }
 0x106   :  { %v261_v8 = vadd.f32 1e-05, %v245_v6 }
 0x107   :  { %678 = vrsqrt.f32 %v269_v7  ;;  %vm363_vm6 = vweird.f32 %v269_v7 }
 0x108   :  { %680 = vrsqrt.f32 %v261_v8  ;;  %vm283_vm2 = vweird.f32 %v261_v8 }
 0x10a   :  { %v235_v9 = vpop.xlane.xlu2 %234 }
 0x10b   :  { %v257_v11 = vmul.f32 %v235_v9, %v967_v38  ;;  %v238_v15 = vpop.xlane.xlu0 %237  ;;  %v211_v16 = vpop.xlane.xlu1 %210 }
 0x10c   :  { %v258_v21 = vmul.f32 %v238_v15, %v967_v38  ;;  %v249_v12 = vmul.f32 %v211_v16, %v967_v38 }
 0x10d   :  { %v1084_v22 = vpop.eup %678  ;;  %v1086_v13 = vadd.f32 1e-05, %v257_v11 }
 0x10e   :  { %v681_v23 = vpop.eup %680  ;;  %v358_v27 = vmul.f32 %v1084_v22, %v269_v7  ;;  %v1089_v28 = vadd.f32 1e-05, %v258_v21  ;;  %v1091_v29 = vadd.f32 1e-05, %v249_v12  ;;  %vm364_vm4 = vweird.f32 %v1084_v22 }
 0x10f   :  { %v278_v14 = vmul.f32 %v681_v23, %v261_v8  ;;  %682 = vrsqrt.f32 %v1086_v13  ;;  %vm284_vm3 = vweird.f32 %v681_v23  ;;  %vm1132_vm7 = vmor %vm363_vm6, %vm364_vm4  ;;  %vm403_vm8 = vweird.f32 %v1086_v13 }
 0x110   :  { %v359_v31 = vmul.f32 %v1084_v22, %v358_v27  ;;  %684 = vrsqrt.f32 %v1089_v28  ;;  %vm1123_vm5 = vmor %vm283_vm2, %vm284_vm3  ;;  %vm413_vm9 = vweird.f32 %v1089_v28  ;;  %vm323_vm10 = vweird.f32 %v1091_v29 }
 0x111   :  { %v279_v34 = vmul.f32 %v681_v23, %v278_v14  ;;  %686 = vrsqrt.f32 %v1091_v29 }
 0x112   :  { %v360_v35 = vmul.f32 0.5, %v359_v31  ;;  %v226_v36 = vpop.xlane.xlu2 %225 }
 0x113   :  { %v280_v39 = vmul.f32 0.5, %v279_v34  ;;  %v254_v40 = vmul.f32 %v226_v36, %v967_v38  ;;  %v229_v18 = vpop.xlane.xlu0 %228  ;;  %v202_v41 = vpop.xlane.xlu1 %201  ;;  %v1158_v36 = vld [vmem:[#allocation2] ss:$0 sm:$0xff] }
 0x114   :  { %v361_v19 = vsub.f32 1.5, %v360_v35  ;;  %v255_v42 = vmul.f32 %v229_v18, %v967_v38  ;;  %v246_v53 = vmul.f32 %v202_v41, %v967_v38 }
 0x115   :  { %v1099_v43 = vpop.eup %682  ;;  %v281_v46 = vsub.f32 1.5, %v280_v39  ;;  %v1101_v20 = vadd.f32 1e-05, %v254_v40 }
 0x116   :  { %v1103_v49 = vpop.eup %684  ;;  %v398_v50 = vmul.f32 %v1099_v43, %v1086_v13  ;;  %v1107_v51 = vadd.f32 1e-05, %v255_v42  ;;  %v362_v55 = vmul.f32 %v1084_v22, %v361_v19  ;;  %v1128_v30 = vadd.f32 1e-05, %v246_v53 }
 0x117   :  { %v1110_v54 = vpop.eup %686  ;;  %v282_v24 = vmul.f32 %v681_v23, %v281_v46  ;;  %v408_v25 = vmul.f32 %v1103_v49, %v1089_v28  ;;  %688 = vrsqrt.f32 %v1101_v20  ;;  %vm404_vm11 = vweird.f32 %v1099_v43 }
 0x118   :  { %v399_v26 = vmul.f32 %v1099_v43, %v398_v50  ;;  %v318_v60 = vmul.f32 %v1110_v54, %v1091_v29  ;;  %690 = vrsqrt.f32 %v1107_v51  ;;  %v366_v7 = vsel %vm1132_vm7, %v1084_v22, %v362_v55  ;;  %vm1192_vm2 = vmor %vm403_vm8, %vm404_vm11 }
 0x119   :  { %v409_v61 = vmul.f32 %v1103_v49, %v408_v25  ;;  %v286_v4 = vsel %vm1123_vm5, %v681_v23, %v282_v24  ;;  %692 = vrsqrt.f32 %v1128_v30  ;;  %v445_v39 = vmul.f32 %v366_v7, %v971_v44 }
 0x11a   :  { %v400_v1 = vmul.f32 0.5, %v399_v26  ;;  %v319_v2 = vmul.f32 %v1110_v54, %v318_v60  ;;  %v214_v3 = vpop.xlane.xlu2 %213  ;;  %v437_v14 = vmul.f32 %v286_v4, %v973_v45  ;;  %vm414_vm12 = vweird.f32 %v1103_v49  ;;  %v1169_v45 = vld [vmem:[#allocation4] ss:$0 sm:$0xff] }
 0x11b   :  { %v410_v6 = vmul.f32 0.5, %v409_v61  ;;  %v217_v8 = vpop.xlane.xlu0 %216  ;;  %v250_v9 = vmul.f32 %v214_v3, %v967_v38  ;;  %v241_v11 = vpop.xlane.xlu1 %240  ;;  %vm324_vm13 = vweird.f32 %v1110_v54  ;;  %vm383_vm14 = vweird.f32 %v1107_v51  ;;  %vm1204_vm3 = vmor %vm413_vm9, %vm414_vm12 }
 0x11c   :  { %v320_v15 = vmul.f32 0.5, %v319_v2  ;;  %v251_v21 = vmul.f32 %v217_v8, %v967_v38  ;;  %v401_v23 = vsub.f32 1.5, %v400_v1  ;;  %v259_v22 = vmul.f32 %v241_v11, %v967_v38  ;;  %vm1235_vm5 = vmor %vm323_vm10, %vm324_vm13 }
 0x11d   :  { %v1142_v16 = vpop.eup %688  ;;  %v1147_v12 = vadd.f32 1e-05, %v250_v9  ;;  %v411_v34 = vsub.f32 1.5, %v410_v6  ;;  %vm373_vm15 = vweird.f32 %v1101_v20  ;;  %vm293_vm1 = vweird.f32 %v1128_v30 }
 0x11e   :  { %v368_v27 = vmul.f32 %v1142_v16, %v1101_v20  ;;  %v1153_v31 = vpop.eup %690  ;;  %v1155_v35 = vadd.f32 1e-05, %v251_v21  ;;  %v321_v40 = vsub.f32 1.5, %v320_v15  ;;  %v1174_v44 = vmul.f32 %v1099_v43, %v401_v23 }
 0x11f   :  { %694 = vrsqrt.f32 %v1147_v12  ;;  %v378_v41 = vmul.f32 %v1153_v31, %v1107_v51  ;;  %v1171_v19 = vpop.eup %692  ;;  %v1178_v50 = vadd.f32 1e-05, %v259_v22  ;;  %v1181_v24 = vmul.f32 %v1103_v49, %v411_v34 }
 0x120   :  { %v369_v18 = vmul.f32 %v1142_v16, %v368_v27  ;;  %696 = vrsqrt.f32 %v1155_v35  ;;  %v288_v25 = vmul.f32 %v1171_v19, %v1128_v30  ;;  %v457_v55 = vmul.f32 %v1158_v36, %v437_v14 }
 0x121   :  { %v379_v46 = vmul.f32 %v1153_v31, %v378_v41  ;;  %v465_v26 = vmul.f32 %v1158_v36, %v445_v39  ;;  %v322_v1 = vmul.f32 %v1110_v54, %v321_v40  ;;  %698 = vrsqrt.f32 %v1178_v50 }
 0x122   :  { %v370_v42 = vmul.f32 0.5, %v369_v18  ;;  %v205_v53 = vpop.xlane.xlu2 %204  ;;  %v289_v13 = vmul.f32 %v1171_v19, %v288_v25  ;;  %v477_v6 = vadd.f32 %v1169_v45, %v457_v55  ;;  %v406_v11 = vsel %vm1192_vm2, %v1099_v43, %v1174_v44 }
 0x123   :  { %v208_v60 = vpop.xlane.xlu0 %207  ;;  %v232_v61 = vpop.xlane.xlu1 %231  ;;  %v380_v3 = vmul.f32 0.5, %v379_v46  ;;  %v485_v8 = vadd.f32 %v1169_v45, %v465_v26  ;;  %vm374_vm4 = vweird.f32 %v1142_v16  ;;  %v247_v27 = vmul.f32 %v205_v53, %v967_v38 }
 0x124   :  { %v371_v2 = vsub.f32 1.5, %v370_v42  ;;  %v248_v9 = vmul.f32 %v208_v60, %v967_v38  ;;  %v290_v21 = vmul.f32 0.5, %v289_v13  ;;  %638 = vmatmul.msk.f32.vlgmr.msra.gmra.mxu0 %vm93_vm0, %v477_v6  ;;  %v256_v22 = vmul.f32 %v232_v61, %v967_v38  ;;  %vm1263_vm9 = vmor %vm373_vm15, %vm374_vm4 }
 0x125   :  { %v1198_v4 = vpop.eup %694  ;;  %v381_v28 = vsub.f32 1.5, %v380_v3  ;;  %646 = vmatmul.msk.f32.vlgmr.msra.gmra.mxu2 %vm93_vm0, %v485_v8  ;;  %v416_v43 = vsel %vm1204_vm3, %v1103_v49, %v1181_v24  ;;  %vm384_vm6 = vweird.f32 %v1153_v31  ;;  %v326_v40 = vsel %vm1235_vm5, %v1110_v54, %v322_v1 }
 0x126   :  { %v328_v7 = vmul.f32 %v1198_v4, %v1147_v12  ;;  %v1219_v15 = vpop.eup %696  ;;  %v1223_v23 = vadd.f32 1e-05, %v248_v9  ;;  %v1240_v34 = vmul.f32 %v1142_v16, %v371_v2  ;;  %v291_v18 = vsub.f32 1.5, %v290_v21  ;;  %vm1281_vm10 = vmor %vm383_vm14, %vm384_vm6 }
 0x127   :  { %v338_v39 = vmul.f32 %v1219_v15, %v1155_v35  ;;  %v1250_v29 = vpop.eup %698  ;;  %vm294_vm7 = vweird.f32 %v1171_v19  ;;  %vm333_vm8 = vweird.f32 %v1147_v12  ;;  %v1255_v42 = vadd.f32 1e-05, %v247_v27 }
 0x128   :  { %v329_v41 = vmul.f32 %v1198_v4, %v328_v7  ;;  %700 = vrsqrt.f32 %v1223_v23  ;;  %v1257_v46 = vadd.f32 1e-05, %v256_v22  ;;  %v1268_v53 = vmul.f32 %v1153_v31, %v381_v28  ;;  %vm1294_vm13 = vmor %vm293_vm1, %vm294_vm7 }
 0x129   :  { %v339_v44 = vmul.f32 %v1219_v15, %v338_v39  ;;  %v292_v25 = vmul.f32 %v1171_v19, %v291_v18  ;;  %v418_v26 = vmul.f32 %v1250_v29, %v1178_v50  ;;  %v376_v61 = vsel %vm1263_vm9, %v1142_v16, %v1240_v34 }
 0x12a   :  { %v330_v55 = vmul.f32 0.5, %v329_v41  ;;  %v244_v60 = vpop.xlane.xlu2 %243  ;;  %vm334_vm11 = vweird.f32 %v1198_v4  ;;  %vm423_vm12 = vweird.f32 %v1178_v50  ;;  %702 = vrsqrt.f32 %v1255_v42 }
 0x12b   :  { %v220_v62 = vpop.xlane.xlu1 %219  ;;  %v340_v1 = vmul.f32 0.5, %v339_v44  ;;  %v419_v3 = vmul.f32 %v1250_v29, %v418_v26  ;;  %704 = vrsqrt.f32 %v1257_v46  ;;  %vm343_vm14 = vweird.f32 %v1155_v35  ;;  %vm1335_vm4 = vmor %vm333_vm8, %vm334_vm11 }
 0x12c   :  { %v331_v2 = vsub.f32 1.5, %v330_v55  ;;  %vm344_vm15 = vweird.f32 %v1219_v15  ;;  %v441_v16 = vmul.f32 %v326_v40, %v992_v59  ;;  %v449_v13 = vmul.f32 %v406_v11, %v989_v58 }
 0x12d   :  { %v260_v6 = vmul.f32 %v244_v60, %v967_v38  ;;  %v386_v30 = vsel %vm1281_vm10, %v1153_v31, %v1268_v53  ;;  %v296_v9 = vsel %vm1294_vm13, %v1171_v19, %v292_v25  ;;  %v420_v28 = vmul.f32 0.5, %v419_v3  ;;  %vm1384_vm11 = vmor %vm343_vm14, %vm344_vm15 }
 0x12e   :  { %v1303_v8 = vpop.eup %700  ;;  %v252_v7 = vmul.f32 %v220_v62, %v967_v38  ;;  %v332_v59 = vmul.f32 %v1198_v4, %v331_v2  ;;  %vm424_vm1 = vweird.f32 %v1250_v29  ;;  %vm313_vm2 = vweird.f32 %v1223_v23 }
 0x12f   :  { %v308_v58 = vmul.f32 %v1303_v8, %v1223_v23  ;;  %v461_v11 = vmul.f32 %v1158_v36, %v441_v16  ;;  %v341_v21 = vsub.f32 1.5, %v340_v1  ;;  %v421_v27 = vsub.f32 1.5, %v420_v28  ;;  %vm1356_vm6 = vmor %vm423_vm12, %vm424_vm1 }
 0x130   :  { %v469_v22 = vmul.f32 %v1158_v36, %v449_v13  ;;  %v1320_v14 = vadd.f32 1e-05, %v260_v6  ;;  %v1322_v19 = vpop.eup %702  ;;  %v1326_v39 = vadd.f32 1e-05, %v252_v7  ;;  %v438_v40 = vmul.f32 %v296_v9, %v1013_v10 }
 0x131   :  { %v309_v38 = vmul.f32 %v1303_v8, %v308_v58  ;;  %v481_v34 = vadd.f32 %v1169_v45, %v461_v11  ;;  %v1329_v18 = vpop.eup %704  ;;  %v422_v44 = vmul.f32 %v1250_v29, %v421_v27  ;;  %v298_v54 = vmul.f32 %v1322_v19, %v1255_v42 }
 0x132   :  { %vm303_vm5 = vweird.f32 %v1255_v42  ;;  %v489_v25 = vadd.f32 %v1169_v45, %v469_v22  ;;  %v336_v10 = vsel %vm1335_vm4, %v1198_v4, %v332_v59  ;;  %v388_v12 = vmul.f32 %v1329_v18, %v1257_v46 }
 0x133   :  { %v310_v55 = vmul.f32 0.5, %v309_v38  ;;  %642 = vmatmul.msk.f32.vlgmr.msra.gmra.mxu1 %vm93_vm0, %v481_v34  ;;  %706 = vrsqrt.f32 %v1320_v14  ;;  %v342_v26 = vmul.f32 %v1219_v15, %v341_v21  ;;  %v299_v4 = vmul.f32 %v1322_v19, %v298_v54 }
 0x134   :  { %vm393_vm7 = vweird.f32 %v1257_v46  ;;  %650 = vmatmul.msk.f32.vlgmr.msra.gmra.mxu3 %vm93_vm0, %v489_v25  ;;  %708 = vrsqrt.f32 %v1326_v39  ;;  %v426_v62 = vsel %vm1356_vm6, %v1250_v29, %v422_v44  ;;  %v389_v2 = vmul.f32 %v1329_v18, %v388_v12 }
 0x135   :  { %v311_v1 = vsub.f32 1.5, %v310_v55  ;;  %v458_v50 = vmul.f32 %v1158_v36, %v438_v40  ;;  %v300_v3 = vmul.f32 0.5, %v299_v4  ;;  %v446_v51 = vmul.f32 %v376_v61, %v1001_v63 }
 0x136   :  { %v450_v16 = vmul.f32 %v416_v43, %v986_v57  ;;  %v442_v13 = vmul.f32 %v336_v10, %v1022_v17  ;;  %vm314_vm8 = vweird.f32 %v1303_v8  ;;  %vm304_vm9 = vweird.f32 %v1322_v19 }
 0x137   :  { %v390_v29 = vmul.f32 0.5, %v389_v2  ;;  %v478_v6 = vadd.f32 %v1169_v45, %v458_v50  ;;  %v301_v5 = vsub.f32 1.5, %v300_v3  ;;  %v466_v57 = vmul.f32 %v1158_v36, %v446_v51  ;;  %vm1399_vm12 = vmor %vm313_vm2, %vm314_vm8 }
 0x138   :  { %v470_v17 = vmul.f32 %v1158_v36, %v450_v16  ;;  %v462_v49 = vmul.f32 %v1158_v36, %v442_v13  ;;  %v312_v43 = vmul.f32 %v1303_v8, %v311_v1  ;;  %vm394_vm3 = vweird.f32 %v1329_v18  ;;  %vm305_vm13 = vmor %vm303_vm5, %vm304_vm9 }
 0x139   :  { %v707_v24 = vpop.eup %706  ;;  %v391_v61 = vsub.f32 1.5, %v390_v29  ;;  %639 = vmatmul.msk.f32.gmra.mxu0 %vm93_vm0, %v478_v6  ;;  %v451_v35 = vmul.f32 %v426_v62, %v1036_v33  ;;  %v302_v7 = vmul.f32 %v1322_v19, %v301_v5  ;;  %v486_v58 = vadd.f32 %v1169_v45, %v466_v57  ;;  %vm1427_vm10 = vmor %vm393_vm7, %vm394_vm3 }
 0x13a   :  { %v709_v9 = vpop.eup %708  ;;  %v428_v59 = vmul.f32 %v707_v24, %v1320_v14  ;;  %v447_v33 = vmul.f32 %v386_v30, %v1010_v0  ;;  %v346_v23 = vsel %vm1384_vm11, %v1219_v15, %v342_v26  ;;  %v490_v27 = vadd.f32 %v1169_v45, %v470_v17 }
 0x13b   :  { %v392_v11 = vmul.f32 %v1329_v18, %v391_v61  ;;  %v348_v21 = vmul.f32 %v709_v9, %v1326_v39  ;;  %v306_v20 = vsel %vm305_vm13, %v1322_v19, %v302_v7  ;;  %647 = vmatmul.msk.f32.gmra.mxu2 %vm93_vm0, %v486_v58  ;;  %v482_v15 = vadd.f32 %v1169_v45, %v462_v49 }
 0x13c   :  { %v429_v31 = vmul.f32 %v707_v24, %v428_v59  ;;  %651 = vmatmul.msk.f32.gmra.mxu3 %vm93_vm0, %v490_v27  ;;  %v471_v30 = vmul.f32 %v1158_v36, %v451_v35  ;;  %v439_v46 = vmul.f32 %v306_v20, %v1044_v37  ;;  %v316_v22 = vsel %vm1399_vm12, %v1303_v8, %v312_v43 }
 0x13d   :  { %v396_v42 = vsel %vm1427_vm10, %v1329_v18, %v392_v11  ;;  %v349_v53 = vmul.f32 %v709_v9, %v348_v21  ;;  %643 = vmatmul.msk.f32.gmra.mxu1 %vm93_vm0, %v482_v15  ;;  %v467_v38 = vmul.f32 %v1158_v36, %v447_v33  ;;  %v443_v34 = vmul.f32 %v346_v23, %v1033_v32 }
 0x13e   :  { %v430_v19 = vmul.f32 0.5, %v429_v31  ;;  %vm434_vm14 = vweird.f32 %v707_v24  ;;  %vm353_vm15 = vweird.f32 %v1326_v39  ;;  %v459_v18 = vmul.f32 %v1158_v36, %v439_v46 }
 0x13f   :  { %v350_v40 = vmul.f32 0.5, %v349_v53  ;;  %vm354_vm1 = vweird.f32 %v709_v9  ;;  %v463_v37 = vmul.f32 %v1158_v36, %v443_v34  ;;  %v448_v44 = vmul.f32 %v396_v42, %v1057_v48 }
 0x140   :  { %v431_v41 = vsub.f32 1.5, %v430_v19  ;;  %v491_v54 = vadd.f32 %v1169_v45, %v471_v30  ;;  %v479_v25 = vadd.f32 %v1169_v45, %v459_v18  ;;  %v440_v10 = vmul.f32 %v316_v22, %v1054_v47  ;;  %vm355_vm5 = vmor %vm353_vm15, %vm354_vm1 }
 0x141   :  { %v351_v8 = vsub.f32 1.5, %v350_v40  ;;  %vm433_vm2 = vweird.f32 %v1320_v14  ;;  %v487_v55 = vadd.f32 %v1169_v45, %v467_v38  ;;  %v483_v48 = vadd.f32 %v1169_v45, %v463_v37 }
 0x142   :  { %v432_v32 = vmul.f32 %v707_v24, %v431_v41  ;;  %vm435_vm4 = vmor %vm433_vm2, %vm434_vm14  ;;  %640 = vmatmul.msk.f32.gmra.mxu0 %vm93_vm0, %v479_v25  ;;  %v468_v47 = vmul.f32 %v1158_v36, %v448_v44  ;;  %v460_v14 = vmul.f32 %v1158_v36, %v440_v10  ;;  %vm614_vm6 = vcmask 785408  }
 0x143   :  { %v352_v12 = vmul.f32 %v709_v9, %v351_v8  ;;  %648 = vmatmul.msk.f32.gmra.mxu2 %vm93_vm0, %v487_v55 }
 0x144   :  { %v436_v26 = vsel %vm435_vm4, %v707_v24, %v432_v32  ;;  %652 = vmatmul.msk.f32.gmra.mxu3 %vm93_vm0, %v491_v54  ;;  %v488_v1 = vadd.f32 %v1169_v45, %v468_v47  ;;  %v480_v50 = vadd.f32 %v1169_v45, %v460_v14 }
 0x145   :  { %v356_v60 = vsel %vm355_vm5, %v709_v9, %v352_v12  ;;  %v452_v4 = vmul.f32 %v436_v26, %v1065_v52  ;;  %644 = vmatmul.msk.f32.gmra.mxu1 %vm93_vm0, %v483_v48  ;;  %v675_v52 = vld [vmem:[#allocation7] ss:$0 sm:$0xff] }
 0x146   :  { %v444_v62 = vmul.f32 %v356_v60, %v1073_v56 }
 0x147   :  { %v472_v39 = vmul.f32 %v1158_v36, %v452_v4 }
 0x148   :  { %v464_v2 = vmul.f32 %v1158_v36, %v444_v62 }
 0x149   :  { %v492_v3 = vadd.f32 %v1169_v45, %v472_v39 }
 0x14a   :  { %v484_v51 = vadd.f32 %v1169_v45, %v464_v2  ;;  %641 = vmatmul.msk.f32.gmra.mxu0 %vm93_vm0, %v480_v50 }
 0x14b   :  { %649 = vmatmul.msk.f32.gmra.mxu2 %vm93_vm0, %v488_v1 }
 0x14c   :  { %653 = vmatmul.msk.f32.gmra.mxu3 %vm93_vm0, %v492_v3 }
 0x14d   :  { %645 = vmatmul.msk.f32.gmra.mxu1 %vm93_vm0, %v484_v51 }
 0x1a1   :  { %v566_v56 = vpop.f32.mrf.mxu0 }
 0x1a2   :  { %v567_v16 = vadd.f32 %v675_v52, %v566_v56 }
 0x1a4   :  { %615 = vst.msk [vmem:[%s1545_s5] sm:$0xff] %vm614_vm6, %v567_v16 }
 0x1a8   :  { %v590_v36 = vpop.f32.mrf.mxu2 }
 0x1a9   :  { %v591_v13 = vadd.f32 %v675_v52, %v590_v36 }
 0x1ab   :  { %623 = vst.msk [vmem:[%s1545_s5 + $0x40] sm:$0xff] %vm614_vm6, %v591_v13 }
 0x1b0   :  { %v578_v45 = vpop.f32.mrf.mxu1 }
 0x1b1   :  { %v579_v29 = vadd.f32 %v675_v52, %v578_v45 }
 0x1b3   :  { %619 = vst.msk [vmem:[%s1545_s5 + $0x20] sm:$0xff] %vm614_vm6, %v579_v29 }
 0x1b6   :  { %v569_v6 = vpop.f32.mrf.mxu0 }
 0x1b7   :  { %v602_v63 = vpop.f32.mrf.mxu3  ;;  %v570_v5 = vadd.f32 %v675_v52, %v569_v6 }
 0x1b8   :  { %v603_v57 = vadd.f32 %v675_v52, %v602_v63 }
 0x1b9   :  { %616 = vst.msk [vmem:[%s1545_s5 + $0x8] sm:$0xff] %vm614_vm6, %v570_v5 }
 0x1ba   :  { %627 = vst.msk [vmem:[%s1545_s5 + $0x60] sm:$0xff] %vm614_vm6, %v603_v57  ;;  %v581_v17 = vpop.f32.mrf.mxu1 }
 0x1bb   :  { %v582_v49 = vadd.f32 %v675_v52, %v581_v17 }
 0x1bd   :  { %620 = vst.msk [vmem:[%s1545_s5 + $0x28] sm:$0xff] %vm614_vm6, %v582_v49 }
 0x1be   :  { %v593_v24 = vpop.f32.mrf.mxu2 }
 0x1bf   :  { %v594_v43 = vadd.f32 %v675_v52, %v593_v24  ;;  %v605_v61 = vpop.f32.mrf.mxu3  ;;  %v572_v35 = vpop.f32.mrf.mxu0 }
 0x1c0   :  { %v606_v9 = vadd.f32 %v675_v52, %v605_v61  ;;  %v573_v28 = vadd.f32 %v675_v52, %v572_v35 }
 0x1c1   :  { %624 = vst.msk [vmem:[%s1545_s5 + $0x48] sm:$0xff] %vm614_vm6, %v594_v43 }
 0x1c2   :  { %628 = vst.msk [vmem:[%s1545_s5 + $0x68] sm:$0xff] %vm614_vm6, %v606_v9  ;;  %v584_v7 = vpop.f32.mrf.mxu1 }
 0x1c3   :  { %617 = vst.msk [vmem:[%s1545_s5 + $0x10] sm:$0xff] %vm614_vm6, %v573_v28  ;;  %v585_v59 = vadd.f32 %v675_v52, %v584_v7 }
 0x1c5   :  { %621 = vst.msk [vmem:[%s1545_s5 + $0x30] sm:$0xff] %vm614_vm6, %v585_v59 }
 0x1c6   :  { %v596_v58 = vpop.f32.mrf.mxu2 }
 0x1c7   :  { %v597_v33 = vadd.f32 %v675_v52, %v596_v58  ;;  %v608_v23 = vpop.f32.mrf.mxu3  ;;  %v575_v11 = vpop.f32.mrf.mxu0 }
 0x1c8   :  { %v609_v21 = vadd.f32 %v675_v52, %v608_v23  ;;  %v576_v27 = vadd.f32 %v675_v52, %v575_v11 }
 0x1c9   :  { %625 = vst.msk [vmem:[%s1545_s5 + $0x50] sm:$0xff] %vm614_vm6, %v597_v33 }
 0x1ca   :  { %629 = vst.msk [vmem:[%s1545_s5 + $0x70] sm:$0xff] %vm614_vm6, %v609_v21  ;;  %v587_v20 = vpop.f32.mrf.mxu1 }
 0x1cb   :  { %618 = vst.msk [vmem:[%s1545_s5 + $0x18] sm:$0xff] %vm614_vm6, %v576_v27  ;;  %v588_v0 = vadd.f32 %v675_v52, %v587_v20 }
 0x1cd   :  { %622 = vst.msk [vmem:[%s1545_s5 + $0x38] sm:$0xff] %vm614_vm6, %v588_v0 }
 0x1ce   :  { %v599_v31 = vpop.f32.mrf.mxu2 }
 0x1cf   :  { %v600_v15 = vadd.f32 %v675_v52, %v599_v31  ;;  %v611_v42 = vpop.f32.mrf.mxu3 }
 0x1d0   :  { %v612_v53 = vadd.f32 %v675_v52, %v611_v42 }
 0x1d1   :  { %626 = vst.msk [vmem:[%s1545_s5 + $0x58] sm:$0xff] %vm614_vm6, %v600_v15 }
 0x1d2   :  { %630 = vst.msk [vmem:[%s1545_s5 + $0x78] sm:$0xff] %vm614_vm6, %v612_v53 }
 0x1d3   :  { %635 = vsyncpa [#allocation3], 1 }
 0x1d4   :  { %636 = vsyncpa [#allocation5], 1 }
 0x1d5   :  { %637 = vsyncpa [#allocation8], 1 }

// kernel: _lambda_.12
= control target key start
LH: loop header
LB: loop body
LE: loop exit
PB: predicated region body
PF: predicated region fallthrough
CT: control target
= control target key end

     0   :  { %8 = vsyncpa [#allocation3], 0  ;;  %s1090_s0 = inlined_call_operand.vmem [shape: f32[128,32], index: 0, kind: input, shape index: {}]   ;;  %s1091_s1 = inlined_call_operand.hbm [shape: f32[1,32], index: 1, kind: input, shape index: {}]   ;;  %s1092_s2 = inlined_call_operand.hbm [shape: f32[1,32], index: 2, kind: input, shape index: {}]   ;;  %s1093_s3 = inlined_call_operand.vmem [shape: f32[128,32], index: 3, kind: output, shape index: {}]  }
   0x1   :  { %s17_s14 = sshll.u32 %s1091_s1, 4  ;;  %s18_s14 = int_to_ptr.hbm [resolvable:$true] %s17_s14 }
   0x2   :  { %9 = vsyncpa [#allocation5], 0  ;;  %s571_s15 = smov [#allocation2]   ;;  %s28_s19 = sshll.u32 %s1092_s2, 4  ;;  %s29_s19 = int_to_ptr.hbm [resolvable:$true] %s28_s19 }
   0x3   :  { %s19_s16 = sshll.u32 %s571_s15, 4  ;;  %s572_s20 = smov [#allocation4]   ;;  %s20_s16 = int_to_ptr.vmem [resolvable:$true] %s19_s16 }
   0x4   :  { %22 = dma.hbm_to_vmem [thread:$0]  %s18_s14, 16, %s20_s16, [#allocation3]  }
   0x5   :  { %s30_s21 = sshll.u32 %s572_s20, 4  ;;  %s31_s21 = int_to_ptr.vmem [resolvable:$true] %s30_s21 }
   0x6   :  { %33 = dma.hbm_to_vmem [thread:$0]  %s29_s19, 16, %s31_s21, [#allocation5]  }
   0x7   :  { %567 = dma.done.wait [#allocation3], 16  }
   0x8   :  { %568 = vsyncadd [#allocation3], 4294967280 }
   0x9   :  { %569 = dma.done.wait [#allocation5], 16  }
   0xa   :  { %570 = vsyncadd [#allocation5], 4294967280  ;;  %vm58_vm0 = vcmask 261120   ;;  %v603_v0 = vld [vmem:[%s1090_s0 + $0x20] sm:$0xff]  ;;  %v44_v1 = vld [vmem:[%s1090_s0 + $0x10] sm:$0xff]  ;;  %v573_v32 = vmov 32.0  }
   0xb   :  { %v42_v2 = vld [vmem:[%s1090_s0] sm:$0xff]  ;;  %v71_v3 = vsel %vm58_vm0, %v603_v0, 0.0  ;;  %v65_v4 = vsel %vm58_vm0, %v44_v1, 0.0  ;;  %v618_v6 = vld [vmem:[%s1090_s0 + $0x28] sm:$0xff]  ;;  %v623_v7 = vld [vmem:[%s1090_s0 + $0x18] sm:$0xff]  ;;  %485 = vrcp.f32 %v573_v32 }
   0xc   :  { %v59_v5 = vsel %vm58_vm0, %v42_v2, 0.0  ;;  %72 = vadd.xlane.f32.xlu2 %v71_v3  ;;  %66 = vadd.xlane.f32.xlu1 %v65_v4  ;;  %v628_v8 = vld [vmem:[%s1090_s0 + $0x8] sm:$0xff]  ;;  %v74_v9 = vsel %vm58_vm0, %v618_v6, 0.0  ;;  %v68_v10 = vsel %vm58_vm0, %v623_v7, 0.0  ;;  %v639_v12 = vld [vmem:[%s1090_s0 + $0x40] sm:$0xff]  ;;  %v644_v13 = vld [vmem:[%s1090_s0 + $0x38] sm:$0xff] }
   0xd   :  { %60 = vadd.xlane.f32.xlu0 %v59_v5  ;;  %v62_v11 = vsel %vm58_vm0, %v628_v8, 0.0  ;;  %v649_v14 = vld [vmem:[%s1090_s0 + $0x30] sm:$0xff]  ;;  %v83_v15 = vsel %vm58_vm0, %v639_v12, 0.0  ;;  %v80_v16 = vsel %vm58_vm0, %v644_v13, 0.0  ;;  %v660_v18 = vld [vmem:[%s1090_s0 + $0x58] sm:$0xff]  ;;  %v670_v20 = vld [vmem:[%s1090_s0 + $0x48] sm:$0xff] }
   0xe   :  { %v77_v17 = vsel %vm58_vm0, %v649_v14, 0.0  ;;  %v665_v19 = vld [vmem:[%s1090_s0 + $0x50] sm:$0xff]  ;;  %v92_v21 = vsel %vm58_vm0, %v660_v18, 0.0  ;;  %v86_v23 = vsel %vm58_vm0, %v670_v20, 0.0  ;;  %v686_v25 = vld [vmem:[%s1090_s0 + $0x68] sm:$0xff]  ;;  %v691_v26 = vld [vmem:[%s1090_s0 + $0x60] sm:$0xff] }
   0xf   :  { %v89_v22 = vsel %vm58_vm0, %v665_v19, 0.0  ;;  %v681_v24 = vld [vmem:[%s1090_s0 + $0x70] sm:$0xff]  ;;  %v98_v28 = vsel %vm58_vm0, %v686_v25, 0.0  ;;  %v95_v29 = vsel %vm58_vm0, %v691_v26, 0.0  ;;  %v702_v30 = vld [vmem:[%s1090_s0 + $0x78] sm:$0xff] }
  0x10   :  { %v101_v27 = vsel %vm58_vm0, %v681_v24, 0.0  ;;  %v104_v31 = vsel %vm58_vm0, %v702_v30, 0.0 }
  0x11   :  { %v486_v33 = vpop.eup %485 }
  0x12   :  { %v108_v34 = vmul.f32 32.0, %v486_v33  ;;  %vm112_vm1 = vweird.f32 %v486_v33 }
  0x14   :  { %75 = vadd.xlane.f32.xlu2 %v74_v9  ;;  %69 = vadd.xlane.f32.xlu1 %v68_v10  ;;  %v109_v35 = vsub.f32 1.0, %v108_v34 }
  0x15   :  { %63 = vadd.xlane.f32.xlu0 %v62_v11 }
  0x16   :  { %v110_v36 = vmul.f32 %v486_v33, %v109_v35 }
  0x18   :  { %v111_v37 = vadd.f32 %v486_v33, %v110_v36 }
  0x1a   :  { %v706_v38 = vsel %vm112_vm1, %v486_v33, %v111_v37 }
  0x1c   :  { %84 = vadd.xlane.f32.xlu2 %v83_v15  ;;  %81 = vadd.xlane.f32.xlu1 %v80_v16 }
  0x1d   :  { %78 = vadd.xlane.f32.xlu0 %v77_v17 }
  0x24   :  { %93 = vadd.xlane.f32.xlu2 %v92_v21  ;;  %90 = vadd.xlane.f32.xlu1 %v89_v22 }
  0x25   :  { %87 = vadd.xlane.f32.xlu0 %v86_v23 }
  0x2c   :  { %102 = vadd.xlane.f32.xlu2 %v101_v27  ;;  %99 = vadd.xlane.f32.xlu1 %v98_v28 }
  0x2d   :  { %96 = vadd.xlane.f32.xlu0 %v95_v29 }
  0x35   :  { %105 = vadd.xlane.f32.xlu0 %v104_v31 }
  0x7f   :  { %v73_v39 = vpop.xlane.xlu2 %72  ;;  %v67_v40 = vpop.xlane.xlu1 %66 }
  0x80   :  { %v116_v41 = vmul.f32 %v706_v38, %v67_v40  ;;  %v61_v42 = vpop.xlane.xlu0 %60  ;;  %v118_v58 = vmul.f32 %v706_v38, %v73_v39 }
  0x81   :  { %v114_v43 = vmul.f32 %v706_v38, %v61_v42 }
  0x82   :  { %v710_v44 = vsub.f32 %v44_v1, %v116_v41 }
  0x83   :  { %v712_v45 = vsub.f32 %v42_v2, %v114_v43  ;;  %v742_v2 = vsub.f32 %v603_v0, %v118_v58 }
  0x84   :  { %v148_v46 = vmul.f32 %v710_v44, %v710_v44 }
  0x85   :  { %v146_v47 = vmul.f32 %v712_v45, %v712_v45  ;;  %v150_v11 = vmul.f32 %v742_v2, %v742_v2 }
  0x86   :  { %v168_v48 = vsel %vm58_vm0, %v148_v46, 0.0 }
  0x87   :  { %v76_v49 = vpop.xlane.xlu2 %75  ;;  %v70_v50 = vpop.xlane.xlu1 %69  ;;  %169 = vadd.xlane.f32.xlu0 %v168_v48  ;;  %v162_v51 = vsel %vm58_vm0, %v146_v47, 0.0 }
  0x88   :  { %v119_v52 = vmul.f32 %v706_v38, %v76_v49  ;;  %v117_v53 = vmul.f32 %v706_v38, %v70_v50  ;;  %163 = vadd.xlane.f32.xlu1 %v162_v51  ;;  %v64_v54 = vpop.xlane.xlu0 %63 }
  0x89   :  { %v115_v55 = vmul.f32 %v706_v38, %v64_v54 }
  0x8a   :  { %v724_v56 = vsub.f32 %v618_v6, %v119_v52  ;;  %v727_v57 = vsub.f32 %v623_v7, %v117_v53 }
  0x8b   :  { %v731_v59 = vsub.f32 %v628_v8, %v115_v55 }
  0x8c   :  { %v151_v60 = vmul.f32 %v724_v56, %v724_v56  ;;  %v149_v61 = vmul.f32 %v727_v57, %v727_v57 }
  0x8d   :  { %v147_v62 = vmul.f32 %v731_v59, %v731_v59 }
  0x8e   :  { %v177_v63 = vsel %vm58_vm0, %v151_v60, 0.0  ;;  %v171_v1 = vsel %vm58_vm0, %v149_v61, 0.0 }
  0x8f   :  { %v85_v3 = vpop.xlane.xlu2 %84  ;;  %178 = vadd.xlane.f32.xlu0 %v177_v63  ;;  %v165_v4 = vsel %vm58_vm0, %v147_v62, 0.0  ;;  %v82_v5 = vpop.xlane.xlu1 %81 }
  0x90   :  { %v122_v6 = vmul.f32 %v706_v38, %v85_v3  ;;  %172 = vadd.xlane.f32.xlu1 %v171_v1  ;;  %166 = vadd.xlane.f32.xlu2 %v165_v4  ;;  %v79_v7 = vpop.xlane.xlu0 %78  ;;  %v121_v9 = vmul.f32 %v706_v38, %v82_v5 }
  0x91   :  { %v120_v8 = vmul.f32 %v706_v38, %v79_v7 }
  0x92   :  { %v749_v10 = vsub.f32 %v639_v12, %v122_v6  ;;  %v759_v16 = vsub.f32 %v644_v13, %v121_v9  ;;  %v174_v12 = vsel %vm58_vm0, %v150_v11, 0.0 }
  0x93   :  { %v752_v0 = vsub.f32 %v649_v14, %v120_v8 }
  0x94   :  { %v154_v15 = vmul.f32 %v749_v10, %v749_v10  ;;  %v153_v31 = vmul.f32 %v759_v16, %v759_v16 }
  0x95   :  { %v152_v17 = vmul.f32 %v752_v0, %v752_v0 }
  0x96   :  { %v186_v21 = vsel %vm58_vm0, %v154_v15, 0.0  ;;  %v183_v36 = vsel %vm58_vm0, %v153_v31, 0.0 }
  0x97   :  { %v94_v22 = vpop.xlane.xlu2 %93  ;;  %187 = vadd.xlane.f32.xlu0 %v186_v21  ;;  %v180_v14 = vsel %vm58_vm0, %v152_v17, 0.0  ;;  %v91_v23 = vpop.xlane.xlu1 %90 }
  0x98   :  { %v125_v27 = vmul.f32 %v706_v38, %v94_v22  ;;  %175 = vadd.xlane.f32.xlu2 %v174_v12  ;;  %181 = vadd.xlane.f32.xlu1 %v180_v14  ;;  %v88_v28 = vpop.xlane.xlu0 %87  ;;  %v124_v29 = vmul.f32 %v706_v38, %v91_v23 }
  0x99   :  { %v123_v13 = vmul.f32 %v706_v38, %v88_v28 }
  0x9a   :  { %v772_v32 = vsub.f32 %v660_v18, %v125_v27  ;;  %v780_v35 = vsub.f32 %v665_v19, %v124_v29 }
  0x9b   :  { %v775_v33 = vsub.f32 %v670_v20, %v123_v13 }
  0x9c   :  { %v157_v34 = vmul.f32 %v772_v32, %v772_v32  ;;  %v156_v46 = vmul.f32 %v780_v35, %v780_v35 }
  0x9d   :  { %v155_v37 = vmul.f32 %v775_v33, %v775_v33 }
  0x9e   :  { %v195_v39 = vsel %vm58_vm0, %v157_v34, 0.0  ;;  %v192_v51 = vsel %vm58_vm0, %v156_v46, 0.0 }
  0x9f   :  { %v103_v40 = vpop.xlane.xlu2 %102  ;;  %196 = vadd.xlane.f32.xlu0 %v195_v39  ;;  %v189_v18 = vsel %vm58_vm0, %v155_v37, 0.0  ;;  %v100_v41 = vpop.xlane.xlu1 %99 }
  0xa0   :  { %v128_v20 = vmul.f32 %v706_v38, %v103_v40  ;;  %184 = vadd.xlane.f32.xlu2 %v183_v36  ;;  %190 = vadd.xlane.f32.xlu1 %v189_v18  ;;  %v97_v42 = vpop.xlane.xlu0 %96  ;;  %v127_v43 = vmul.f32 %v706_v38, %v100_v41 }
  0xa1   :  { %v126_v19 = vmul.f32 %v706_v38, %v97_v42 }
  0xa2   :  { %v793_v47 = vsub.f32 %v681_v24, %v128_v20  ;;  %v801_v50 = vsub.f32 %v686_v25, %v127_v43 }
  0xa3   :  { %v796_v48 = vsub.f32 %v691_v26, %v126_v19 }
  0xa4   :  { %v160_v49 = vmul.f32 %v793_v47, %v793_v47  ;;  %v159_v55 = vmul.f32 %v801_v50, %v801_v50 }
  0xa5   :  { %v158_v52 = vmul.f32 %v796_v48, %v796_v48 }
  0xa6   :  { %v204_v53 = vsel %vm58_vm0, %v160_v49, 0.0  ;;  %v201_v58 = vsel %vm58_vm0, %v159_v55, 0.0 }
  0xa7   :  { %205 = vadd.xlane.f32.xlu0 %v204_v53  ;;  %v198_v24 = vsel %vm58_vm0, %v158_v52, 0.0 }
  0xa8   :  { %193 = vadd.xlane.f32.xlu2 %v192_v51  ;;  %199 = vadd.xlane.f32.xlu1 %v198_v24  ;;  %v106_v26 = vpop.xlane.xlu0 %105  ;;  %v845_v51 = vld [vmem:[#allocation2] ss:$0 sm:$0xff] }
  0xa9   :  { %v129_v54 = vmul.f32 %v706_v38, %v106_v26 }
  0xab   :  { %v812_v25 = vsub.f32 %v702_v30, %v129_v54 }
  0xad   :  { %v161_v60 = vmul.f32 %v812_v25, %v812_v25 }
  0xaf   :  { %v207_v61 = vsel %vm58_vm0, %v161_v60, 0.0  ;;  %v857_v60 = vld [vmem:[#allocation4] ss:$0 sm:$0xff] }
  0xb0   :  { %202 = vadd.xlane.f32.xlu2 %v201_v58  ;;  %208 = vadd.xlane.f32.xlu1 %v207_v61 }
  0xfa   :  { %v170_v62 = vpop.xlane.xlu0 %169 }
  0xfb   :  { %v164_v63 = vpop.xlane.xlu1 %163  ;;  %v212_v1 = vmul.f32 %v170_v62, %v706_v38 }
  0xfc   :  { %v210_v3 = vmul.f32 %v164_v63, %v706_v38 }
  0xfd   :  { %v228_v4 = vadd.f32 1e-05, %v212_v1 }
  0xfe   :  { %v226_v5 = vadd.f32 1e-05, %v210_v3 }
  0xff   :  { %487 = vrsqrt.f32 %v228_v4  ;;  %vm268_vm4 = vweird.f32 %v228_v4 }
 0x100   :  { %489 = vrsqrt.f32 %v226_v5  ;;  %vm248_vm5 = vweird.f32 %v226_v5 }
 0x102   :  { %v179_v30 = vpop.xlane.xlu0 %178 }
 0x103   :  { %v173_v6 = vpop.xlane.xlu1 %172  ;;  %v167_v7 = vpop.xlane.xlu2 %166  ;;  %v215_v8 = vmul.f32 %v179_v30, %v706_v38 }
 0x104   :  { %v213_v9 = vmul.f32 %v173_v6, %v706_v38  ;;  %v211_v11 = vmul.f32 %v167_v7, %v706_v38 }
 0x105   :  { %v488_v15 = vpop.eup %487  ;;  %v823_v17 = vadd.f32 1e-05, %v215_v8 }
 0x106   :  { %v490_v21 = vpop.eup %489  ;;  %v263_v22 = vmul.f32 %v488_v15, %v228_v4  ;;  %v825_v12 = vadd.f32 1e-05, %v213_v9  ;;  %v827_v14 = vadd.f32 1e-05, %v211_v11  ;;  %vm269_vm2 = vweird.f32 %v488_v15 }
 0x107   :  { %v243_v23 = vmul.f32 %v490_v21, %v226_v5  ;;  %491 = vrsqrt.f32 %v823_v17  ;;  %vm249_vm3 = vweird.f32 %v490_v21  ;;  %vm270_vm6 = vmor %vm268_vm4, %vm269_vm2  ;;  %vm298_vm8 = vweird.f32 %v823_v17 }
 0x108   :  { %v264_v27 = vmul.f32 %v488_v15, %v263_v22  ;;  %493 = vrsqrt.f32 %v825_v12  ;;  %vm250_vm7 = vmor %vm248_vm5, %vm249_vm3  ;;  %vm278_vm12 = vweird.f32 %v825_v12  ;;  %vm258_vm13 = vweird.f32 %v827_v14 }
 0x109   :  { %v244_v28 = vmul.f32 %v490_v21, %v243_v23  ;;  %495 = vrsqrt.f32 %v827_v14 }
 0x10a   :  { %v265_v13 = vmul.f32 0.5, %v264_v27  ;;  %v188_v29 = vpop.xlane.xlu0 %187 }
 0x10b   :  { %v245_v31 = vmul.f32 0.5, %v244_v28  ;;  %v176_v34 = vpop.xlane.xlu2 %175  ;;  %v182_v36 = vpop.xlane.xlu1 %181  ;;  %v218_v18 = vmul.f32 %v188_v29, %v706_v38 }
 0x10c   :  { %v266_v37 = vsub.f32 1.5, %v265_v13  ;;  %v214_v39 = vmul.f32 %v176_v34, %v706_v38  ;;  %v216_v40 = vmul.f32 %v182_v36, %v706_v38 }
 0x10d   :  { %v835_v41 = vpop.eup %491  ;;  %v246_v20 = vsub.f32 1.5, %v245_v31  ;;  %v855_v58 = vadd.f32 1e-05, %v218_v18 }
 0x10e   :  { %v837_v42 = vpop.eup %493  ;;  %v267_v19 = vmul.f32 %v488_v15, %v266_v37  ;;  %v293_v43 = vmul.f32 %v835_v41, %v823_v17  ;;  %v841_v46 = vadd.f32 1e-05, %v214_v39  ;;  %v850_v24 = vadd.f32 1e-05, %v216_v40 }
 0x10f   :  { %v843_v49 = vpop.eup %495  ;;  %v247_v52 = vmul.f32 %v490_v21, %v246_v20  ;;  %v273_v53 = vmul.f32 %v837_v42, %v825_v12  ;;  %vm299_vm9 = vweird.f32 %v835_v41  ;;  %vm279_vm10 = vweird.f32 %v837_v42 }
 0x110   :  { %v271_v26 = vsel %vm270_vm6, %v488_v15, %v267_v19  ;;  %v253_v54 = vmul.f32 %v843_v49, %v827_v14  ;;  %v294_v55 = vmul.f32 %v835_v41, %v293_v43  ;;  %497 = vrsqrt.f32 %v841_v46  ;;  %vm300_vm14 = vmor %vm298_vm8, %vm299_vm9 }
 0x111   :  { %v251_v61 = vsel %vm250_vm7, %v490_v21, %v247_v52  ;;  %v404_v62 = vmul.f32 %v271_v26, %v710_v44  ;;  %v274_v63 = vmul.f32 %v837_v42, %v273_v53  ;;  %499 = vrsqrt.f32 %v850_v24  ;;  %vm280_vm15 = vmor %vm278_vm12, %vm279_vm10 }
 0x112   :  { %v402_v1 = vmul.f32 %v251_v61, %v712_v45  ;;  %v254_v3 = vmul.f32 %v843_v49, %v253_v54  ;;  %v295_v4 = vmul.f32 0.5, %v294_v55  ;;  %501 = vrsqrt.f32 %v855_v58  ;;  %v197_v27 = vpop.xlane.xlu0 %196 }
 0x113   :  { %v424_v5 = vmul.f32 %v845_v51, %v404_v62  ;;  %v275_v30 = vmul.f32 0.5, %v274_v63  ;;  %v185_v6 = vpop.xlane.xlu2 %184  ;;  %v191_v15 = vpop.xlane.xlu1 %190  ;;  %vm259_vm11 = vweird.f32 %v843_v49  ;;  %vm288_vm1 = vweird.f32 %v841_v46 }
 0x114   :  { %v422_v44 = vmul.f32 %v845_v51, %v402_v1  ;;  %v255_v7 = vmul.f32 0.5, %v254_v3  ;;  %v296_v8 = vsub.f32 1.5, %v295_v4  ;;  %v217_v11 = vmul.f32 %v185_v6, %v706_v38  ;;  %vm260_vm2 = vmor %vm258_vm13, %vm259_vm11 }
 0x115   :  { %v444_v45 = vadd.f32 %v857_v60, %v424_v5  ;;  %v276_v9 = vsub.f32 1.5, %v275_v30  ;;  %v219_v17 = vmul.f32 %v191_v15, %v706_v38  ;;  %v221_v39 = vmul.f32 %v197_v27, %v706_v38 }
 0x116   :  { %v442_v21 = vadd.f32 %v857_v60, %v422_v44  ;;  %v256_v22 = vsub.f32 1.5, %v255_v7  ;;  %v297_v23 = vmul.f32 %v835_v41, %v296_v8  ;;  %v876_v28 = vpop.eup %497  ;;  %v889_v29 = vadd.f32 1e-05, %v217_v11 }
 0x117   :  { %460 = vst.msk [vmem:[%s1093_s3 + $0x10] sm:$0xff] %vm58_vm0, %v444_v45  ;;  %v277_v13 = vmul.f32 %v837_v42, %v276_v9  ;;  %v283_v14 = vmul.f32 %v876_v28, %v841_v46  ;;  %v903_v34 = vpop.eup %499  ;;  %vm308_vm3 = vweird.f32 %v850_v24  ;;  %vm289_vm4 = vweird.f32 %v876_v28 }
 0x118   :  { %458 = vst.msk [vmem:[%s1093_s3] sm:$0xff] %vm58_vm0, %v442_v21  ;;  %v257_v31 = vmul.f32 %v843_v49, %v256_v22  ;;  %v301_v12 = vsel %vm300_vm14, %v835_v41, %v297_v23  ;;  %503 = vrsqrt.f32 %v889_v29  ;;  %v502_v40 = vpop.eup %501  ;;  %v303_v19 = vmul.f32 %v903_v34, %v850_v24  ;;  %vm290_vm7 = vmor %vm288_vm1, %vm289_vm4 }
 0x119   :  { %v281_v36 = vsel %vm280_vm15, %v837_v42, %v277_v13  ;;  %v407_v37 = vmul.f32 %v301_v12, %v724_v56  ;;  %v284_v20 = vmul.f32 %v876_v28, %v283_v14  ;;  %v323_v56 = vmul.f32 %v502_v40, %v855_v58 }
 0x11a   :  { %v405_v18 = vmul.f32 %v281_v36, %v727_v57  ;;  %v261_v41 = vsel %vm260_vm2, %v843_v49, %v257_v31  ;;  %v304_v57 = vmul.f32 %v903_v34, %v303_v19  ;;  %v928_v1 = vadd.f32 1e-05, %v221_v39  ;;  %v206_v9 = vpop.xlane.xlu0 %205 }
 0x11b   :  { %v403_v42 = vmul.f32 %v261_v41, %v731_v59  ;;  %v427_v43 = vmul.f32 %v845_v51, %v407_v37  ;;  %v194_v52 = vpop.xlane.xlu2 %193  ;;  %v285_v26 = vmul.f32 0.5, %v284_v20  ;;  %v324_v55 = vmul.f32 %v502_v40, %v323_v56  ;;  %v200_v30 = vpop.xlane.xlu1 %199 }
 0x11c   :  { %v425_v53 = vmul.f32 %v845_v51, %v405_v18  ;;  %v925_v59 = vadd.f32 1e-05, %v219_v17  ;;  %v305_v63 = vmul.f32 0.5, %v304_v57  ;;  %vm328_vm5 = vweird.f32 %v855_v58 }
 0x11d   :  { %v423_v49 = vmul.f32 %v845_v51, %v403_v42  ;;  %v447_v54 = vadd.f32 %v857_v60, %v427_v43  ;;  %v286_v62 = vsub.f32 1.5, %v285_v26  ;;  %v325_v5 = vmul.f32 0.5, %v324_v55 }
 0x11e   :  { %v445_v61 = vadd.f32 %v857_v60, %v425_v53  ;;  %v930_v3 = vpop.eup %503  ;;  %505 = vrsqrt.f32 %v925_v59  ;;  %v306_v44 = vsub.f32 1.5, %v305_v63  ;;  %vm309_vm6 = vweird.f32 %v903_v34 }
 0x11f   :  { %v443_v4 = vadd.f32 %v857_v60, %v423_v49  ;;  %463 = vst.msk [vmem:[%s1093_s3 + $0x28] sm:$0xff] %vm58_vm0, %v447_v54  ;;  %v287_v6 = vmul.f32 %v876_v28, %v286_v62  ;;  %v313_v7 = vmul.f32 %v930_v3, %v889_v29  ;;  %v326_v8 = vsub.f32 1.5, %v325_v5  ;;  %vm310_vm9 = vmor %vm308_vm3, %vm309_vm6 }
 0x120   :  { %461 = vst.msk [vmem:[%s1093_s3 + $0x18] sm:$0xff] %vm58_vm0, %v445_v61  ;;  %vm329_vm8 = vweird.f32 %v502_v40  ;;  %507 = vrsqrt.f32 %v928_v1  ;;  %v220_v45 = vmul.f32 %v194_v52, %v706_v38  ;;  %v307_v15 = vmul.f32 %v903_v34, %v306_v44 }
 0x121   :  { %459 = vst.msk [vmem:[%s1093_s3 + $0x8] sm:$0xff] %vm58_vm0, %v443_v4  ;;  %v291_v11 = vsel %vm290_vm7, %v876_v28, %v287_v6  ;;  %v314_v21 = vmul.f32 %v930_v3, %v313_v7  ;;  %v222_v22 = vmul.f32 %v200_v30, %v706_v38  ;;  %v327_v46 = vmul.f32 %v502_v40, %v326_v8  ;;  %vm330_vm11 = vmor %vm328_vm5, %vm329_vm8 }
 0x122   :  { %v406_v23 = vmul.f32 %v291_v11, %v742_v2  ;;  %vm318_vm10 = vweird.f32 %v889_v29  ;;  %v965_v27 = vadd.f32 1e-05, %v220_v45  ;;  %v311_v13 = vsel %vm310_vm9, %v903_v34, %v307_v15 }
 0x123   :  { %v315_v28 = vmul.f32 0.5, %v314_v21  ;;  %v970_v31 = vadd.f32 1e-05, %v222_v22  ;;  %v224_v12 = vmul.f32 %v206_v9, %v706_v38  ;;  %v203_v14 = vpop.xlane.xlu2 %202  ;;  %v408_v17 = vmul.f32 %v311_v13, %v752_v0  ;;  %v209_v57 = vpop.xlane.xlu1 %208 }
 0x124   :  { %v506_v2 = vpop.eup %505  ;;  %v426_v24 = vmul.f32 %v845_v51, %v406_v23  ;;  %v331_v36 = vsel %vm330_vm11, %v502_v40, %v327_v46  ;;  %509 = vrsqrt.f32 %v965_v27  ;;  %vm319_vm12 = vweird.f32 %v930_v3 }
 0x125   :  { %v410_v37 = vmul.f32 %v331_v36, %v749_v10  ;;  %v316_v34 = vsub.f32 1.5, %v315_v28  ;;  %v333_v58 = vmul.f32 %v506_v2, %v925_v59  ;;  %v428_v41 = vmul.f32 %v845_v51, %v408_v17  ;;  %vm320_vm13 = vmor %vm318_vm10, %vm319_vm12 }
 0x126   :  { %v508_v39 = vpop.eup %507  ;;  %v446_v18 = vadd.f32 %v857_v60, %v426_v24  ;;  %511 = vrsqrt.f32 %v970_v31  ;;  %v223_v20 = vmul.f32 %v203_v14, %v706_v38  ;;  %vm338_vm14 = vweird.f32 %v925_v59 }
 0x127   :  { %v430_v0 = vmul.f32 %v845_v51, %v410_v37  ;;  %v317_v40 = vmul.f32 %v930_v3, %v316_v34  ;;  %v334_v19 = vmul.f32 %v506_v2, %v333_v58  ;;  %v353_v10 = vmul.f32 %v508_v39, %v928_v1 }
 0x128   :  { %462 = vst.msk [vmem:[%s1093_s3 + $0x20] sm:$0xff] %vm58_vm0, %v446_v18  ;;  %v448_v42 = vadd.f32 %v857_v60, %v428_v41  ;;  %v994_v43 = vadd.f32 1e-05, %v224_v12  ;;  %vm358_vm15 = vweird.f32 %v928_v1  ;;  %v1005_v54 = vadd.f32 1e-05, %v223_v20 }
 0x129   :  { %v450_v56 = vadd.f32 %v857_v60, %v430_v0  ;;  %v321_v52 = vsel %vm320_vm13, %v930_v3, %v317_v40  ;;  %v335_v53 = vmul.f32 0.5, %v334_v19  ;;  %v354_v26 = vmul.f32 %v508_v39, %v353_v10 }
 0x12a   :  { %v510_v49 = vpop.eup %509  ;;  %464 = vst.msk [vmem:[%s1093_s3 + $0x30] sm:$0xff] %vm58_vm0, %v448_v42  ;;  %v409_v29 = vmul.f32 %v321_v52, %v759_v16  ;;  %513 = vrsqrt.f32 %v994_v43  ;;  %vm339_vm1 = vweird.f32 %v506_v2  ;;  %vm359_vm2 = vweird.f32 %v508_v39 }
 0x12b   :  { %466 = vst.msk [vmem:[%s1093_s3 + $0x40] sm:$0xff] %vm58_vm0, %v450_v56  ;;  %v336_v55 = vsub.f32 1.5, %v335_v53  ;;  %v355_v61 = vmul.f32 0.5, %v354_v26  ;;  %v343_v62 = vmul.f32 %v510_v49, %v965_v27  ;;  %515 = vrsqrt.f32 %v1005_v54  ;;  %vm340_vm3 = vmor %vm338_vm14, %vm339_vm1 }
 0x12c   :  { %v512_v63 = vpop.eup %511  ;;  %v429_v3 = vmul.f32 %v845_v51, %v409_v29  ;;  %v225_v16 = vmul.f32 %v209_v57, %v706_v38  ;;  %vm360_vm4 = vmor %vm358_vm15, %vm359_vm2  ;;  %vm349_vm5 = vweird.f32 %v510_v49  ;;  %vm348_vm6 = vweird.f32 %v965_v27 }
 0x12d   :  { %v337_v4 = vmul.f32 %v506_v2, %v336_v55  ;;  %v356_v5 = vsub.f32 1.5, %v355_v61  ;;  %v344_v30 = vmul.f32 %v510_v49, %v343_v62  ;;  %v363_v6 = vmul.f32 %v512_v63, %v970_v31  ;;  %vm350_vm8 = vmor %vm348_vm6, %vm349_vm5 }
 0x12e   :  { %v449_v44 = vadd.f32 %v857_v60, %v429_v3  ;;  %v1019_v7 = vadd.f32 1e-05, %v225_v16  ;;  %vm369_vm7 = vweird.f32 %v512_v63  ;;  %vm368_vm9 = vweird.f32 %v970_v31 }
 0x12f   :  { %v341_v8 = vsel %vm340_vm3, %v506_v2, %v337_v4  ;;  %v357_v45 = vmul.f32 %v508_v39, %v356_v5  ;;  %v345_v9 = vmul.f32 0.5, %v344_v30  ;;  %v364_v11 = vmul.f32 %v512_v63, %v363_v6  ;;  %vm370_vm10 = vmor %vm368_vm9, %vm369_vm7 }
 0x130   :  { %v514_v15 = vpop.eup %513  ;;  %465 = vst.msk [vmem:[%s1093_s3 + $0x38] sm:$0xff] %vm58_vm0, %v449_v44  ;;  %v411_v38 = vmul.f32 %v341_v8, %v775_v33  ;;  %517 = vrsqrt.f32 %v1019_v7  ;;  %vm388_vm11 = vweird.f32 %v994_v43  ;;  %vm378_vm15 = vweird.f32 %v1005_v54 }
 0x131   :  { %v361_v59 = vsel %vm360_vm4, %v508_v39, %v357_v45  ;;  %v346_v21 = vsub.f32 1.5, %v345_v9  ;;  %v365_v22 = vmul.f32 0.5, %v364_v11  ;;  %v383_v23 = vmul.f32 %v514_v15, %v994_v43  ;;  %v516_v46 = vpop.eup %515 }
 0x132   :  { %v431_v13 = vmul.f32 %v845_v51, %v411_v38  ;;  %v413_v28 = vmul.f32 %v361_v59, %v772_v32  ;;  %v373_v14 = vmul.f32 %v516_v46, %v1005_v54  ;;  %vm389_vm12 = vweird.f32 %v514_v15 }
 0x133   :  { %v347_v33 = vmul.f32 %v510_v49, %v346_v21  ;;  %v366_v12 = vsub.f32 1.5, %v365_v22  ;;  %v384_v1 = vmul.f32 %v514_v15, %v383_v23  ;;  %vm379_vm13 = vweird.f32 %v516_v46  ;;  %vm390_vm14 = vmor %vm388_vm11, %vm389_vm12 }
 0x134   :  { %v451_v2 = vadd.f32 %v857_v60, %v431_v13  ;;  %v433_v24 = vmul.f32 %v845_v51, %v413_v28  ;;  %v374_v32 = vmul.f32 %v516_v46, %v373_v14  ;;  %vm380_vm1 = vmor %vm378_vm15, %vm379_vm13  ;;  %vm398_vm3 = vweird.f32 %v1019_v7 }
 0x135   :  { %v351_v17 = vsel %vm350_vm8, %v510_v49, %v347_v33  ;;  %v367_v36 = vmul.f32 %v512_v63, %v366_v12  ;;  %v385_v37 = vmul.f32 0.5, %v384_v1 }
 0x136   :  { %v518_v34 = vpop.eup %517  ;;  %467 = vst.msk [vmem:[%s1093_s3 + $0x48] sm:$0xff] %vm58_vm0, %v451_v2  ;;  %v453_v27 = vadd.f32 %v857_v60, %v433_v24  ;;  %v412_v58 = vmul.f32 %v351_v17, %v780_v35  ;;  %v375_v18 = vmul.f32 0.5, %v374_v32 }
 0x137   :  { %v371_v31 = vsel %vm370_vm10, %v512_v63, %v367_v36  ;;  %v386_v39 = vsub.f32 1.5, %v385_v37  ;;  %v393_v41 = vmul.f32 %v518_v34, %v1019_v7  ;;  %vm399_vm2 = vweird.f32 %v518_v34 }
 0x138   :  { %469 = vst.msk [vmem:[%s1093_s3 + $0x58] sm:$0xff] %vm58_vm0, %v453_v27  ;;  %v432_v20 = vmul.f32 %v845_v51, %v412_v58  ;;  %v414_v0 = vmul.f32 %v371_v31, %v796_v48  ;;  %v376_v40 = vsub.f32 1.5, %v375_v18  ;;  %vm400_vm4 = vmor %vm398_vm3, %vm399_vm2 }
 0x139   :  { %v387_v35 = vmul.f32 %v514_v15, %v386_v39  ;;  %v394_v19 = vmul.f32 %v518_v34, %v393_v41 }
 0x13a   :  { %v452_v10 = vadd.f32 %v857_v60, %v432_v20  ;;  %v434_v42 = vmul.f32 %v845_v51, %v414_v0  ;;  %v377_v52 = vmul.f32 %v516_v46, %v376_v40 }
 0x13b   :  { %v391_v56 = vsel %vm390_vm14, %v514_v15, %v387_v35  ;;  %v395_v53 = vmul.f32 0.5, %v394_v19 }
 0x13c   :  { %468 = vst.msk [vmem:[%s1093_s3 + $0x50] sm:$0xff] %vm58_vm0, %v452_v10  ;;  %v454_v48 = vadd.f32 %v857_v60, %v434_v42  ;;  %v416_v26 = vmul.f32 %v391_v56, %v793_v47  ;;  %v381_v57 = vsel %vm380_vm1, %v516_v46, %v377_v52 }
 0x13d   :  { %v396_v49 = vsub.f32 1.5, %v395_v53  ;;  %v415_v29 = vmul.f32 %v381_v57, %v801_v50 }
 0x13e   :  { %470 = vst.msk [vmem:[%s1093_s3 + $0x60] sm:$0xff] %vm58_vm0, %v454_v48  ;;  %v436_v43 = vmul.f32 %v845_v51, %v416_v26 }
 0x13f   :  { %v397_v54 = vmul.f32 %v518_v34, %v396_v49  ;;  %v435_v47 = vmul.f32 %v845_v51, %v415_v29 }
 0x140   :  { %v456_v55 = vadd.f32 %v857_v60, %v436_v43 }
 0x141   :  { %v401_v61 = vsel %vm400_vm4, %v518_v34, %v397_v54  ;;  %v455_v62 = vadd.f32 %v857_v60, %v435_v47 }
 0x142   :  { %472 = vst.msk [vmem:[%s1093_s3 + $0x70] sm:$0xff] %vm58_vm0, %v456_v55  ;;  %v417_v63 = vmul.f32 %v401_v61, %v812_v25 }
 0x143   :  { %471 = vst.msk [vmem:[%s1093_s3 + $0x68] sm:$0xff] %vm58_vm0, %v455_v62 }
 0x144   :  { %v437_v50 = vmul.f32 %v845_v51, %v417_v63 }
 0x146   :  { %v457_v3 = vadd.f32 %v857_v60, %v437_v50 }
 0x148   :  { %473 = vst.msk [vmem:[%s1093_s3 + $0x78] sm:$0xff] %vm58_vm0, %v457_v3 }
 0x149   :  { %478 = vsyncpa [#allocation3], 1 }
 0x14a   :  { %479 = vsyncpa [#allocation5], 1 }

// kernel: _lambda_.14
= control target key start
LH: loop header
LB: loop body
LE: loop exit
PB: predicated region body
PF: predicated region fallthrough
CT: control target
= control target key end

     0   :  { %s1038_s15 = smov 0   ;;  %s1040_s16 = smov 0   ;;  %s1196_s0 = inlined_call_operand.vmem [shape: f32[2,2,64,16], index: 0, kind: input, shape index: {}]   ;;  %s1197_s1 = inlined_call_operand.vmem [shape: f32[2,2,64,16], index: 1, kind: input, shape index: {}]   ;;  %s1198_s2 = inlined_call_operand.vmem [shape: f32[2,2,64,16], index: 2, kind: input, shape index: {}]   ;;  %s1199_s3 = inlined_call_operand.vmem [shape: f32[2,64,64], index: 3, kind: input, shape index: {}]   ;;  %s1200_s4 = inlined_call_operand.vmem [shape: f32[2,2,64,16], index: 4, kind: output, shape index: {}]  }
   0x1   :  { %s1042_s17 = smov 0   ;;  %s1044_s18 = smov 0  }
   0x2   :  { %s1046_s19 = smov 0  }
   0x3 LB: > { %s29_s20 = sadd.s32 1, %s1003_s17  ;;  %s33_s21 = sadd.s32 1, %s1007_s18  ;;  %s1011_s19 = sphi %s1046_s19, %s14_s19   ;;  %s1007_s18 = sphi %s1044_s18, %s1204_s18   ;;  %s1003_s17 = sphi %s1042_s17, %s1203_s17   ;;  %s999_s16 = sphi %s1040_s16, %s1202_s16   ;;  %s995_s15 = sphi %s1038_s15, %s1201_s15  }
   0x4   : > { %p31_p0 = scmp.ge.s32.totalorder %s29_s20, 2  ;;  %p843_p1 = scmp.ge.s32.totalorder %s1011_s19, 1 }
   0x5   : > { %p247_p2 = scmp.lt.s32.totalorder %s1011_s19, 5 }
   0x6   : > { %s1206_s20 = smov (%p31_p0, %s29_s20), 0  ;;  %s1208_s21 = smov (!%p31_p0, %s33_s21), %s1007_s18 }
   0x7   : > { %p248_p3 = pnand %p843_p1, %p247_p2  ;;  %p35_p4 = scmp.ge.s32.totalorder %s1208_s21, 2 }
   0x8   : > { %p317_p5 = scmp.lt.s32.totalorder (!%p248_p3), %s999_s16, 1  ;;  %p319_p6 = scmp.lt.s32.totalorder (!%p248_p3), %s995_s15, 1 }
   0x9   : > { %s1210_s21 = smov (%p35_p4, %s1208_s21), 0  ;;  %251 = sbr.rel (%p248_p3) target bundleno = 607 (0x25f), region = 36 }
   0xe   : > { %s1212_s16 = smov (!%p317_p5, %s999_s16), 1  ;;  %s1214_s15 = smov (!%p319_p6, %s995_s15), 1  ;;  %vm412_vm0 = vcmask 130048   ;;  %vm502_vm1 = vcmask 523264  }
   0xf   : > { %s845_s22 = sshll.u32 %s1212_s16, 4  ;;  %s844_s23 = sshll.u32 %s1214_s15, 3 }
  0x10   : > { %s326_s24 = sadd.s32 %s845_s22, %s844_s23  ;;  %s884_s6 = sshll.u32 %s1214_s15, 6 }
  0x11   : > { %s1071_s25 = sshll.u32 %s326_s24, 3  ;;  %s1109_s9 = scalar_lea.vmem %s1199_s3, %s884_s6 }
  0x12   : > { %s338_s28 = scalar_lea.vmem %s1197_s1, %s1071_s25  ;;  %s328_s5 = scalar_lea.vmem %s1196_s0, %s1071_s25  ;;  %v404_v24 = vld [vmem:[%s1109_s9] sm:$0xff]  ;;  %v405_v29 = vld [vmem:[%s1109_s9 + $0x8] sm:$0xff]  ;;  %v406_v37 = vld [vmem:[%s1109_s9 + $0x10] sm:$0xff] }
  0x13   : > { %v395_v0 = vld [vmem:[%s338_s28 + $0x38] sm:$0xff]  ;;  %v394_v1 = vld [vmem:[%s338_s28 + $0x30] sm:$0xff]  ;;  %v393_v2 = vld [vmem:[%s338_s28 + $0x28] sm:$0xff]  ;;  %s1135_s12 = scalar_lea.vmem %s1198_s2, %s1071_s25  ;;  %s370_s15 = scalar_lea.vmem %s1200_s4, %s1071_s25 }
  0x14   : > { %858 = vmatpush.xpose.msk.msra.mxu0 %vm412_vm0, %v395_v0  ;;  %885 = vmatpush.xpose.msk.msra.mxu2 %vm412_vm0, %v395_v0  ;;  %v392_v3 = vld [vmem:[%s338_s28 + $0x20] sm:$0xff]  ;;  %v391_v4 = vld [vmem:[%s338_s28 + $0x18] sm:$0xff]  ;;  %v390_v5 = vld [vmem:[%s338_s28 + $0x10] sm:$0xff] }
  0x15   : > { %v389_v6 = vld [vmem:[%s338_s28 + $0x8] sm:$0xff]  ;;  %v372_v7 = vld [vmem:[%s328_s5] sm:$0xff]  ;;  %v375_v8 = vld [vmem:[%s328_s5 + $0x18] sm:$0xff] }
  0x16   : > { %v388_v9 = vld [vmem:[%s338_s28] sm:$0xff]  ;;  %v380_v10 = vmul.f32 0.25, %v372_v7  ;;  %v383_v11 = vmul.f32 0.25, %v375_v8  ;;  %v373_v12 = vld [vmem:[%s328_s5 + $0x8] sm:$0xff]  ;;  %v374_v17 = vld [vmem:[%s328_s5 + $0x10] sm:$0xff] }
  0x17   : > { %v376_v13 = vld [vmem:[%s328_s5 + $0x20] sm:$0xff]  ;;  %v381_v14 = vmul.f32 0.25, %v373_v12  ;;  %v377_v16 = vld [vmem:[%s328_s5 + $0x28] sm:$0xff]  ;;  %v382_v19 = vmul.f32 0.25, %v374_v17  ;;  %v378_v20 = vld [vmem:[%s328_s5 + $0x30] sm:$0xff] }
  0x18   : > { %859 = vmatpush.xpose.msk.msra.mxu0 %vm412_vm0, %v394_v1  ;;  %886 = vmatpush.xpose.msk.msra.mxu2 %vm412_vm0, %v394_v1  ;;  %v384_v15 = vmul.f32 0.25, %v376_v13  ;;  %v385_v18 = vmul.f32 0.25, %v377_v16  ;;  %v386_v21 = vmul.f32 0.25, %v378_v20  ;;  %v379_v22 = vld [vmem:[%s328_s5 + $0x38] sm:$0xff]  ;;  %v409_v34 = vld [vmem:[%s1109_s9 + $0x28] sm:$0xff]  ;;  %v410_v41 = vld [vmem:[%s1109_s9 + $0x30] sm:$0xff] }
  0x19   : > { %v387_v23 = vmul.f32 0.25, %v379_v22  ;;  %v407_v46 = vld [vmem:[%s1109_s9 + $0x18] sm:$0xff]  ;;  %v408_v47 = vld [vmem:[%s1109_s9 + $0x20] sm:$0xff] }
  0x1a   : > { %v411_v48 = vld [vmem:[%s1109_s9 + $0x38] sm:$0xff] }
  0x1c   : > { %860 = vmatpush.xpose.msk.msra.mxu0 %vm412_vm0, %v393_v2  ;;  %887 = vmatpush.xpose.msk.msra.mxu2 %vm412_vm0, %v393_v2  ;;  %v403_v2 = vld [vmem:[%s1135_s12 + $0x38] sm:$0xff] }
  0x1d   : > { %623 = vmatpush.msra.mxu1 %v403_v2  ;;  %893 = vmatpush.msra.mxu3 %v403_v2 }
  0x20   : > { %861 = vmatpush.xpose.msk.msra.mxu0 %vm412_vm0, %v392_v3  ;;  %888 = vmatpush.xpose.msk.msra.mxu2 %vm412_vm0, %v392_v3  ;;  %v402_v3 = vld [vmem:[%s1135_s12 + $0x30] sm:$0xff] }
  0x21   : > { %624 = vmatpush.msra.mxu1 %v402_v3  ;;  %894 = vmatpush.msra.mxu3 %v402_v3 }
  0x24   : > { %862 = vmatpush.xpose.msk.msra.mxu0 %vm412_vm0, %v391_v4  ;;  %889 = vmatpush.xpose.msk.msra.mxu2 %vm412_vm0, %v391_v4 }
  0x28   : > { %863 = vmatpush.xpose.msk.msra.mxu0 %vm412_vm0, %v390_v5  ;;  %890 = vmatpush.xpose.msk.msra.mxu2 %vm412_vm0, %v390_v5 }
  0x2c   : > { %864 = vmatpush.xpose.msk.msra.mxu0 %vm412_vm0, %v389_v6  ;;  %891 = vmatpush.xpose.msk.msra.mxu2 %vm412_vm0, %v389_v6  ;;  %v401_v6 = vld [vmem:[%s1135_s12 + $0x28] sm:$0xff] }
  0x2d   : > { %625 = vmatpush.msra.mxu1 %v401_v6  ;;  %895 = vmatpush.msra.mxu3 %v401_v6 }
  0x30   : > { %865 = vmatpush.xpose.msk.msra.mxu0 %vm412_vm0, %v388_v9  ;;  %892 = vmatpush.xpose.msk.msra.mxu2 %vm412_vm0, %v388_v9 }
  0x33   : > { %866 = vmatmul.msk.f32.vlgmr.msra.gmra.mxu0 %vm412_vm0, %v380_v10  ;;  %869 = vmatmul.msk.f32.vlgmr.msra.gmra.mxu2 %vm412_vm0, %v383_v11 }
  0x3b   : > { %867 = vmatmul.msk.f32.gmra.mxu0 %vm412_vm0, %v381_v14  ;;  %870 = vmatmul.msk.f32.gmra.mxu2 %vm412_vm0, %v384_v15 }
  0x43   : > { %871 = vmatmul.msk.f32.gmra.mxu2 %vm412_vm0, %v385_v18  ;;  %868 = vmatmul.msk.f32.gmra.mxu0 %vm412_vm0, %v382_v19 }
  0x4b   : > { %872 = vmatmul.msk.f32.gmra.mxu2 %vm412_vm0, %v386_v21 }
  0x53   : > { %873 = vmatmul.msk.f32.gmra.mxu2 %vm412_vm0, %v387_v23 }
  0xb0   : > { %v478_v25 = vpop.f32.mrf.mxu0 }
  0xb1   : > { %v479_v26 = vadd.f32 %v478_v25, %v404_v24 }
  0xb3   : > { %v503_v27 = vsel %vm502_vm1, %v479_v26, -inf }
  0xb4   : > { %504 = vmax.xlane.f32.xlu0 %v503_v27 }
  0xb6   : > { %v487_v28 = vpop.f32.mrf.mxu2 }
  0xb7   : > { %v488_v49 = vadd.f32 %v487_v28, %v407_v46 }
  0xb8   : > { %v481_v30 = vpop.f32.mrf.mxu0 }
  0xb9   : > { %v482_v31 = vadd.f32 %v481_v30, %v405_v29  ;;  %v512_v53 = vsel %vm502_vm1, %v488_v49, -inf }
  0xbb   : > { %v506_v32 = vsel %vm502_vm1, %v482_v31, -inf }
  0xbc   : > { %507 = vmax.xlane.f32.xlu0 %v506_v32 }
  0xbe   : > { %v490_v33 = vpop.f32.mrf.mxu2 }
  0xbf   : > { %v491_v50 = vadd.f32 %v490_v33, %v408_v47 }
  0xc0   : > { %v484_v38 = vpop.f32.mrf.mxu0 }
  0xc1   : > { %v485_v40 = vadd.f32 %v484_v38, %v406_v37  ;;  %v515_v54 = vsel %vm502_vm1, %v491_v50, -inf  ;;  %v398_v37 = vld [vmem:[%s1135_s12 + $0x10] sm:$0xff]  ;;  %v397_v38 = vld [vmem:[%s1135_s12 + $0x8] sm:$0xff] }
  0xc3   : > { %v509_v44 = vsel %vm502_vm1, %v485_v40, -inf }
  0xc6   : > { %v493_v35 = vpop.f32.mrf.mxu2 }
  0xc7   : > { %v494_v36 = vadd.f32 %v493_v35, %v409_v34  ;;  %v400_v35 = vld [vmem:[%s1135_s12 + $0x20] sm:$0xff] }
  0xc8   : > { %626 = vmatpush.msra.mxu1 %v400_v35  ;;  %896 = vmatpush.msra.mxu3 %v400_v35 }
  0xc9   : > { %v518_v39 = vsel %vm502_vm1, %v494_v36, -inf }
  0xca   : > { %519 = vmax.xlane.f32.xlu1 %v518_v39  ;;  %v396_v39 = vld [vmem:[%s1135_s12] sm:$0xff] }
  0xce   : > { %v496_v42 = vpop.f32.mrf.mxu2 }
  0xcf   : > { %v497_v43 = vadd.f32 %v496_v42, %v410_v41 }
  0xd1   : > { %v521_v45 = vsel %vm502_vm1, %v497_v43, -inf }
  0xd2   : > { %522 = vmax.xlane.f32.xlu2 %v521_v45  ;;  %510 = vmax.xlane.f32.xlu1 %v509_v44 }
  0xd6   : > { %v499_v51 = vpop.f32.mrf.mxu2 }
  0xd7   : > { %v500_v52 = vadd.f32 %v499_v51, %v411_v48 }
  0xd9   : > { %v524_v55 = vsel %vm502_vm1, %v500_v52, -inf }
  0xda   : > { %513 = vmax.xlane.f32.xlu2 %v512_v53  ;;  %516 = vmax.xlane.f32.xlu1 %v515_v54 }
  0xdb   : > { %525 = vmax.xlane.f32.xlu0 %v524_v55 }
 0x127   : > { %v505_v56 = vpop.xlane.xlu0 %504 }
 0x128   : > { %v527_v57 = vsub.f32 %v479_v26, %v505_v56 }
 0x12a   : > { %v535_v58 = vmul.f32 1.442695, %v527_v57 }
 0x12c   : > { %941 = vpow2.f32 %v535_v58 }
 0x12f   : > { %v508_v59 = vpop.xlane.xlu0 %507 }
 0x130   : > { %v528_v60 = vsub.f32 %v482_v31, %v508_v59 }
 0x132   : > { %v1127_v61 = vpop.eup %941  ;;  %v537_v62 = vmul.f32 1.442695, %v528_v60 }
 0x133   : > { %v551_v63 = vsel %vm502_vm1, %v1127_v61, 0.0 }
 0x134   : > { %943 = vpow2.f32 %v537_v62  ;;  %552 = vadd.xlane.f32.xlu2 %v551_v63 }
 0x13a   : > { %v1137_v0 = vpop.eup %943 }
 0x13b   : > { %v554_v1 = vsel %vm502_vm1, %v1137_v0, 0.0 }
 0x13c   : > { %555 = vadd.xlane.f32.xlu0 %v554_v1 }
 0x13d   : > { %v520_v4 = vpop.xlane.xlu1 %519 }
 0x13e   : > { %v532_v5 = vsub.f32 %v494_v36, %v520_v4  ;;  %v399_v36 = vld [vmem:[%s1135_s12 + $0x18] sm:$0xff] }
 0x13f   : > { %627 = vmatpush.msra.mxu1 %v399_v36  ;;  %897 = vmatpush.msra.mxu3 %v399_v36 }
 0x140   : > { %v545_v7 = vmul.f32 1.442695, %v532_v5 }
 0x141   : > { %628 = vmatpush.msra.mxu1 %v398_v37  ;;  %898 = vmatpush.msra.mxu3 %v398_v37 }
 0x142   : > { %945 = vpow2.f32 %v545_v7 }
 0x143   : > { %629 = vmatpush.msra.mxu1 %v397_v38  ;;  %899 = vmatpush.msra.mxu3 %v397_v38 }
 0x145   : > { %v523_v8 = vpop.xlane.xlu2 %522  ;;  %v511_v9 = vpop.xlane.xlu1 %510  ;;  %630 = vmatpush.msra.mxu1 %v396_v39  ;;  %900 = vmatpush.msra.mxu3 %v396_v39 }
 0x146   : > { %v533_v10 = vsub.f32 %v497_v43, %v523_v8  ;;  %v529_v11 = vsub.f32 %v485_v40, %v511_v9 }
 0x148   : > { %v1144_v12 = vpop.eup %945  ;;  %v547_v13 = vmul.f32 1.442695, %v533_v10  ;;  %v539_v14 = vmul.f32 1.442695, %v529_v11 }
 0x149   : > { %v566_v15 = vsel %vm502_vm1, %v1144_v12, 0.0 }
 0x14a   : > { %947 = vpow2.f32 %v547_v13  ;;  %567 = vadd.xlane.f32.xlu1 %v566_v15 }
 0x14b   : > { %949 = vpow2.f32 %v539_v14 }
 0x14d   : > { %v514_v16 = vpop.xlane.xlu2 %513  ;;  %v517_v17 = vpop.xlane.xlu1 %516 }
 0x14e   : > { %v530_v18 = vsub.f32 %v488_v49, %v514_v16  ;;  %v531_v19 = vsub.f32 %v491_v50, %v517_v17  ;;  %v526_v20 = vpop.xlane.xlu0 %525 }
 0x14f   : > { %v534_v21 = vsub.f32 %v500_v52, %v526_v20 }
 0x150   : > { %v948_v22 = vpop.eup %947  ;;  %v541_v23 = vmul.f32 1.442695, %v530_v18  ;;  %v543_v24 = vmul.f32 1.442695, %v531_v19 }
 0x151   : > { %v950_v25 = vpop.eup %949  ;;  %v549_v26 = vmul.f32 1.442695, %v534_v21  ;;  %v569_v27 = vsel %vm502_vm1, %v948_v22, 0.0 }
 0x152   : > { %951 = vpow2.f32 %v541_v23  ;;  %v557_v28 = vsel %vm502_vm1, %v950_v25, 0.0  ;;  %570 = vadd.xlane.f32.xlu0 %v569_v27 }
 0x153   : > { %953 = vpow2.f32 %v543_v24  ;;  %558 = vadd.xlane.f32.xlu2 %v557_v28 }
 0x154   : > { %955 = vpow2.f32 %v549_v26 }
 0x158   : > { %v952_v29 = vpop.eup %951 }
 0x159   : > { %v954_v30 = vpop.eup %953  ;;  %v560_v31 = vsel %vm502_vm1, %v952_v29, 0.0 }
 0x15a   : > { %v956_v32 = vpop.eup %955  ;;  %561 = vadd.xlane.f32.xlu1 %v560_v31  ;;  %v563_v33 = vsel %vm502_vm1, %v954_v30, 0.0 }
 0x15b   : > { %564 = vadd.xlane.f32.xlu0 %v563_v33  ;;  %v572_v34 = vsel %vm502_vm1, %v956_v32, 0.0 }
 0x15c   : > { %573 = vadd.xlane.f32.xlu2 %v572_v34 }
 0x1a7   : > { %v553_v40 = vpop.xlane.xlu2 %552 }
 0x1a8   : > { %957 = vrcp.f32 %v553_v40 }
 0x1ae   : > { %v958_v41 = vpop.eup %957 }
 0x1af   : > { %v556_v42 = vpop.xlane.xlu0 %555  ;;  %v583_v43 = vmul.f32 %v958_v41, %v1127_v61 }
 0x1b0   : > { %959 = vrcp.f32 %v556_v42 }
 0x1b1   : > { %874 = vmatmul.msk.f32.vlgmr.msra.gmra.mxu1 %vm502_vm1, %v583_v43 }
 0x1b6   : > { %v960_v44 = vpop.eup %959 }
 0x1b7   : > { %v584_v45 = vmul.f32 %v960_v44, %v1137_v0 }
 0x1b9   : > { %875 = vmatmul.msk.f32.gmra.mxu1 %vm502_vm1, %v584_v45 }
 0x1bd   : > { %v568_v46 = vpop.xlane.xlu1 %567 }
 0x1be   : > { %961 = vrcp.f32 %v568_v46 }
 0x1c4   : > { %v962_v47 = vpop.eup %961 }
 0x1c5   : > { %v571_v48 = vpop.xlane.xlu0 %570  ;;  %v588_v49 = vmul.f32 %v962_v47, %v1144_v12 }
 0x1c6   : > { %v559_v50 = vpop.xlane.xlu2 %558  ;;  %963 = vrcp.f32 %v571_v48 }
 0x1c7   : > { %965 = vrcp.f32 %v559_v50  ;;  %879 = vmatmul.msk.f32.vlgmr.msra.gmra.mxu3 %vm502_vm1, %v588_v49 }
 0x1cc   : > { %v964_v51 = vpop.eup %963 }
 0x1cd   : > { %v966_v52 = vpop.eup %965  ;;  %v562_v53 = vpop.xlane.xlu1 %561  ;;  %v589_v54 = vmul.f32 %v964_v51, %v948_v22 }
 0x1ce   : > { %967 = vrcp.f32 %v562_v53  ;;  %v585_v55 = vmul.f32 %v966_v52, %v950_v25  ;;  %v565_v57 = vpop.xlane.xlu0 %564 }
 0x1cf   : > { %v574_v56 = vpop.xlane.xlu2 %573  ;;  %880 = vmatmul.msk.f32.gmra.mxu3 %vm502_vm1, %v589_v54 }
 0x1d0   : > { %969 = vrcp.f32 %v574_v56  ;;  %876 = vmatmul.msk.f32.gmra.mxu1 %vm502_vm1, %v585_v55 }
 0x1d1   : > { %971 = vrcp.f32 %v565_v57 }
 0x1d4   : > { %v968_v58 = vpop.eup %967 }
 0x1d5   : > { %v586_v59 = vmul.f32 %v968_v58, %v952_v29 }
 0x1d6   : > { %v970_v60 = vpop.eup %969 }
 0x1d7   : > { %v590_v61 = vmul.f32 %v970_v60, %v956_v32  ;;  %v972_v62 = vpop.eup %971 }
 0x1d8   : > { %877 = vmatmul.msk.f32.gmra.mxu1 %vm502_vm1, %v586_v59  ;;  %v587_v63 = vmul.f32 %v972_v62, %v954_v30 }
 0x1d9   : > { %881 = vmatmul.msk.f32.gmra.mxu3 %vm502_vm1, %v590_v61 }
 0x1e0   : > { %878 = vmatmul.msk.f32.gmra.mxu1 %vm502_vm1, %v587_v63 }
 0x22e   : > { %v632_v0 = vpop.f32.mrf.mxu1 }
 0x22f   : > { %656 = vst.msk [vmem:[%s370_s15] sm:$0xff] %vm412_vm0, %v632_v0 }
 0x236   : > { %v635_v1 = vpop.f32.mrf.mxu1 }
 0x237   : > { %657 = vst.msk [vmem:[%s370_s15 + $0x8] sm:$0xff] %vm412_vm0, %v635_v1 }
 0x24a   : > { %v647_v2 = vpop.f32.mrf.mxu3 }
 0x24b   : > { %661 = vst.msk [vmem:[%s370_s15 + $0x28] sm:$0xff] %vm412_vm0, %v647_v2 }
 0x24d   : > { %v638_v3 = vpop.f32.mrf.mxu1 }
 0x24e   : > { %658 = vst.msk [vmem:[%s370_s15 + $0x10] sm:$0xff] %vm412_vm0, %v638_v3 }
 0x252   : > { %v650_v4 = vpop.f32.mrf.mxu3 }
 0x253   : > { %662 = vst.msk [vmem:[%s370_s15 + $0x30] sm:$0xff] %vm412_vm0, %v650_v4 }
 0x255   : > { %v641_v5 = vpop.f32.mrf.mxu1 }
 0x256   : > { %659 = vst.msk [vmem:[%s370_s15 + $0x18] sm:$0xff] %vm412_vm0, %v641_v5 }
 0x25c   : > { %v653_v6 = vpop.f32.mrf.mxu3 }
 0x25d   : > { %663 = vst.msk [vmem:[%s370_s15 + $0x38] sm:$0xff] %vm412_vm0, %v653_v6  ;;  %v644_v7 = vpop.f32.mrf.mxu1 }
 0x25e   : > { %660 = vst.msk [vmem:[%s370_s15 + $0x20] sm:$0xff] %vm412_vm0, %v644_v7 }
 0x25f PF: > { %s14_s19 = sadd.s32 1, %s1011_s19   ;;  %s1201_s15 = smov %s1003_s17 }
 0x260   : > { %p11_p7 = scmp.ge.s32.totalorder %s14_s19, 6   ;;  %s1202_s16 = smov %s1007_s18 }
 0x261   : > { %s1203_s17 = smov %s1206_s20  ;;  %s1204_s18 = smov %s1210_s21 }
 0x262   :  { %13 = sbr.rel (!%p11_p7) target bundleno = 3 (0x3), region = 75 }

// kernel: _lambda_.15
= control target key start
LH: loop header
LB: loop body
LE: loop exit
PB: predicated region body
PF: predicated region fallthrough
CT: control target
= control target key end

     0   :  { %vm41_vm0 = vcmask 261120   ;;  %s470_s1 = inlined_call_operand.vmem [shape: f32[32,32], index: 1, kind: input, shape index: {}]   ;;  %s471_s0 = inlined_call_operand.vmem [shape: f32[128,32], index: 0, kind: input, shape index: {}]   ;;  %s472_s2 = inlined_call_operand.vmem [shape: f32[1,32], index: 2, kind: input, shape index: {}]   ;;  %s473_s3 = inlined_call_operand.vmem [shape: f32[128,32], index: 3, kind: input, shape index: {}]   ;;  %s474_s4 = inlined_call_operand.vmem [shape: f32[128,32], index: 4, kind: output, shape index: {}]  }
   0x1   :  { %v36_v0 = vld [vmem:[%s470_s1 + $0x18] sm:$0xff]  ;;  %v35_v1 = vld [vmem:[%s470_s1 + $0x10] sm:$0xff]  ;;  %v34_v2 = vld [vmem:[%s470_s1 + $0x8] sm:$0xff] }
   0x2   :  { %224 = vmatpush.msra.mxu2 %v36_v0  ;;  %225 = vmatpush.msra.mxu3 %v36_v0  ;;  %v33_v3 = vld [vmem:[%s470_s1] sm:$0xff]  ;;  %v26_v8 = vld [vmem:[%s471_s0 + $0x48] sm:$0xff]  ;;  %v27_v12 = vld [vmem:[%s471_s0 + $0x50] sm:$0xff] }
   0x3   :  { %102 = vmatpush.msra.mxu0 %v36_v0  ;;  %223 = vmatpush.msra.mxu1 %v36_v0  ;;  %v25_v4 = vld [vmem:[%s471_s0 + $0x40] sm:$0xff]  ;;  %v30_v9 = vld [vmem:[%s471_s0 + $0x68] sm:$0xff]  ;;  %v31_v13 = vld [vmem:[%s471_s0 + $0x70] sm:$0xff] }
   0x4   :  { %227 = vmatpush.msra.mxu2 %v35_v1  ;;  %228 = vmatpush.msra.mxu3 %v35_v1  ;;  %v29_v5 = vld [vmem:[%s471_s0 + $0x60] sm:$0xff]  ;;  %v18_v10 = vld [vmem:[%s471_s0 + $0x8] sm:$0xff]  ;;  %v19_v14 = vld [vmem:[%s471_s0 + $0x10] sm:$0xff] }
   0x5   :  { %103 = vmatpush.msra.mxu0 %v35_v1  ;;  %226 = vmatpush.msra.mxu1 %v35_v1  ;;  %v17_v6 = vld [vmem:[%s471_s0] sm:$0xff]  ;;  %v22_v11 = vld [vmem:[%s471_s0 + $0x28] sm:$0xff]  ;;  %v23_v15 = vld [vmem:[%s471_s0 + $0x30] sm:$0xff] }
   0x6   :  { %230 = vmatpush.msra.mxu2 %v34_v2  ;;  %231 = vmatpush.msra.mxu3 %v34_v2  ;;  %v21_v7 = vld [vmem:[%s471_s0 + $0x20] sm:$0xff]  ;;  %v28_v16 = vld [vmem:[%s471_s0 + $0x58] sm:$0xff]  ;;  %v156_v38 = vld [vmem:[%s473_s3 + $0x8] sm:$0xff] }
   0x7   :  { %104 = vmatpush.msra.mxu0 %v34_v2  ;;  %229 = vmatpush.msra.mxu1 %v34_v2  ;;  %v32_v17 = vld [vmem:[%s471_s0 + $0x78] sm:$0xff]  ;;  %v340_v20 = vld [vmem:[%s472_s2] ss:$0 sm:$0xff]  ;;  %v160_v40 = vld [vmem:[%s473_s3 + $0x28] sm:$0xff] }
   0x8   :  { %233 = vmatpush.msra.mxu2 %v33_v3  ;;  %234 = vmatpush.msra.mxu3 %v33_v3  ;;  %v20_v18 = vld [vmem:[%s471_s0 + $0x18] sm:$0xff]  ;;  %v155_v22 = vld [vmem:[%s473_s3] sm:$0xff]  ;;  %v164_v46 = vld [vmem:[%s473_s3 + $0x48] sm:$0xff] }
   0x9   :  { %215 = vmatmul.msk.f32.vlgmr.msra.gmra.mxu2 %vm41_vm0, %v25_v4  ;;  %219 = vmatmul.msk.f32.vlgmr.msra.gmra.mxu3 %vm41_vm0, %v29_v5  ;;  %v24_v19 = vld [vmem:[%s471_s0 + $0x38] sm:$0xff]  ;;  %v159_v24 = vld [vmem:[%s473_s3 + $0x20] sm:$0xff]  ;;  %v168_v48 = vld [vmem:[%s473_s3 + $0x68] sm:$0xff] }
   0xa   :  { %105 = vmatpush.msra.mxu0 %v33_v3  ;;  %232 = vmatpush.msra.mxu1 %v33_v3  ;;  %v163_v30 = vld [vmem:[%s473_s3 + $0x40] sm:$0xff]  ;;  %v157_v54 = vld [vmem:[%s473_s3 + $0x10] sm:$0xff] }
   0xb   :  { %207 = vmatmul.msk.f32.vlgmr.msra.gmra.mxu0 %vm41_vm0, %v17_v6  ;;  %211 = vmatmul.msk.f32.vlgmr.msra.gmra.mxu1 %vm41_vm0, %v21_v7  ;;  %v167_v32 = vld [vmem:[%s473_s3 + $0x60] sm:$0xff]  ;;  %v161_v56 = vld [vmem:[%s473_s3 + $0x30] sm:$0xff]  ;;  %v158_v6 = vld [vmem:[%s473_s3 + $0x18] sm:$0xff] }
   0xc   :  { %v165_v62 = vld [vmem:[%s473_s3 + $0x50] sm:$0xff] }
   0xd   :  { %v169_v0 = vld [vmem:[%s473_s3 + $0x70] sm:$0xff] }
  0x11   :  { %216 = vmatmul.msk.f32.gmra.mxu2 %vm41_vm0, %v26_v8  ;;  %220 = vmatmul.msk.f32.gmra.mxu3 %vm41_vm0, %v30_v9  ;;  %v162_v8 = vld [vmem:[%s473_s3 + $0x38] sm:$0xff] }
  0x13   :  { %208 = vmatmul.msk.f32.gmra.mxu0 %vm41_vm0, %v18_v10  ;;  %212 = vmatmul.msk.f32.gmra.mxu1 %vm41_vm0, %v22_v11 }
  0x19   :  { %217 = vmatmul.msk.f32.gmra.mxu2 %vm41_vm0, %v27_v12  ;;  %221 = vmatmul.msk.f32.gmra.mxu3 %vm41_vm0, %v31_v13 }
  0x1b   :  { %209 = vmatmul.msk.f32.gmra.mxu0 %vm41_vm0, %v19_v14  ;;  %213 = vmatmul.msk.f32.gmra.mxu1 %vm41_vm0, %v23_v15  ;;  %v166_v14 = vld [vmem:[%s473_s3 + $0x58] sm:$0xff] }
  0x21   :  { %218 = vmatmul.msk.f32.gmra.mxu2 %vm41_vm0, %v28_v16  ;;  %222 = vmatmul.msk.f32.gmra.mxu3 %vm41_vm0, %v32_v17  ;;  %v170_v16 = vld [vmem:[%s473_s3 + $0x78] sm:$0xff] }
  0x23   :  { %210 = vmatmul.msk.f32.gmra.mxu0 %vm41_vm0, %v20_v18  ;;  %214 = vmatmul.msk.f32.gmra.mxu1 %vm41_vm0, %v24_v19 }
  0x88   :  { %v107_v21 = vpop.f32.mrf.mxu0  ;;  %v119_v23 = vpop.f32.mrf.mxu1 }
  0x89   :  { %v108_v25 = vadd.f32 %v340_v20, %v107_v21  ;;  %v120_v26 = vadd.f32 %v340_v20, %v119_v23 }
  0x8b   :  { %v171_v27 = vadd.f32 %v155_v22, %v108_v25  ;;  %v175_v28 = vadd.f32 %v159_v24, %v120_v26 }
  0x8c   :  { %v131_v29 = vpop.f32.mrf.mxu2  ;;  %v143_v31 = vpop.f32.mrf.mxu3 }
  0x8d   :  { %187 = vst.msk [vmem:[%s474_s4] sm:$0xff] %vm41_vm0, %v171_v27  ;;  %v132_v33 = vadd.f32 %v340_v20, %v131_v29  ;;  %v144_v34 = vadd.f32 %v340_v20, %v143_v31 }
  0x8e   :  { %191 = vst.msk [vmem:[%s474_s4 + $0x20] sm:$0xff] %vm41_vm0, %v175_v28 }
  0x8f   :  { %v179_v35 = vadd.f32 %v163_v30, %v132_v33  ;;  %v183_v36 = vadd.f32 %v167_v32, %v144_v34 }
  0x90   :  { %v110_v37 = vpop.f32.mrf.mxu0  ;;  %v122_v39 = vpop.f32.mrf.mxu1 }
  0x91   :  { %195 = vst.msk [vmem:[%s474_s4 + $0x40] sm:$0xff] %vm41_vm0, %v179_v35  ;;  %v111_v41 = vadd.f32 %v340_v20, %v110_v37  ;;  %v123_v42 = vadd.f32 %v340_v20, %v122_v39 }
  0x92   :  { %199 = vst.msk [vmem:[%s474_s4 + $0x60] sm:$0xff] %vm41_vm0, %v183_v36 }
  0x93   :  { %v172_v43 = vadd.f32 %v156_v38, %v111_v41  ;;  %v176_v44 = vadd.f32 %v160_v40, %v123_v42 }
  0x94   :  { %v134_v45 = vpop.f32.mrf.mxu2  ;;  %v146_v47 = vpop.f32.mrf.mxu3 }
  0x95   :  { %188 = vst.msk [vmem:[%s474_s4 + $0x8] sm:$0xff] %vm41_vm0, %v172_v43  ;;  %v135_v49 = vadd.f32 %v340_v20, %v134_v45  ;;  %v147_v50 = vadd.f32 %v340_v20, %v146_v47 }
  0x96   :  { %192 = vst.msk [vmem:[%s474_s4 + $0x28] sm:$0xff] %vm41_vm0, %v176_v44 }
  0x97   :  { %v180_v51 = vadd.f32 %v164_v46, %v135_v49  ;;  %v184_v52 = vadd.f32 %v168_v48, %v147_v50 }
  0x98   :  { %v113_v53 = vpop.f32.mrf.mxu0  ;;  %v125_v55 = vpop.f32.mrf.mxu1 }
  0x99   :  { %196 = vst.msk [vmem:[%s474_s4 + $0x48] sm:$0xff] %vm41_vm0, %v180_v51  ;;  %v114_v57 = vadd.f32 %v340_v20, %v113_v53  ;;  %v126_v58 = vadd.f32 %v340_v20, %v125_v55 }
  0x9a   :  { %200 = vst.msk [vmem:[%s474_s4 + $0x68] sm:$0xff] %vm41_vm0, %v184_v52 }
  0x9b   :  { %v173_v59 = vadd.f32 %v157_v54, %v114_v57  ;;  %v177_v60 = vadd.f32 %v161_v56, %v126_v58 }
  0x9c   :  { %v137_v61 = vpop.f32.mrf.mxu2  ;;  %v149_v63 = vpop.f32.mrf.mxu3 }
  0x9d   :  { %189 = vst.msk [vmem:[%s474_s4 + $0x10] sm:$0xff] %vm41_vm0, %v173_v59  ;;  %v138_v1 = vadd.f32 %v340_v20, %v137_v61  ;;  %v150_v2 = vadd.f32 %v340_v20, %v149_v63 }
  0x9e   :  { %193 = vst.msk [vmem:[%s474_s4 + $0x30] sm:$0xff] %vm41_vm0, %v177_v60 }
  0x9f   :  { %v181_v3 = vadd.f32 %v165_v62, %v138_v1  ;;  %v185_v4 = vadd.f32 %v169_v0, %v150_v2 }
  0xa0   :  { %v116_v5 = vpop.f32.mrf.mxu0  ;;  %v128_v7 = vpop.f32.mrf.mxu1 }
  0xa1   :  { %197 = vst.msk [vmem:[%s474_s4 + $0x50] sm:$0xff] %vm41_vm0, %v181_v3  ;;  %v117_v9 = vadd.f32 %v340_v20, %v116_v5  ;;  %v129_v10 = vadd.f32 %v340_v20, %v128_v7 }
  0xa2   :  { %201 = vst.msk [vmem:[%s474_s4 + $0x70] sm:$0xff] %vm41_vm0, %v185_v4 }
  0xa3   :  { %v174_v11 = vadd.f32 %v158_v6, %v117_v9  ;;  %v178_v12 = vadd.f32 %v162_v8, %v129_v10 }
  0xa4   :  { %v140_v13 = vpop.f32.mrf.mxu2  ;;  %v152_v15 = vpop.f32.mrf.mxu3 }
  0xa5   :  { %190 = vst.msk [vmem:[%s474_s4 + $0x18] sm:$0xff] %vm41_vm0, %v174_v11  ;;  %v141_v17 = vadd.f32 %v340_v20, %v140_v13  ;;  %v153_v18 = vadd.f32 %v340_v20, %v152_v15 }
  0xa6   :  { %194 = vst.msk [vmem:[%s474_s4 + $0x38] sm:$0xff] %vm41_vm0, %v178_v12 }
  0xa7   :  { %v182_v19 = vadd.f32 %v166_v14, %v141_v17  ;;  %v186_v21 = vadd.f32 %v170_v16, %v153_v18 }
  0xa9   :  { %198 = vst.msk [vmem:[%s474_s4 + $0x58] sm:$0xff] %vm41_vm0, %v182_v19 }
  0xaa   :  { %202 = vst.msk [vmem:[%s474_s4 + $0x78] sm:$0xff] %vm41_vm0, %v186_v21 }

// kernel: _lambda_.16
= control target key start
LH: loop header
LB: loop body
LE: loop exit
PB: predicated region body
PF: predicated region fallthrough
CT: control target
= control target key end

     0   :  { %vm36_vm0 = vcmask 261120   ;;  %v820_v32 = vmov 32.0   ;;  %s1653_s0 = inlined_call_operand.vmem [shape: f32[128,32], index: 0, kind: input, shape index: {}]   ;;  %s1654_s1 = inlined_call_operand.vmem [shape: f32[1,32], index: 1, kind: input, shape index: {}]   ;;  %s1655_s2 = inlined_call_operand.vmem [shape: f32[1,32], index: 2, kind: input, shape index: {}]   ;;  %s1656_s4 = inlined_call_operand.vmem [shape: f32[1,64], index: 4, kind: input, shape index: {}]   ;;  %s1657_s3 = inlined_call_operand.vmem [shape: f32[32,64], index: 3, kind: input, shape index: {}]   ;;  %s1658_s5 = inlined_call_operand.vmem [shape: f32[128,64], index: 5, kind: output, shape index: {}]  }
   0x1   :  { %v854_v0 = vld [vmem:[%s1653_s0 + $0x48] sm:$0xff]  ;;  %v28_v1 = vld [vmem:[%s1653_s0 + $0x40] sm:$0xff]  ;;  %v890_v12 = vld [vmem:[%s1653_s0 + $0x50] sm:$0xff]  ;;  %754 = vrcp.f32 %v820_v32 }
   0x2   :  { %v20_v2 = vld [vmem:[%s1653_s0] sm:$0xff]  ;;  %v64_v3 = vsel %vm36_vm0, %v854_v0, 0.0  ;;  %v61_v4 = vsel %vm36_vm0, %v28_v1, 0.0  ;;  %v869_v6 = vld [vmem:[%s1653_s0 + $0x68] sm:$0xff]  ;;  %v67_v15 = vsel %vm36_vm0, %v890_v12, 0.0  ;;  %v911_v18 = vld [vmem:[%s1653_s0 + $0x30] sm:$0xff] }
   0x3   :  { %v37_v5 = vsel %vm36_vm0, %v20_v2, 0.0  ;;  %65 = vadd.xlane.f32.xlu2 %v64_v3  ;;  %62 = vadd.xlane.f32.xlu0 %v61_v4  ;;  %v874_v7 = vld [vmem:[%s1653_s0 + $0x60] sm:$0xff]  ;;  %v76_v9 = vsel %vm36_vm0, %v869_v6, 0.0  ;;  %v895_v13 = vld [vmem:[%s1653_s0 + $0x8] sm:$0xff]  ;;  %v916_v19 = vld [vmem:[%s1653_s0 + $0x70] sm:$0xff]  ;;  %v55_v21 = vsel %vm36_vm0, %v911_v18, 0.0 }
   0x4   :  { %38 = vadd.xlane.f32.xlu1 %v37_v5  ;;  %v879_v8 = vld [vmem:[%s1653_s0 + $0x20] sm:$0xff]  ;;  %v73_v10 = vsel %vm36_vm0, %v874_v7, 0.0  ;;  %v900_v14 = vld [vmem:[%s1653_s0 + $0x28] sm:$0xff]  ;;  %v40_v16 = vsel %vm36_vm0, %v895_v13, 0.0  ;;  %v921_v20 = vld [vmem:[%s1653_s0 + $0x10] sm:$0xff]  ;;  %v79_v22 = vsel %vm36_vm0, %v916_v19, 0.0 }
   0x5   :  { %v49_v11 = vsel %vm36_vm0, %v879_v8, 0.0  ;;  %v52_v17 = vsel %vm36_vm0, %v900_v14, 0.0  ;;  %v43_v23 = vsel %vm36_vm0, %v921_v20, 0.0  ;;  %v932_v24 = vld [vmem:[%s1653_s0 + $0x18] sm:$0xff] }
   0x6   :  { %v937_v25 = vld [vmem:[%s1653_s0 + $0x58] sm:$0xff]  ;;  %v46_v27 = vsel %vm36_vm0, %v932_v24, 0.0 }
   0x7   :  { %v942_v26 = vld [vmem:[%s1653_s0 + $0x78] sm:$0xff]  ;;  %v70_v28 = vsel %vm36_vm0, %v937_v25, 0.0  ;;  %v755_v33 = vpop.eup %754 }
   0x8   :  { %v82_v29 = vsel %vm36_vm0, %v942_v26, 0.0  ;;  %v953_v30 = vld [vmem:[%s1653_s0 + $0x38] sm:$0xff]  ;;  %v86_v34 = vmul.f32 32.0, %v755_v33  ;;  %vm90_vm1 = vweird.f32 %v755_v33 }
   0x9   :  { %v58_v31 = vsel %vm36_vm0, %v953_v30, 0.0 }
   0xa   :  { %v87_v35 = vsub.f32 1.0, %v86_v34 }
   0xb   :  { %77 = vadd.xlane.f32.xlu2 %v76_v9  ;;  %74 = vadd.xlane.f32.xlu0 %v73_v10 }
   0xc   :  { %50 = vadd.xlane.f32.xlu1 %v49_v11  ;;  %v88_v36 = vmul.f32 %v755_v33, %v87_v35 }
   0xe   :  { %v89_v37 = vadd.f32 %v755_v33, %v88_v36 }
  0x10   :  { %v957_v38 = vsel %vm90_vm1, %v755_v33, %v89_v37 }
  0x13   :  { %68 = vadd.xlane.f32.xlu2 %v67_v15  ;;  %41 = vadd.xlane.f32.xlu0 %v40_v16 }
  0x14   :  { %53 = vadd.xlane.f32.xlu1 %v52_v17 }
  0x1b   :  { %56 = vadd.xlane.f32.xlu2 %v55_v21  ;;  %80 = vadd.xlane.f32.xlu0 %v79_v22 }
  0x1c   :  { %44 = vadd.xlane.f32.xlu1 %v43_v23 }
  0x23   :  { %47 = vadd.xlane.f32.xlu2 %v46_v27  ;;  %71 = vadd.xlane.f32.xlu0 %v70_v28 }
  0x24   :  { %83 = vadd.xlane.f32.xlu1 %v82_v29 }
  0x2b   :  { %59 = vadd.xlane.f32.xlu0 %v58_v31 }
  0x76   :  { %v66_v39 = vpop.xlane.xlu2 %65  ;;  %v63_v40 = vpop.xlane.xlu0 %62 }
  0x77   :  { %v100_v41 = vmul.f32 %v957_v38, %v63_v40  ;;  %v39_v42 = vpop.xlane.xlu1 %38  ;;  %v101_v56 = vmul.f32 %v957_v38, %v66_v39 }
  0x78   :  { %v92_v43 = vmul.f32 %v957_v38, %v39_v42 }
  0x79   :  { %v961_v44 = vsub.f32 %v28_v1, %v100_v41  ;;  %v991_v63 = vsub.f32 %v854_v0, %v101_v56 }
  0x7a   :  { %v963_v45 = vsub.f32 %v20_v2, %v92_v43 }
  0x7b   :  { %v132_v46 = vmul.f32 %v961_v44, %v961_v44  ;;  %v133_v11 = vmul.f32 %v991_v63, %v991_v63 }
  0x7c   :  { %v124_v47 = vmul.f32 %v963_v45, %v963_v45 }
  0x7d   :  { %v164_v48 = vsel %vm36_vm0, %v132_v46, 0.0  ;;  %v167_v21 = vsel %vm36_vm0, %v133_v11, 0.0 }
  0x7e   :  { %v78_v49 = vpop.xlane.xlu2 %77  ;;  %v75_v50 = vpop.xlane.xlu0 %74  ;;  %165 = vadd.xlane.f32.xlu1 %v164_v48  ;;  %v140_v51 = vsel %vm36_vm0, %v124_v47, 0.0 }
  0x7f   :  { %v105_v52 = vmul.f32 %v957_v38, %v78_v49  ;;  %v104_v53 = vmul.f32 %v957_v38, %v75_v50  ;;  %141 = vadd.xlane.f32.xlu0 %v140_v51  ;;  %v51_v54 = vpop.xlane.xlu1 %50 }
  0x80   :  { %v96_v55 = vmul.f32 %v957_v38, %v51_v54 }
  0x81   :  { %v976_v57 = vsub.f32 %v869_v6, %v105_v52  ;;  %v979_v58 = vsub.f32 %v874_v7, %v104_v53 }
  0x82   :  { %v982_v59 = vsub.f32 %v879_v8, %v96_v55 }
  0x83   :  { %v136_v60 = vmul.f32 %v979_v58, %v979_v58  ;;  %v137_v61 = vmul.f32 %v976_v57, %v976_v57 }
  0x84   :  { %v128_v62 = vmul.f32 %v982_v59, %v982_v59 }
  0x85   :  { %v176_v1 = vsel %vm36_vm0, %v136_v60, 0.0  ;;  %v179_v2 = vsel %vm36_vm0, %v137_v61, 0.0 }
  0x86   :  { %v69_v3 = vpop.xlane.xlu2 %68  ;;  %177 = vadd.xlane.f32.xlu2 %v176_v1  ;;  %v42_v4 = vpop.xlane.xlu0 %41  ;;  %v152_v5 = vsel %vm36_vm0, %v128_v62, 0.0  ;;  %v439_v62 = vld [vmem:[%s1657_s3 + $0x18] sm:$0xff]  ;;  %v437_v1 = vld [vmem:[%s1657_s3 + $0x8] sm:$0xff] }
  0x87   :  { %v102_v6 = vmul.f32 %v957_v38, %v69_v3  ;;  %v93_v7 = vmul.f32 %v957_v38, %v42_v4  ;;  %180 = vadd.xlane.f32.xlu0 %v179_v2  ;;  %153 = vadd.xlane.f32.xlu1 %v152_v5  ;;  %v54_v8 = vpop.xlane.xlu1 %53  ;;  %v436_v3 = vld [vmem:[%s1657_s3] sm:$0xff] }
  0x88   :  { %v97_v9 = vmul.f32 %v957_v38, %v54_v8  ;;  %504 = vmatpush.msra.mxu0 %v439_v62  ;;  %739 = vmatpush.msra.mxu2 %v439_v62 }
  0x89   :  { %v1000_v0 = vsub.f32 %v890_v12, %v102_v6  ;;  %v1003_v10 = vsub.f32 %v895_v13, %v93_v7  ;;  %738 = vmatpush.msra.mxu1 %v439_v62  ;;  %740 = vmatpush.msra.mxu3 %v439_v62 }
  0x8a   :  { %v1012_v17 = vsub.f32 %v900_v14, %v97_v9 }
  0x8b   :  { %v134_v15 = vmul.f32 %v1000_v0, %v1000_v0  ;;  %v125_v16 = vmul.f32 %v1003_v10, %v1003_v10 }
  0x8c   :  { %v129_v29 = vmul.f32 %v1012_v17, %v1012_v17 }
  0x8d   :  { %v170_v12 = vsel %vm36_vm0, %v134_v15, 0.0  ;;  %v143_v22 = vsel %vm36_vm0, %v125_v16, 0.0 }
  0x8e   :  { %v57_v13 = vpop.xlane.xlu2 %56  ;;  %168 = vadd.xlane.f32.xlu2 %v167_v21  ;;  %v81_v23 = vpop.xlane.xlu0 %80  ;;  %v155_v36 = vsel %vm36_vm0, %v129_v29, 0.0 }
  0x8f   :  { %v98_v27 = vmul.f32 %v957_v38, %v57_v13  ;;  %v106_v28 = vmul.f32 %v957_v38, %v81_v23  ;;  %171 = vadd.xlane.f32.xlu0 %v170_v12  ;;  %144 = vadd.xlane.f32.xlu1 %v143_v22  ;;  %v45_v14 = vpop.xlane.xlu1 %44 }
  0x90   :  { %v94_v31 = vmul.f32 %v957_v38, %v45_v14 }
  0x91   :  { %v1023_v32 = vsub.f32 %v911_v18, %v98_v27  ;;  %v1026_v33 = vsub.f32 %v916_v19, %v106_v28 }
  0x92   :  { %v1034_v37 = vsub.f32 %v921_v20, %v94_v31 }
  0x93   :  { %v130_v34 = vmul.f32 %v1023_v32, %v1023_v32  ;;  %v138_v35 = vmul.f32 %v1026_v33, %v1026_v33 }
  0x94   :  { %v126_v43 = vmul.f32 %v1034_v37, %v1034_v37 }
  0x95   :  { %v158_v39 = vsel %vm36_vm0, %v130_v34, 0.0  ;;  %v182_v40 = vsel %vm36_vm0, %v138_v35, 0.0 }
  0x96   :  { %v48_v18 = vpop.xlane.xlu2 %47  ;;  %v72_v41 = vpop.xlane.xlu0 %71  ;;  %156 = vadd.xlane.f32.xlu2 %v155_v36  ;;  %v146_v51 = vsel %vm36_vm0, %v126_v43, 0.0 }
  0x97   :  { %v95_v19 = vmul.f32 %v957_v38, %v48_v18  ;;  %v103_v42 = vmul.f32 %v957_v38, %v72_v41  ;;  %159 = vadd.xlane.f32.xlu0 %v158_v39  ;;  %183 = vadd.xlane.f32.xlu1 %v182_v40  ;;  %v84_v46 = vpop.xlane.xlu1 %83 }
  0x98   :  { %v107_v20 = vmul.f32 %v957_v38, %v84_v46 }
  0x99   :  { %v1044_v47 = vsub.f32 %v932_v24, %v95_v19  ;;  %v1047_v48 = vsub.f32 %v937_v25, %v103_v42 }
  0x9a   :  { %v1055_v52 = vsub.f32 %v942_v26, %v107_v20 }
  0x9b   :  { %v127_v49 = vmul.f32 %v1044_v47, %v1044_v47  ;;  %v135_v50 = vmul.f32 %v1047_v48, %v1047_v48 }
  0x9c   :  { %v139_v55 = vmul.f32 %v1055_v52, %v1055_v52 }
  0x9d   :  { %v149_v53 = vsel %vm36_vm0, %v127_v49, 0.0  ;;  %v173_v54 = vsel %vm36_vm0, %v135_v50, 0.0 }
  0x9e   :  { %v60_v24 = vpop.xlane.xlu0 %59  ;;  %147 = vadd.xlane.f32.xlu2 %v146_v51  ;;  %v185_v60 = vsel %vm36_vm0, %v139_v55, 0.0 }
  0x9f   :  { %v99_v25 = vmul.f32 %v957_v38, %v60_v24  ;;  %150 = vadd.xlane.f32.xlu0 %v149_v53  ;;  %174 = vadd.xlane.f32.xlu1 %v173_v54 }
  0xa1   :  { %v1063_v56 = vsub.f32 %v953_v30, %v99_v25  ;;  %v438_v30 = vld [vmem:[%s1657_s3 + $0x10] sm:$0xff] }
  0xa2   :  { %505 = vmatpush.msra.mxu0 %v438_v30  ;;  %742 = vmatpush.msra.mxu2 %v438_v30 }
  0xa3   :  { %v131_v26 = vmul.f32 %v1063_v56, %v1063_v56  ;;  %741 = vmatpush.msra.mxu1 %v438_v30  ;;  %743 = vmatpush.msra.mxu3 %v438_v30 }
  0xa4   :  { %506 = vmatpush.msra.mxu0 %v437_v1  ;;  %745 = vmatpush.msra.mxu2 %v437_v1 }
  0xa5   :  { %v161_v61 = vsel %vm36_vm0, %v131_v26, 0.0  ;;  %744 = vmatpush.msra.mxu1 %v437_v1  ;;  %746 = vmatpush.msra.mxu3 %v437_v1 }
  0xa6   :  { %186 = vadd.xlane.f32.xlu2 %v185_v60  ;;  %507 = vmatpush.msra.mxu0 %v436_v3 }
  0xa7   :  { %162 = vadd.xlane.f32.xlu1 %v161_v61  ;;  %748 = vmatpush.msra.mxu2 %v436_v3 }
  0xa8   :  { %747 = vmatpush.msra.mxu1 %v436_v3  ;;  %749 = vmatpush.msra.mxu3 %v436_v3 }
  0xf1   :  { %v166_v2 = vpop.xlane.xlu1 %165 }
  0xf2   :  { %v142_v4 = vpop.xlane.xlu0 %141  ;;  %v196_v5 = vmul.f32 %v166_v2, %v957_v38 }
  0xf3   :  { %v188_v6 = vmul.f32 %v142_v4, %v957_v38 }
  0xf4   :  { %v212_v7 = vadd.f32 1e-05, %v196_v5 }
  0xf5   :  { %v204_v8 = vadd.f32 1e-05, %v188_v6 }
  0xf6   :  { %756 = vrsqrt.f32 %v212_v7  ;;  %vm306_vm6 = vweird.f32 %v212_v7 }
  0xf7   :  { %758 = vrsqrt.f32 %v204_v8  ;;  %vm226_vm2 = vweird.f32 %v204_v8 }
  0xf9   :  { %v178_v9 = vpop.xlane.xlu2 %177 }
  0xfa   :  { %v200_v11 = vmul.f32 %v178_v9, %v957_v38  ;;  %v181_v15 = vpop.xlane.xlu0 %180  ;;  %v154_v16 = vpop.xlane.xlu1 %153 }
  0xfb   :  { %v201_v21 = vmul.f32 %v181_v15, %v957_v38  ;;  %v192_v12 = vmul.f32 %v154_v16, %v957_v38 }
  0xfc   :  { %v1086_v22 = vpop.eup %756  ;;  %v1088_v13 = vadd.f32 1e-05, %v200_v11 }
  0xfd   :  { %v759_v23 = vpop.eup %758  ;;  %v301_v27 = vmul.f32 %v1086_v22, %v212_v7  ;;  %v1091_v28 = vadd.f32 1e-05, %v201_v21  ;;  %v1093_v29 = vadd.f32 1e-05, %v192_v12  ;;  %vm307_vm4 = vweird.f32 %v1086_v22 }
  0xfe   :  { %v221_v14 = vmul.f32 %v759_v23, %v204_v8  ;;  %760 = vrsqrt.f32 %v1088_v13  ;;  %vm227_vm3 = vweird.f32 %v759_v23  ;;  %vm1134_vm7 = vmor %vm306_vm6, %vm307_vm4  ;;  %vm346_vm8 = vweird.f32 %v1088_v13 }
  0xff   :  { %v302_v31 = vmul.f32 %v1086_v22, %v301_v27  ;;  %762 = vrsqrt.f32 %v1091_v28  ;;  %vm1125_vm5 = vmor %vm226_vm2, %vm227_vm3  ;;  %vm356_vm9 = vweird.f32 %v1091_v28  ;;  %vm266_vm10 = vweird.f32 %v1093_v29 }
 0x100   :  { %v222_v34 = vmul.f32 %v759_v23, %v221_v14  ;;  %764 = vrsqrt.f32 %v1093_v29 }
 0x101   :  { %v303_v35 = vmul.f32 0.5, %v302_v31  ;;  %v169_v36 = vpop.xlane.xlu2 %168 }
 0x102   :  { %v223_v39 = vmul.f32 0.5, %v222_v34  ;;  %v197_v40 = vmul.f32 %v169_v36, %v957_v38  ;;  %v172_v18 = vpop.xlane.xlu0 %171  ;;  %v145_v41 = vpop.xlane.xlu1 %144  ;;  %v1163_v36 = vld [vmem:[%s1654_s1] ss:$0 sm:$0xff] }
 0x103   :  { %v304_v19 = vsub.f32 1.5, %v303_v35  ;;  %v198_v42 = vmul.f32 %v172_v18, %v957_v38  ;;  %v189_v53 = vmul.f32 %v145_v41, %v957_v38 }
 0x104   :  { %v1101_v43 = vpop.eup %760  ;;  %v224_v46 = vsub.f32 1.5, %v223_v39  ;;  %v1103_v20 = vadd.f32 1e-05, %v197_v40 }
 0x105   :  { %v1105_v49 = vpop.eup %762  ;;  %v341_v50 = vmul.f32 %v1101_v43, %v1088_v13  ;;  %v1109_v51 = vadd.f32 1e-05, %v198_v42  ;;  %v305_v55 = vmul.f32 %v1086_v22, %v304_v19  ;;  %v1130_v2 = vadd.f32 1e-05, %v189_v53 }
 0x106   :  { %v1112_v54 = vpop.eup %764  ;;  %v225_v24 = vmul.f32 %v759_v23, %v224_v46  ;;  %v351_v25 = vmul.f32 %v1105_v49, %v1091_v28  ;;  %766 = vrsqrt.f32 %v1103_v20  ;;  %vm347_vm11 = vweird.f32 %v1101_v43 }
 0x107   :  { %v342_v26 = vmul.f32 %v1101_v43, %v341_v50  ;;  %v261_v60 = vmul.f32 %v1112_v54, %v1093_v29  ;;  %768 = vrsqrt.f32 %v1109_v51  ;;  %v309_v7 = vsel %vm1134_vm7, %v1086_v22, %v305_v55  ;;  %vm1200_vm2 = vmor %vm346_vm8, %vm347_vm11 }
 0x108   :  { %v352_v61 = vmul.f32 %v1105_v49, %v351_v25  ;;  %v229_v4 = vsel %vm1125_vm5, %v759_v23, %v225_v24  ;;  %770 = vrsqrt.f32 %v1130_v2  ;;  %v388_v39 = vmul.f32 %v309_v7, %v961_v44  ;;  %v1177_v44 = vld [vmem:[%s1655_s2] ss:$0 sm:$0xff] }
 0x109   :  { %v343_v30 = vmul.f32 0.5, %v342_v26  ;;  %v262_v1 = vmul.f32 %v1112_v54, %v261_v60  ;;  %v157_v3 = vpop.xlane.xlu2 %156  ;;  %v380_v14 = vmul.f32 %v229_v4, %v963_v45  ;;  %vm357_vm12 = vweird.f32 %v1105_v49 }
 0x10a   :  { %v353_v6 = vmul.f32 0.5, %v352_v61  ;;  %v160_v8 = vpop.xlane.xlu0 %159  ;;  %v193_v9 = vmul.f32 %v157_v3, %v957_v38  ;;  %v184_v11 = vpop.xlane.xlu1 %183  ;;  %vm267_vm13 = vweird.f32 %v1112_v54  ;;  %vm326_vm14 = vweird.f32 %v1109_v51  ;;  %vm1212_vm3 = vmor %vm356_vm9, %vm357_vm12 }
 0x10b   :  { %v263_v15 = vmul.f32 0.5, %v262_v1  ;;  %v194_v21 = vmul.f32 %v160_v8, %v957_v38  ;;  %v344_v23 = vsub.f32 1.5, %v343_v30  ;;  %v202_v22 = vmul.f32 %v184_v11, %v957_v38  ;;  %vm1243_vm5 = vmor %vm266_vm10, %vm267_vm13 }
 0x10c   :  { %v1144_v16 = vpop.eup %766  ;;  %v1149_v12 = vadd.f32 1e-05, %v193_v9  ;;  %v354_v34 = vsub.f32 1.5, %v353_v6  ;;  %vm316_vm15 = vweird.f32 %v1103_v20  ;;  %vm236_vm1 = vweird.f32 %v1130_v2 }
 0x10d   :  { %v311_v27 = vmul.f32 %v1144_v16, %v1103_v20  ;;  %v1155_v31 = vpop.eup %768  ;;  %v1157_v35 = vadd.f32 1e-05, %v194_v21  ;;  %v264_v40 = vsub.f32 1.5, %v263_v15  ;;  %v1182_v19 = vmul.f32 %v1101_v43, %v344_v23 }
 0x10e   :  { %772 = vrsqrt.f32 %v1149_v12  ;;  %v321_v45 = vmul.f32 %v1155_v31, %v1109_v51  ;;  %v1179_v41 = vpop.eup %770  ;;  %v1186_v50 = vadd.f32 1e-05, %v202_v22  ;;  %v1189_v24 = vmul.f32 %v1105_v49, %v354_v34 }
 0x10f   :  { %v312_v18 = vmul.f32 %v1144_v16, %v311_v27  ;;  %774 = vrsqrt.f32 %v1157_v35  ;;  %v231_v25 = vmul.f32 %v1179_v41, %v1130_v2  ;;  %v400_v55 = vmul.f32 %v1163_v36, %v380_v14 }
 0x110   :  { %v322_v46 = vmul.f32 %v1155_v31, %v321_v45  ;;  %v408_v26 = vmul.f32 %v1163_v36, %v388_v39  ;;  %v265_v30 = vmul.f32 %v1112_v54, %v264_v40  ;;  %776 = vrsqrt.f32 %v1186_v50 }
 0x111   :  { %v313_v42 = vmul.f32 0.5, %v312_v18  ;;  %v148_v53 = vpop.xlane.xlu2 %147  ;;  %v232_v13 = vmul.f32 %v1179_v41, %v231_v25  ;;  %v420_v6 = vadd.f32 %v1177_v44, %v400_v55  ;;  %v349_v11 = vsel %vm1200_vm2, %v1101_v43, %v1182_v19 }
 0x112   :  { %v151_v60 = vpop.xlane.xlu0 %150  ;;  %v175_v61 = vpop.xlane.xlu1 %174  ;;  %v323_v3 = vmul.f32 0.5, %v322_v46  ;;  %v428_v8 = vadd.f32 %v1177_v44, %v408_v26  ;;  %vm317_vm4 = vweird.f32 %v1144_v16  ;;  %v190_v27 = vmul.f32 %v148_v53, %v957_v38 }
 0x113   :  { %v314_v1 = vsub.f32 1.5, %v313_v42  ;;  %v191_v9 = vmul.f32 %v151_v60, %v957_v38  ;;  %v233_v21 = vmul.f32 0.5, %v232_v13  ;;  %722 = vmatmul.msk.f32.vlgmr.msra.gmra.mxu0 %vm36_vm0, %v420_v6  ;;  %v199_v22 = vmul.f32 %v175_v61, %v957_v38  ;;  %vm1271_vm9 = vmor %vm316_vm15, %vm317_vm4 }
 0x114   :  { %v1206_v4 = vpop.eup %772  ;;  %v324_v28 = vsub.f32 1.5, %v323_v3  ;;  %730 = vmatmul.msk.f32.vlgmr.msra.gmra.mxu2 %vm36_vm0, %v428_v8  ;;  %v359_v43 = vsel %vm1212_vm3, %v1105_v49, %v1189_v24  ;;  %vm327_vm6 = vweird.f32 %v1155_v31  ;;  %v269_v40 = vsel %vm1243_vm5, %v1112_v54, %v265_v30 }
 0x115   :  { %v271_v7 = vmul.f32 %v1206_v4, %v1149_v12  ;;  %v1227_v15 = vpop.eup %774  ;;  %v1231_v23 = vadd.f32 1e-05, %v191_v9  ;;  %v1248_v34 = vmul.f32 %v1144_v16, %v314_v1  ;;  %v234_v18 = vsub.f32 1.5, %v233_v21  ;;  %vm1289_vm10 = vmor %vm326_vm14, %vm327_vm6 }
 0x116   :  { %v281_v39 = vmul.f32 %v1227_v15, %v1157_v35  ;;  %v1258_v29 = vpop.eup %776  ;;  %vm237_vm7 = vweird.f32 %v1179_v41  ;;  %vm276_vm8 = vweird.f32 %v1149_v12  ;;  %v1263_v42 = vadd.f32 1e-05, %v190_v27 }
 0x117   :  { %v272_v45 = vmul.f32 %v1206_v4, %v271_v7  ;;  %778 = vrsqrt.f32 %v1231_v23  ;;  %v1265_v46 = vadd.f32 1e-05, %v199_v22  ;;  %v1276_v53 = vmul.f32 %v1155_v31, %v324_v28  ;;  %vm1302_vm13 = vmor %vm236_vm1, %vm237_vm7 }
 0x118   :  { %v282_v19 = vmul.f32 %v1227_v15, %v281_v39  ;;  %v235_v25 = vmul.f32 %v1179_v41, %v234_v18  ;;  %v361_v26 = vmul.f32 %v1258_v29, %v1186_v50  ;;  %v319_v61 = vsel %vm1271_vm9, %v1144_v16, %v1248_v34 }
 0x119   :  { %v273_v55 = vmul.f32 0.5, %v272_v45  ;;  %v187_v60 = vpop.xlane.xlu2 %186  ;;  %vm277_vm11 = vweird.f32 %v1206_v4  ;;  %vm366_vm12 = vweird.f32 %v1186_v50  ;;  %780 = vrsqrt.f32 %v1263_v42 }
 0x11a   :  { %v163_v62 = vpop.xlane.xlu1 %162  ;;  %v283_v30 = vmul.f32 0.5, %v282_v19  ;;  %v362_v3 = vmul.f32 %v1258_v29, %v361_v26  ;;  %782 = vrsqrt.f32 %v1265_v46  ;;  %vm286_vm14 = vweird.f32 %v1157_v35  ;;  %vm1343_vm4 = vmor %vm276_vm8, %vm277_vm11 }
 0x11b   :  { %v274_v1 = vsub.f32 1.5, %v273_v55  ;;  %vm287_vm15 = vweird.f32 %v1227_v15  ;;  %v384_v16 = vmul.f32 %v269_v40, %v982_v59  ;;  %v392_v13 = vmul.f32 %v349_v11, %v979_v58 }
 0x11c   :  { %v203_v6 = vmul.f32 %v187_v60, %v957_v38  ;;  %v329_v2 = vsel %vm1289_vm10, %v1155_v31, %v1276_v53  ;;  %v239_v9 = vsel %vm1302_vm13, %v1179_v41, %v235_v25  ;;  %v363_v28 = vmul.f32 0.5, %v362_v3  ;;  %vm1392_vm11 = vmor %vm286_vm14, %vm287_vm15 }
 0x11d   :  { %v1311_v8 = vpop.eup %778  ;;  %v195_v7 = vmul.f32 %v163_v62, %v957_v38  ;;  %v275_v59 = vmul.f32 %v1206_v4, %v274_v1  ;;  %vm367_vm1 = vweird.f32 %v1258_v29  ;;  %vm256_vm2 = vweird.f32 %v1231_v23 }
 0x11e   :  { %v251_v58 = vmul.f32 %v1311_v8, %v1231_v23  ;;  %v404_v11 = vmul.f32 %v1163_v36, %v384_v16  ;;  %v284_v21 = vsub.f32 1.5, %v283_v30  ;;  %v364_v27 = vsub.f32 1.5, %v363_v28  ;;  %vm1364_vm6 = vmor %vm366_vm12, %vm367_vm1 }
 0x11f   :  { %v412_v22 = vmul.f32 %v1163_v36, %v392_v13  ;;  %v1328_v14 = vadd.f32 1e-05, %v203_v6  ;;  %v1330_v41 = vpop.eup %780  ;;  %v1334_v39 = vadd.f32 1e-05, %v195_v7  ;;  %v381_v40 = vmul.f32 %v239_v9, %v1003_v10 }
 0x120   :  { %v252_v38 = vmul.f32 %v1311_v8, %v251_v58  ;;  %v424_v34 = vadd.f32 %v1177_v44, %v404_v11  ;;  %v1337_v18 = vpop.eup %782  ;;  %v365_v19 = vmul.f32 %v1258_v29, %v364_v27  ;;  %v241_v54 = vmul.f32 %v1330_v41, %v1263_v42 }
 0x121   :  { %vm246_vm5 = vweird.f32 %v1263_v42  ;;  %v432_v25 = vadd.f32 %v1177_v44, %v412_v22  ;;  %v279_v10 = vsel %vm1343_vm4, %v1206_v4, %v275_v59  ;;  %v331_v12 = vmul.f32 %v1337_v18, %v1265_v46 }
 0x122   :  { %v253_v55 = vmul.f32 0.5, %v252_v38  ;;  %726 = vmatmul.msk.f32.vlgmr.msra.gmra.mxu1 %vm36_vm0, %v424_v34  ;;  %784 = vrsqrt.f32 %v1328_v14  ;;  %v285_v26 = vmul.f32 %v1227_v15, %v284_v21  ;;  %v242_v4 = vmul.f32 %v1330_v41, %v241_v54 }
 0x123   :  { %vm336_vm7 = vweird.f32 %v1265_v46  ;;  %734 = vmatmul.msk.f32.vlgmr.msra.gmra.mxu3 %vm36_vm0, %v432_v25  ;;  %786 = vrsqrt.f32 %v1334_v39  ;;  %v369_v62 = vsel %vm1364_vm6, %v1258_v29, %v365_v19  ;;  %v332_v1 = vmul.f32 %v1337_v18, %v331_v12 }
 0x124   :  { %v254_v30 = vsub.f32 1.5, %v253_v55  ;;  %v401_v50 = vmul.f32 %v1163_v36, %v381_v40  ;;  %v243_v3 = vmul.f32 0.5, %v242_v4  ;;  %v389_v51 = vmul.f32 %v319_v61, %v991_v63 }
 0x125   :  { %v393_v16 = vmul.f32 %v359_v43, %v976_v57  ;;  %v385_v13 = vmul.f32 %v279_v10, %v1012_v17  ;;  %vm257_vm8 = vweird.f32 %v1311_v8  ;;  %vm247_vm9 = vweird.f32 %v1330_v41 }
 0x126   :  { %v333_v29 = vmul.f32 0.5, %v332_v1  ;;  %v421_v6 = vadd.f32 %v1177_v44, %v401_v50  ;;  %v244_v5 = vsub.f32 1.5, %v243_v3  ;;  %v409_v57 = vmul.f32 %v1163_v36, %v389_v51  ;;  %vm1407_vm12 = vmor %vm256_vm2, %vm257_vm8 }
 0x127   :  { %v413_v17 = vmul.f32 %v1163_v36, %v393_v16  ;;  %v405_v49 = vmul.f32 %v1163_v36, %v385_v13  ;;  %v255_v43 = vmul.f32 %v1311_v8, %v254_v30  ;;  %vm337_vm3 = vweird.f32 %v1337_v18  ;;  %vm248_vm13 = vmor %vm246_vm5, %vm247_vm9 }
 0x128   :  { %v785_v24 = vpop.eup %784  ;;  %v334_v61 = vsub.f32 1.5, %v333_v29  ;;  %723 = vmatmul.msk.f32.gmra.mxu0 %vm36_vm0, %v421_v6  ;;  %v394_v35 = vmul.f32 %v369_v62, %v1026_v33  ;;  %v245_v7 = vmul.f32 %v1330_v41, %v244_v5  ;;  %v429_v58 = vadd.f32 %v1177_v44, %v409_v57  ;;  %vm1435_vm10 = vmor %vm336_vm7, %vm337_vm3 }
 0x129   :  { %v787_v9 = vpop.eup %786  ;;  %v371_v59 = vmul.f32 %v785_v24, %v1328_v14  ;;  %v390_v33 = vmul.f32 %v329_v2, %v1000_v0  ;;  %v289_v23 = vsel %vm1392_vm11, %v1227_v15, %v285_v26  ;;  %v433_v27 = vadd.f32 %v1177_v44, %v413_v17 }
 0x12a   :  { %v335_v11 = vmul.f32 %v1337_v18, %v334_v61  ;;  %v291_v21 = vmul.f32 %v787_v9, %v1334_v39  ;;  %v249_v20 = vsel %vm248_vm13, %v1330_v41, %v245_v7  ;;  %731 = vmatmul.msk.f32.gmra.mxu2 %vm36_vm0, %v429_v58  ;;  %v425_v15 = vadd.f32 %v1177_v44, %v405_v49 }
 0x12b   :  { %v372_v31 = vmul.f32 %v785_v24, %v371_v59  ;;  %735 = vmatmul.msk.f32.gmra.mxu3 %vm36_vm0, %v433_v27  ;;  %v414_v2 = vmul.f32 %v1163_v36, %v394_v35  ;;  %v382_v46 = vmul.f32 %v249_v20, %v1034_v37  ;;  %v259_v22 = vsel %vm1407_vm12, %v1311_v8, %v255_v43 }
 0x12c   :  { %v339_v42 = vsel %vm1435_vm10, %v1337_v18, %v335_v11  ;;  %v292_v53 = vmul.f32 %v787_v9, %v291_v21  ;;  %727 = vmatmul.msk.f32.gmra.mxu1 %vm36_vm0, %v425_v15  ;;  %v410_v38 = vmul.f32 %v1163_v36, %v390_v33  ;;  %v386_v34 = vmul.f32 %v289_v23, %v1023_v32 }
 0x12d   :  { %v373_v41 = vmul.f32 0.5, %v372_v31  ;;  %vm377_vm14 = vweird.f32 %v785_v24  ;;  %vm296_vm15 = vweird.f32 %v1334_v39  ;;  %v402_v18 = vmul.f32 %v1163_v36, %v382_v46 }
 0x12e   :  { %v293_v40 = vmul.f32 0.5, %v292_v53  ;;  %vm297_vm1 = vweird.f32 %v787_v9  ;;  %v406_v37 = vmul.f32 %v1163_v36, %v386_v34  ;;  %v391_v19 = vmul.f32 %v339_v42, %v1047_v48 }
 0x12f   :  { %v374_v45 = vsub.f32 1.5, %v373_v41  ;;  %v434_v54 = vadd.f32 %v1177_v44, %v414_v2  ;;  %v422_v25 = vadd.f32 %v1177_v44, %v402_v18  ;;  %v383_v10 = vmul.f32 %v259_v22, %v1044_v47  ;;  %vm298_vm5 = vmor %vm296_vm15, %vm297_vm1 }
 0x130   :  { %v294_v8 = vsub.f32 1.5, %v293_v40  ;;  %vm376_vm2 = vweird.f32 %v1328_v14  ;;  %v430_v55 = vadd.f32 %v1177_v44, %v410_v38  ;;  %v426_v48 = vadd.f32 %v1177_v44, %v406_v37 }
 0x131   :  { %v375_v32 = vmul.f32 %v785_v24, %v374_v45  ;;  %vm378_vm4 = vmor %vm376_vm2, %vm377_vm14  ;;  %724 = vmatmul.msk.f32.gmra.mxu0 %vm36_vm0, %v422_v25  ;;  %v411_v47 = vmul.f32 %v1163_v36, %v391_v19  ;;  %v403_v14 = vmul.f32 %v1163_v36, %v383_v10 }
 0x132   :  { %v295_v12 = vmul.f32 %v787_v9, %v294_v8  ;;  %732 = vmatmul.msk.f32.gmra.mxu2 %vm36_vm0, %v430_v55 }
 0x133   :  { %v379_v26 = vsel %vm378_vm4, %v785_v24, %v375_v32  ;;  %736 = vmatmul.msk.f32.gmra.mxu3 %vm36_vm0, %v434_v54  ;;  %v431_v30 = vadd.f32 %v1177_v44, %v411_v47  ;;  %v423_v50 = vadd.f32 %v1177_v44, %v403_v14 }
 0x134   :  { %v299_v60 = vsel %vm298_vm5, %v787_v9, %v295_v12  ;;  %v395_v4 = vmul.f32 %v379_v26, %v1055_v52  ;;  %728 = vmatmul.msk.f32.gmra.mxu1 %vm36_vm0, %v426_v48  ;;  %v1487_v52 = vld [vmem:[%s1656_s4] ss:$0 sm:$0xff] }
 0x135   :  { %v387_v62 = vmul.f32 %v299_v60, %v1063_v56 }
 0x136   :  { %v415_v39 = vmul.f32 %v1163_v36, %v395_v4 }
 0x137   :  { %v407_v1 = vmul.f32 %v1163_v36, %v387_v62 }
 0x138   :  { %v435_v3 = vadd.f32 %v1177_v44, %v415_v39 }
 0x139   :  { %v427_v51 = vadd.f32 %v1177_v44, %v407_v1  ;;  %725 = vmatmul.msk.f32.gmra.mxu0 %vm36_vm0, %v423_v50 }
 0x13a   :  { %733 = vmatmul.msk.f32.gmra.mxu2 %vm36_vm0, %v431_v30 }
 0x13b   :  { %737 = vmatmul.msk.f32.gmra.mxu3 %vm36_vm0, %v435_v3 }
 0x13c   :  { %729 = vmatmul.msk.f32.gmra.mxu1 %vm36_vm0, %v427_v51  ;;  %vm701_vm0 = vcmask 523264  }
 0x190   :  { %v509_v56 = vpop.f32.mrf.mxu0 }
 0x191   :  { %v510_v36 = vadd.f32 %v1487_v52, %v509_v56 }
 0x193   :  { %v573_v16 = vmul.f32 0.044715, %v510_v36  ;;  %v557_v58 = vmul.f32 0.5, %v510_v36 }
 0x195   :  { %v589_v13 = vmul.f32 %v573_v16, %v510_v36 }
 0x197   :  { %v533_v29 = vpop.f32.mrf.mxu2  ;;  %v605_v44 = vmul.f32 %v589_v13, %v510_v36 }
 0x198   :  { %v534_v6 = vadd.f32 %v1487_v52, %v533_v29 }
 0x199   :  { %v621_v63 = vadd.f32 %v605_v44, %v510_v36 }
 0x19a   :  { %v581_v5 = vmul.f32 0.044715, %v534_v6  ;;  %v565_v38 = vmul.f32 0.5, %v534_v6 }
 0x19b   :  { %v637_v57 = vmul.f32 0.7978846, %v621_v63 }
 0x19c   :  { %v597_v17 = vmul.f32 %v581_v5, %v534_v6 }
 0x19d   :  { %788 = vtanh.f32 %v637_v57 }
 0x19e   :  { %v613_v49 = vmul.f32 %v597_v17, %v534_v6 }
 0x19f   :  { %v521_v24 = vpop.f32.mrf.mxu1 }
 0x1a0   :  { %v522_v43 = vadd.f32 %v1487_v52, %v521_v24  ;;  %v629_v61 = vadd.f32 %v613_v49, %v534_v6 }
 0x1a2   :  { %v577_v35 = vmul.f32 0.044715, %v522_v43  ;;  %v645_v9 = vmul.f32 0.7978846, %v629_v61  ;;  %v561_v62 = vmul.f32 0.5, %v522_v43 }
 0x1a3   :  { %v789_v7 = vpop.eup %788 }
 0x1a4   :  { %v593_v28 = vmul.f32 %v577_v35, %v522_v43  ;;  %790 = vtanh.f32 %v645_v9  ;;  %v669_v33 = vadd.f32 1.0, %v789_v7 }
 0x1a5   :  { %v512_v59 = vpop.f32.mrf.mxu0 }
 0x1a6   :  { %v609_v23 = vmul.f32 %v593_v28, %v522_v43  ;;  %v545_v11 = vpop.f32.mrf.mxu3  ;;  %v1493_v21 = vadd.f32 %v1487_v52, %v512_v59  ;;  %v685_v20 = vmul.f32 %v669_v33, %v557_v58 }
 0x1a7   :  { %v1496_v27 = vadd.f32 %v1487_v52, %v545_v11 }
 0x1a8   :  { %v625_v0 = vadd.f32 %v609_v23, %v522_v43  ;;  %v574_v31 = vmul.f32 0.044715, %v1493_v21  ;;  %702 = vst.msk [vmem:[%s1658_s5] sm:$0xff] %vm701_vm0, %v685_v20  ;;  %v558_v7 = vmul.f32 0.5, %v1493_v21 }
 0x1a9   :  { %v585_v15 = vmul.f32 0.044715, %v1496_v27  ;;  %v524_v2 = vpop.f32.mrf.mxu1  ;;  %v569_v23 = vmul.f32 0.5, %v1496_v27 }
 0x1aa   :  { %v641_v42 = vmul.f32 0.7978846, %v625_v0  ;;  %v590_v53 = vmul.f32 %v574_v31, %v1493_v21  ;;  %v791_v46 = vpop.eup %790  ;;  %v1507_v41 = vadd.f32 %v1487_v52, %v524_v2 }
 0x1ab   :  { %v601_v22 = vmul.f32 %v585_v15, %v1496_v27  ;;  %v677_v34 = vadd.f32 1.0, %v791_v46 }
 0x1ac   :  { %792 = vtanh.f32 %v641_v42  ;;  %v606_v40 = vmul.f32 %v590_v53, %v1493_v21  ;;  %v578_v45 = vmul.f32 0.044715, %v1507_v41 }
 0x1ad   :  { %v617_v18 = vmul.f32 %v601_v22, %v1496_v27  ;;  %v693_v37 = vmul.f32 %v677_v34, %v565_v38  ;;  %v536_v8 = vpop.f32.mrf.mxu2 }
 0x1ae   :  { %v622_v19 = vadd.f32 %v606_v40, %v1493_v21  ;;  %v1515_v25 = vadd.f32 %v1487_v52, %v536_v8  ;;  %v548_v10 = vpop.f32.mrf.mxu3  ;;  %v594_v32 = vmul.f32 %v578_v45, %v1507_v41  ;;  %v515_v55 = vpop.f32.mrf.mxu0 }
 0x1af   :  { %v633_v54 = vadd.f32 %v617_v18, %v1496_v27  ;;  %710 = vst.msk [vmem:[%s1658_s5 + $0x40] sm:$0xff] %vm701_vm0, %v693_v37  ;;  %v1523_v26 = vadd.f32 %v1487_v52, %v548_v10  ;;  %v1526_v48 = vadd.f32 %v1487_v52, %v515_v55  ;;  %v562_v18 = vmul.f32 0.5, %v1507_v41 }
 0x1b0   :  { %v638_v12 = vmul.f32 0.7978846, %v622_v19  ;;  %v582_v60 = vmul.f32 0.044715, %v1515_v25  ;;  %v610_v14 = vmul.f32 %v594_v32, %v1507_v41 }
 0x1b1   :  { %v649_v47 = vmul.f32 0.7978846, %v633_v54  ;;  %v586_v39 = vmul.f32 0.044715, %v1523_v26  ;;  %v527_v30 = vpop.f32.mrf.mxu1  ;;  %v575_v56 = vmul.f32 0.044715, %v1526_v48 }
 0x1b2   :  { %v793_v4 = vpop.eup %792  ;;  %794 = vtanh.f32 %v638_v12  ;;  %v598_v50 = vmul.f32 %v582_v60, %v1515_v25  ;;  %v626_v3 = vadd.f32 %v610_v14, %v1507_v41  ;;  %v1536_v36 = vadd.f32 %v1487_v52, %v527_v30 }
 0x1b3   :  { %v673_v1 = vadd.f32 1.0, %v793_v4  ;;  %796 = vtanh.f32 %v649_v47  ;;  %v602_v51 = vmul.f32 %v586_v39, %v1523_v26  ;;  %v591_v63 = vmul.f32 %v575_v56, %v1526_v48 }
 0x1b4   :  { %v614_v13 = vmul.f32 %v598_v50, %v1515_v25  ;;  %v642_v29 = vmul.f32 0.7978846, %v626_v3  ;;  %v579_v5 = vmul.f32 0.044715, %v1536_v36  ;;  %v566_v14 = vmul.f32 0.5, %v1515_v25 }
 0x1b5   :  { %v689_v16 = vmul.f32 %v673_v1, %v561_v62  ;;  %v618_v44 = vmul.f32 %v602_v51, %v1523_v26  ;;  %v539_v6 = vpop.f32.mrf.mxu2  ;;  %v607_v35 = vmul.f32 %v591_v63, %v1526_v48  ;;  %v570_v4 = vmul.f32 0.5, %v1523_v26 }
 0x1b6   :  { %v630_v57 = vadd.f32 %v614_v13, %v1515_v25  ;;  %798 = vtanh.f32 %v642_v29  ;;  %v1548_v17 = vadd.f32 %v1487_v52, %v539_v6  ;;  %v551_v49 = vpop.f32.mrf.mxu3  ;;  %v595_v9 = vmul.f32 %v579_v5, %v1536_v36  ;;  %v518_v31 = vpop.f32.mrf.mxu0 }
 0x1b7   :  { %706 = vst.msk [vmem:[%s1658_s5 + $0x20] sm:$0xff] %vm701_vm0, %v689_v16  ;;  %v634_v43 = vadd.f32 %v618_v44, %v1523_v26  ;;  %v1552_v61 = vadd.f32 %v1487_v52, %v551_v49  ;;  %v623_v53 = vadd.f32 %v607_v35, %v1526_v48  ;;  %v1570_v40 = vadd.f32 %v1487_v52, %v518_v31 }
 0x1b8   :  { %v795_v24 = vpop.eup %794  ;;  %v646_v58 = vmul.f32 0.7978846, %v630_v57  ;;  %v583_v33 = vmul.f32 0.044715, %v1548_v17  ;;  %v611_v46 = vmul.f32 %v595_v9, %v1536_v36  ;;  %v559_v57 = vmul.f32 0.5, %v1526_v48 }
 0x1b9   :  { %v797_v28 = vpop.eup %796  ;;  %v670_v59 = vadd.f32 1.0, %v795_v24  ;;  %v650_v20 = vmul.f32 0.7978846, %v634_v43  ;;  %v587_v0 = vmul.f32 0.044715, %v1552_v61  ;;  %v530_v22 = vpop.f32.mrf.mxu1 }
 0x1ba   :  { %v681_v11 = vadd.f32 1.0, %v797_v28  ;;  %800 = vtanh.f32 %v646_v58  ;;  %v599_v42 = vmul.f32 %v583_v33, %v1548_v17  ;;  %v639_v34 = vmul.f32 0.7978846, %v623_v53 }
 0x1bb   :  { %v686_v15 = vmul.f32 %v670_v59, %v558_v7  ;;  %802 = vtanh.f32 %v650_v20  ;;  %v603_v21 = vmul.f32 %v587_v0, %v1552_v61  ;;  %v627_v19 = vadd.f32 %v611_v46, %v1536_v36 }
 0x1bc   :  { %v697_v2 = vmul.f32 %v681_v11, %v569_v23  ;;  %v799_v38 = vpop.eup %798  ;;  %v615_v27 = vmul.f32 %v599_v42, %v1548_v17  ;;  %804 = vtanh.f32 %v639_v34  ;;  %v1584_v32 = vadd.f32 %v1487_v52, %v530_v22 }
 0x1bd   :  { %703 = vst.msk [vmem:[%s1658_s5 + $0x8] sm:$0xff] %vm701_vm0, %v686_v15  ;;  %v674_v45 = vadd.f32 1.0, %v799_v38  ;;  %v619_v37 = vmul.f32 %v603_v21, %v1552_v61  ;;  %v542_v8 = vpop.f32.mrf.mxu2  ;;  %v643_v47 = vmul.f32 0.7978846, %v627_v19  ;;  %v576_v41 = vmul.f32 0.044715, %v1570_v40 }
 0x1be   :  { %714 = vst.msk [vmem:[%s1658_s5 + $0x60] sm:$0xff] %vm701_vm0, %v697_v2  ;;  %v631_v54 = vadd.f32 %v615_v27, %v1548_v17  ;;  %v1581_v10 = vadd.f32 %v1487_v52, %v542_v8  ;;  %v554_v30 = vpop.f32.mrf.mxu3  ;;  %v580_v26 = vmul.f32 0.044715, %v1584_v32  ;;  %v563_v7 = vmul.f32 0.5, %v1536_v36 }
 0x1bf   :  { %v690_v55 = vmul.f32 %v674_v45, %v562_v18  ;;  %v635_v12 = vadd.f32 %v619_v37, %v1552_v61  ;;  %806 = vtanh.f32 %v643_v47  ;;  %v592_v51 = vmul.f32 %v576_v41, %v1570_v40 }
 0x1c0   :  { %v801_v60 = vpop.eup %800  ;;  %v647_v62 = vmul.f32 0.7978846, %v631_v54  ;;  %v584_v39 = vmul.f32 0.044715, %v1581_v10  ;;  %v555_v29 = vadd.f32 %v1487_v52, %v554_v30  ;;  %v596_v5 = vmul.f32 %v580_v26, %v1584_v32 }
 0x1c1   :  { %v803_v1 = vpop.eup %802  ;;  %v678_v50 = vadd.f32 1.0, %v801_v60  ;;  %707 = vst.msk [vmem:[%s1658_s5 + $0x28] sm:$0xff] %vm701_vm0, %v690_v55  ;;  %v651_v3 = vmul.f32 0.7978846, %v635_v12  ;;  %v608_v13 = vmul.f32 %v592_v51, %v1570_v40  ;;  %v567_v33 = vmul.f32 0.5, %v1548_v17 }
 0x1c2   :  { %v682_v56 = vadd.f32 1.0, %v803_v1  ;;  %808 = vtanh.f32 %v647_v62  ;;  %v600_v25 = vmul.f32 %v584_v39, %v1581_v10  ;;  %v805_v44 = vpop.eup %804  ;;  %v588_v43 = vmul.f32 0.044715, %v555_v29 }
 0x1c3   :  { %v694_v16 = vmul.f32 %v678_v50, %v566_v14  ;;  %810 = vtanh.f32 %v651_v3  ;;  %v671_v49 = vadd.f32 1.0, %v805_v44  ;;  %v624_v24 = vadd.f32 %v608_v13, %v1570_v40 }
 0x1c4   :  { %v698_v6 = vmul.f32 %v682_v56, %v570_v4  ;;  %v616_v63 = vmul.f32 %v600_v25, %v1581_v10  ;;  %v612_v35 = vmul.f32 %v596_v5, %v1584_v32  ;;  %v604_v58 = vmul.f32 %v588_v43, %v555_v29 }
 0x1c5   :  { %711 = vst.msk [vmem:[%s1658_s5 + $0x48] sm:$0xff] %vm701_vm0, %v694_v16  ;;  %v807_v9 = vpop.eup %806  ;;  %v687_v28 = vmul.f32 %v671_v49, %v559_v57  ;;  %v640_v59 = vmul.f32 0.7978846, %v624_v24  ;;  %v571_v15 = vmul.f32 0.5, %v1552_v61  ;;  %v560_v27 = vmul.f32 0.5, %v1570_v40 }
 0x1c6   :  { %715 = vst.msk [vmem:[%s1658_s5 + $0x68] sm:$0xff] %vm701_vm0, %v698_v6  ;;  %v632_v52 = vadd.f32 %v616_v63, %v1581_v10  ;;  %v675_v23 = vadd.f32 1.0, %v807_v9  ;;  %v628_v20 = vadd.f32 %v612_v35, %v1584_v32  ;;  %v620_v36 = vmul.f32 %v604_v58, %v555_v29 }
 0x1c7   :  { %704 = vst.msk [vmem:[%s1658_s5 + $0x10] sm:$0xff] %vm701_vm0, %v687_v28  ;;  %812 = vtanh.f32 %v640_v59  ;;  %v568_v18 = vmul.f32 0.5, %v1581_v10  ;;  %v564_v54 = vmul.f32 0.5, %v1584_v32  ;;  %v572_v10 = vmul.f32 0.5, %v555_v29 }
 0x1c8   :  { %v809_v48 = vpop.eup %808  ;;  %v648_v11 = vmul.f32 0.7978846, %v632_v52  ;;  %v691_v53 = vmul.f32 %v675_v23, %v563_v7  ;;  %v644_v2 = vmul.f32 0.7978846, %v628_v20  ;;  %v636_v21 = vadd.f32 %v620_v36, %v555_v29 }
 0x1c9   :  { %v811_v0 = vpop.eup %810  ;;  %v679_v31 = vadd.f32 1.0, %v809_v48 }
 0x1ca   :  { %v683_v42 = vadd.f32 1.0, %v811_v0  ;;  %814 = vtanh.f32 %v648_v11  ;;  %708 = vst.msk [vmem:[%s1658_s5 + $0x30] sm:$0xff] %vm701_vm0, %v691_v53  ;;  %v652_v61 = vmul.f32 0.7978846, %v636_v21 }
 0x1cb   :  { %v695_v17 = vmul.f32 %v679_v31, %v567_v33  ;;  %816 = vtanh.f32 %v644_v2 }
 0x1cc   :  { %v699_v46 = vmul.f32 %v683_v42, %v571_v15  ;;  %818 = vtanh.f32 %v652_v61 }
 0x1cd   :  { %712 = vst.msk [vmem:[%s1658_s5 + $0x50] sm:$0xff] %vm701_vm0, %v695_v17  ;;  %v813_v22 = vpop.eup %812 }
 0x1ce   :  { %716 = vst.msk [vmem:[%s1658_s5 + $0x70] sm:$0xff] %vm701_vm0, %v699_v46  ;;  %v672_v34 = vadd.f32 1.0, %v813_v22 }
 0x1d0   :  { %v815_v38 = vpop.eup %814  ;;  %v688_v19 = vmul.f32 %v672_v34, %v560_v27 }
 0x1d1   :  { %v680_v45 = vadd.f32 1.0, %v815_v38  ;;  %v817_v37 = vpop.eup %816 }
 0x1d2   :  { %v676_v55 = vadd.f32 1.0, %v817_v37  ;;  %705 = vst.msk [vmem:[%s1658_s5 + $0x18] sm:$0xff] %vm701_vm0, %v688_v19  ;;  %v819_v12 = vpop.eup %818 }
 0x1d3   :  { %v696_v8 = vmul.f32 %v680_v45, %v568_v18  ;;  %v684_v47 = vadd.f32 1.0, %v819_v12 }
 0x1d4   :  { %v692_v40 = vmul.f32 %v676_v55, %v564_v54 }
 0x1d5   :  { %713 = vst.msk [vmem:[%s1658_s5 + $0x58] sm:$0xff] %vm701_vm0, %v696_v8  ;;  %v700_v32 = vmul.f32 %v684_v47, %v572_v10 }
 0x1d6   :  { %709 = vst.msk [vmem:[%s1658_s5 + $0x38] sm:$0xff] %vm701_vm0, %v692_v40 }
 0x1d7   :  { %717 = vst.msk [vmem:[%s1658_s5 + $0x78] sm:$0xff] %vm701_vm0, %v700_v32 }

// kernel: _lambda_.17
= control target key start
LH: loop header
LB: loop body
LE: loop exit
PB: predicated region body
PF: predicated region fallthrough
CT: control target
= control target key end

     0   :  { %vm45_vm0 = vcmask 523264   ;;  %vm191_vm1 = vcmask 261120   ;;  %s499_s1 = inlined_call_operand.vmem [shape: f32[64,32], index: 1, kind: input, shape index: {}]   ;;  %s500_s2 = inlined_call_operand.vmem [shape: f32[1,32], index: 2, kind: input, shape index: {}]   ;;  %s501_s0 = inlined_call_operand.vmem [shape: f32[128,64], index: 0, kind: input, shape index: {}]   ;;  %s502_s3 = inlined_call_operand.vmem [shape: f32[128,32], index: 3, kind: input, shape index: {}]   ;;  %s503_s4 = inlined_call_operand.vmem [shape: f32[128,32], index: 4, kind: output, shape index: {}]  }
   0x1   :  { %v40_v0 = vld [vmem:[%s499_s1 + $0x38] sm:$0xff]  ;;  %v39_v1 = vld [vmem:[%s499_s1 + $0x30] sm:$0xff]  ;;  %v38_v2 = vld [vmem:[%s499_s1 + $0x28] sm:$0xff] }
   0x2   :  { %229 = vmatpush.msra.mxu2 %v40_v0  ;;  %230 = vmatpush.msra.mxu3 %v40_v0  ;;  %v37_v3 = vld [vmem:[%s499_s1 + $0x20] sm:$0xff]  ;;  %v36_v4 = vld [vmem:[%s499_s1 + $0x18] sm:$0xff]  ;;  %v35_v5 = vld [vmem:[%s499_s1 + $0x10] sm:$0xff] }
   0x3   :  { %102 = vmatpush.msra.mxu0 %v40_v0  ;;  %228 = vmatpush.msra.mxu1 %v40_v0  ;;  %v34_v6 = vld [vmem:[%s499_s1 + $0x8] sm:$0xff]  ;;  %v33_v7 = vld [vmem:[%s499_s1] sm:$0xff]  ;;  %v27_v16 = vld [vmem:[%s501_s0 + $0x50] sm:$0xff] }
   0x4   :  { %232 = vmatpush.msra.mxu2 %v39_v1  ;;  %233 = vmatpush.msra.mxu3 %v39_v1  ;;  %v25_v8 = vld [vmem:[%s501_s0 + $0x40] sm:$0xff]  ;;  %v26_v12 = vld [vmem:[%s501_s0 + $0x48] sm:$0xff]  ;;  %v31_v17 = vld [vmem:[%s501_s0 + $0x70] sm:$0xff] }
   0x5   :  { %103 = vmatpush.msra.mxu0 %v39_v1  ;;  %231 = vmatpush.msra.mxu1 %v39_v1  ;;  %v29_v9 = vld [vmem:[%s501_s0 + $0x60] sm:$0xff]  ;;  %v30_v13 = vld [vmem:[%s501_s0 + $0x68] sm:$0xff]  ;;  %v19_v18 = vld [vmem:[%s501_s0 + $0x10] sm:$0xff] }
   0x6   :  { %235 = vmatpush.msra.mxu2 %v38_v2  ;;  %236 = vmatpush.msra.mxu3 %v38_v2  ;;  %v17_v10 = vld [vmem:[%s501_s0] sm:$0xff]  ;;  %v18_v14 = vld [vmem:[%s501_s0 + $0x8] sm:$0xff]  ;;  %v23_v19 = vld [vmem:[%s501_s0 + $0x30] sm:$0xff] }
   0x7   :  { %104 = vmatpush.msra.mxu0 %v38_v2  ;;  %234 = vmatpush.msra.mxu1 %v38_v2  ;;  %v21_v11 = vld [vmem:[%s501_s0 + $0x20] sm:$0xff]  ;;  %v22_v15 = vld [vmem:[%s501_s0 + $0x28] sm:$0xff]  ;;  %v28_v20 = vld [vmem:[%s501_s0 + $0x58] sm:$0xff] }
   0x8   :  { %238 = vmatpush.msra.mxu2 %v37_v3  ;;  %239 = vmatpush.msra.mxu3 %v37_v3  ;;  %v32_v21 = vld [vmem:[%s501_s0 + $0x78] sm:$0xff]  ;;  %v369_v24 = vld [vmem:[%s500_s2] ss:$0 sm:$0xff]  ;;  %v160_v42 = vld [vmem:[%s502_s3 + $0x8] sm:$0xff] }
   0x9   :  { %105 = vmatpush.msra.mxu0 %v37_v3  ;;  %237 = vmatpush.msra.mxu1 %v37_v3  ;;  %v20_v22 = vld [vmem:[%s501_s0 + $0x18] sm:$0xff]  ;;  %v159_v26 = vld [vmem:[%s502_s3] sm:$0xff]  ;;  %v164_v44 = vld [vmem:[%s502_s3 + $0x28] sm:$0xff] }
   0xa   :  { %241 = vmatpush.msra.mxu2 %v36_v4  ;;  %242 = vmatpush.msra.mxu3 %v36_v4  ;;  %v24_v23 = vld [vmem:[%s501_s0 + $0x38] sm:$0xff]  ;;  %v163_v28 = vld [vmem:[%s502_s3 + $0x20] sm:$0xff]  ;;  %v168_v50 = vld [vmem:[%s502_s3 + $0x48] sm:$0xff] }
   0xb   :  { %106 = vmatpush.msra.mxu0 %v36_v4  ;;  %240 = vmatpush.msra.mxu1 %v36_v4  ;;  %v167_v34 = vld [vmem:[%s502_s3 + $0x40] sm:$0xff]  ;;  %v172_v52 = vld [vmem:[%s502_s3 + $0x68] sm:$0xff]  ;;  %v161_v58 = vld [vmem:[%s502_s3 + $0x10] sm:$0xff] }
   0xc   :  { %244 = vmatpush.msra.mxu2 %v35_v5  ;;  %245 = vmatpush.msra.mxu3 %v35_v5  ;;  %v171_v36 = vld [vmem:[%s502_s3 + $0x60] sm:$0xff]  ;;  %v165_v60 = vld [vmem:[%s502_s3 + $0x30] sm:$0xff] }
   0xd   :  { %107 = vmatpush.msra.mxu0 %v35_v5  ;;  %243 = vmatpush.msra.mxu1 %v35_v5  ;;  %v169_v2 = vld [vmem:[%s502_s3 + $0x50] sm:$0xff] }
   0xe   :  { %247 = vmatpush.msra.mxu2 %v34_v6  ;;  %248 = vmatpush.msra.mxu3 %v34_v6  ;;  %v173_v4 = vld [vmem:[%s502_s3 + $0x70] sm:$0xff] }
   0xf   :  { %108 = vmatpush.msra.mxu0 %v34_v6  ;;  %246 = vmatpush.msra.mxu1 %v34_v6 }
  0x10   :  { %250 = vmatpush.msra.mxu2 %v33_v7  ;;  %251 = vmatpush.msra.mxu3 %v33_v7 }
  0x11   :  { %220 = vmatmul.msk.f32.vlgmr.msra.gmra.mxu2 %vm45_vm0, %v25_v8  ;;  %224 = vmatmul.msk.f32.vlgmr.msra.gmra.mxu3 %vm45_vm0, %v29_v9 }
  0x12   :  { %109 = vmatpush.msra.mxu0 %v33_v7  ;;  %249 = vmatpush.msra.mxu1 %v33_v7 }
  0x13   :  { %212 = vmatmul.msk.f32.vlgmr.msra.gmra.mxu0 %vm45_vm0, %v17_v10  ;;  %216 = vmatmul.msk.f32.vlgmr.msra.gmra.mxu1 %vm45_vm0, %v21_v11  ;;  %v162_v10 = vld [vmem:[%s502_s3 + $0x18] sm:$0xff] }
  0x19   :  { %221 = vmatmul.msk.f32.gmra.mxu2 %vm45_vm0, %v26_v12  ;;  %225 = vmatmul.msk.f32.gmra.mxu3 %vm45_vm0, %v30_v13  ;;  %v166_v12 = vld [vmem:[%s502_s3 + $0x38] sm:$0xff] }
  0x1b   :  { %213 = vmatmul.msk.f32.gmra.mxu0 %vm45_vm0, %v18_v14  ;;  %217 = vmatmul.msk.f32.gmra.mxu1 %vm45_vm0, %v22_v15 }
  0x21   :  { %222 = vmatmul.msk.f32.gmra.mxu2 %vm45_vm0, %v27_v16  ;;  %226 = vmatmul.msk.f32.gmra.mxu3 %vm45_vm0, %v31_v17 }
  0x23   :  { %214 = vmatmul.msk.f32.gmra.mxu0 %vm45_vm0, %v19_v18  ;;  %218 = vmatmul.msk.f32.gmra.mxu1 %vm45_vm0, %v23_v19  ;;  %v170_v18 = vld [vmem:[%s502_s3 + $0x58] sm:$0xff] }
  0x29   :  { %223 = vmatmul.msk.f32.gmra.mxu2 %vm45_vm0, %v28_v20  ;;  %227 = vmatmul.msk.f32.gmra.mxu3 %vm45_vm0, %v32_v21  ;;  %v174_v20 = vld [vmem:[%s502_s3 + $0x78] sm:$0xff] }
  0x2b   :  { %215 = vmatmul.msk.f32.gmra.mxu0 %vm45_vm0, %v20_v22  ;;  %219 = vmatmul.msk.f32.gmra.mxu1 %vm45_vm0, %v24_v23 }
  0x90   :  { %v111_v25 = vpop.f32.mrf.mxu0  ;;  %v123_v27 = vpop.f32.mrf.mxu1 }
  0x91   :  { %v112_v29 = vadd.f32 %v369_v24, %v111_v25  ;;  %v124_v30 = vadd.f32 %v369_v24, %v123_v27 }
  0x93   :  { %v175_v31 = vadd.f32 %v159_v26, %v112_v29  ;;  %v179_v32 = vadd.f32 %v163_v28, %v124_v30 }
  0x94   :  { %v135_v33 = vpop.f32.mrf.mxu2  ;;  %v147_v35 = vpop.f32.mrf.mxu3 }
  0x95   :  { %192 = vst.msk [vmem:[%s503_s4] sm:$0xff] %vm191_vm1, %v175_v31  ;;  %v136_v37 = vadd.f32 %v369_v24, %v135_v33  ;;  %v148_v38 = vadd.f32 %v369_v24, %v147_v35 }
  0x96   :  { %196 = vst.msk [vmem:[%s503_s4 + $0x20] sm:$0xff] %vm191_vm1, %v179_v32 }
  0x97   :  { %v183_v39 = vadd.f32 %v167_v34, %v136_v37  ;;  %v187_v40 = vadd.f32 %v171_v36, %v148_v38 }
  0x98   :  { %v114_v41 = vpop.f32.mrf.mxu0  ;;  %v126_v43 = vpop.f32.mrf.mxu1 }
  0x99   :  { %200 = vst.msk [vmem:[%s503_s4 + $0x40] sm:$0xff] %vm191_vm1, %v183_v39  ;;  %v115_v45 = vadd.f32 %v369_v24, %v114_v41  ;;  %v127_v46 = vadd.f32 %v369_v24, %v126_v43 }
  0x9a   :  { %204 = vst.msk [vmem:[%s503_s4 + $0x60] sm:$0xff] %vm191_vm1, %v187_v40 }
  0x9b   :  { %v176_v47 = vadd.f32 %v160_v42, %v115_v45  ;;  %v180_v48 = vadd.f32 %v164_v44, %v127_v46 }
  0x9c   :  { %v138_v49 = vpop.f32.mrf.mxu2  ;;  %v150_v51 = vpop.f32.mrf.mxu3 }
  0x9d   :  { %193 = vst.msk [vmem:[%s503_s4 + $0x8] sm:$0xff] %vm191_vm1, %v176_v47  ;;  %v139_v53 = vadd.f32 %v369_v24, %v138_v49  ;;  %v151_v54 = vadd.f32 %v369_v24, %v150_v51 }
  0x9e   :  { %197 = vst.msk [vmem:[%s503_s4 + $0x28] sm:$0xff] %vm191_vm1, %v180_v48 }
  0x9f   :  { %v184_v55 = vadd.f32 %v168_v50, %v139_v53  ;;  %v188_v56 = vadd.f32 %v172_v52, %v151_v54 }
  0xa0   :  { %v117_v57 = vpop.f32.mrf.mxu0  ;;  %v129_v59 = vpop.f32.mrf.mxu1 }
  0xa1   :  { %201 = vst.msk [vmem:[%s503_s4 + $0x48] sm:$0xff] %vm191_vm1, %v184_v55  ;;  %v118_v61 = vadd.f32 %v369_v24, %v117_v57  ;;  %v130_v62 = vadd.f32 %v369_v24, %v129_v59 }
  0xa2   :  { %205 = vst.msk [vmem:[%s503_s4 + $0x68] sm:$0xff] %vm191_vm1, %v188_v56 }
  0xa3   :  { %v177_v63 = vadd.f32 %v161_v58, %v118_v61  ;;  %v181_v0 = vadd.f32 %v165_v60, %v130_v62 }
  0xa4   :  { %v141_v1 = vpop.f32.mrf.mxu2  ;;  %v153_v3 = vpop.f32.mrf.mxu3 }
  0xa5   :  { %194 = vst.msk [vmem:[%s503_s4 + $0x10] sm:$0xff] %vm191_vm1, %v177_v63  ;;  %v142_v5 = vadd.f32 %v369_v24, %v141_v1  ;;  %v154_v6 = vadd.f32 %v369_v24, %v153_v3 }
  0xa6   :  { %198 = vst.msk [vmem:[%s503_s4 + $0x30] sm:$0xff] %vm191_vm1, %v181_v0 }
  0xa7   :  { %v185_v7 = vadd.f32 %v169_v2, %v142_v5  ;;  %v189_v8 = vadd.f32 %v173_v4, %v154_v6 }
  0xa8   :  { %v120_v9 = vpop.f32.mrf.mxu0  ;;  %v132_v11 = vpop.f32.mrf.mxu1 }
  0xa9   :  { %202 = vst.msk [vmem:[%s503_s4 + $0x50] sm:$0xff] %vm191_vm1, %v185_v7  ;;  %v121_v13 = vadd.f32 %v369_v24, %v120_v9  ;;  %v133_v14 = vadd.f32 %v369_v24, %v132_v11 }
  0xaa   :  { %206 = vst.msk [vmem:[%s503_s4 + $0x70] sm:$0xff] %vm191_vm1, %v189_v8 }
  0xab   :  { %v178_v15 = vadd.f32 %v162_v10, %v121_v13  ;;  %v182_v16 = vadd.f32 %v166_v12, %v133_v14 }
  0xac   :  { %v144_v17 = vpop.f32.mrf.mxu2  ;;  %v156_v19 = vpop.f32.mrf.mxu3 }
  0xad   :  { %195 = vst.msk [vmem:[%s503_s4 + $0x18] sm:$0xff] %vm191_vm1, %v178_v15  ;;  %v145_v21 = vadd.f32 %v369_v24, %v144_v17  ;;  %v157_v22 = vadd.f32 %v369_v24, %v156_v19 }
  0xae   :  { %199 = vst.msk [vmem:[%s503_s4 + $0x38] sm:$0xff] %vm191_vm1, %v182_v16 }
  0xaf   :  { %v186_v23 = vadd.f32 %v170_v18, %v145_v21  ;;  %v190_v25 = vadd.f32 %v174_v20, %v157_v22 }
  0xb1   :  { %203 = vst.msk [vmem:[%s503_s4 + $0x58] sm:$0xff] %vm191_vm1, %v186_v23 }
  0xb2   :  { %207 = vst.msk [vmem:[%s503_s4 + $0x78] sm:$0xff] %vm191_vm1, %v190_v25 }

// kernel: _lambda_.18
= control target key start
LH: loop header
LB: loop body
LE: loop exit
PB: predicated region body
PF: predicated region fallthrough
CT: control target
= control target key end

     0   :  { %vm105_vm0 = vcmask 261120   ;;  %s960_s1 = inlined_call_operand.vmem [shape: f32[288,32], index: 1, kind: input, shape index: {}]   ;;  %s961_s0 = inlined_call_operand.vmem [shape: f32[128,288], index: 0, kind: input, shape index: {}]   ;;  %s962_s2 = inlined_call_operand.vmem [shape: f32[1,32], index: 2, kind: input, shape index: {}]   ;;  %s963_s3 = inlined_call_operand.vmem [shape: f32[128,32], index: 3, kind: input, shape index: {}]   ;;  %s964_s4 = inlined_call_operand.vmem [shape: f32[128,32], index: 4, kind: output, shape index: {}]  }
   0x1   :  { %v80_v0 = vld [vmem:[%s960_s1 + $0x78] sm:$0xff]  ;;  %v79_v2 = vld [vmem:[%s960_s1 + $0x70] sm:$0xff]  ;;  %v78_v5 = vld [vmem:[%s960_s1 + $0x68] sm:$0xff] }
   0x2   :  { %v485_v1 = vld [vmem:[%s960_s1 + $0x118] sm:$0xff]  ;;  %154 = vmatpush.msra.mxu0 %v80_v0  ;;  %417 = vmatpush.msra.mxu3 %v80_v0  ;;  %v498_v4 = vld [vmem:[%s960_s1 + $0x110] sm:$0xff]  ;;  %v513_v7 = vld [vmem:[%s960_s1 + $0x108] sm:$0xff] }
   0x3   :  { %v493_v3 = vld [vmem:[%s960_s1 + $0xf8] sm:$0xff]  ;;  %296 = vmatpush.msra.mxu2 %v485_v1  ;;  %v508_v6 = vld [vmem:[%s960_s1 + $0xf0] sm:$0xff]  ;;  %v518_v8 = vld [vmem:[%s960_s1 + $0xe8] sm:$0xff] }
   0x4   :  { %219 = vmatpush.msra.mxu1 %v493_v3  ;;  %155 = vmatpush.msra.mxu0 %v79_v2  ;;  %v77_v9 = vld [vmem:[%s960_s1 + $0x60] sm:$0xff]  ;;  %v19_v12 = vld [vmem:[%s961_s0 + $0x10] sm:$0xff]  ;;  %v76_v13 = vld [vmem:[%s960_s1 + $0x58] sm:$0xff] }
   0x5   :  { %418 = vmatpush.msra.mxu3 %v79_v2  ;;  %297 = vmatpush.msra.mxu2 %v498_v4  ;;  %v528_v10 = vld [vmem:[%s960_s1 + $0x100] sm:$0xff]  ;;  %v546_v14 = vld [vmem:[%s960_s1 + $0xd8] sm:$0xff]  ;;  %v75_v15 = vld [vmem:[%s960_s1 + $0x50] sm:$0xff] }
   0x6   :  { %220 = vmatpush.msra.mxu1 %v508_v6  ;;  %156 = vmatpush.msra.mxu0 %v78_v5  ;;  %v533_v11 = vld [vmem:[%s960_s1 + $0xe0] sm:$0xff]  ;;  %v557_v16 = vld [vmem:[%s960_s1 + $0xd0] sm:$0xff]  ;;  %v74_v17 = vld [vmem:[%s960_s1 + $0x48] sm:$0xff] }
   0x7   :  { %419 = vmatpush.msra.mxu3 %v78_v5  ;;  %298 = vmatpush.msra.mxu2 %v513_v7  ;;  %v566_v18 = vld [vmem:[%s960_s1 + $0xc8] sm:$0xff]  ;;  %v73_v19 = vld [vmem:[%s960_s1 + $0x40] sm:$0xff]  ;;  %v72_v22 = vld [vmem:[%s960_s1 + $0x38] sm:$0xff] }
   0x8   :  { %221 = vmatpush.msra.mxu1 %v518_v8  ;;  %157 = vmatpush.msra.mxu0 %v77_v9  ;;  %v575_v20 = vld [vmem:[%s960_s1 + $0xc0] sm:$0xff]  ;;  %v22_v21 = vld [vmem:[%s961_s0 + $0x28] sm:$0xff]  ;;  %v587_v23 = vld [vmem:[%s960_s1 + $0xb8] sm:$0xff] }
   0x9   :  { %420 = vmatpush.msra.mxu3 %v77_v9  ;;  %299 = vmatpush.msra.mxu2 %v528_v10  ;;  %v71_v24 = vld [vmem:[%s960_s1 + $0x30] sm:$0xff]  ;;  %v70_v26 = vld [vmem:[%s960_s1 + $0x28] sm:$0xff]  ;;  %v69_v28 = vld [vmem:[%s960_s1 + $0x20] sm:$0xff] }
   0xa   :  { %222 = vmatpush.msra.mxu1 %v533_v11  ;;  %401 = vmatmul.msk.f32.vlgmr.msra.gmra.mxu2 %vm105_vm0, %v19_v12  ;;  %v597_v25 = vld [vmem:[%s960_s1 + $0xb0] sm:$0xff]  ;;  %v606_v27 = vld [vmem:[%s960_s1 + $0xa8] sm:$0xff]  ;;  %v615_v29 = vld [vmem:[%s960_s1 + $0xa0] sm:$0xff] }
   0xb   :  { %158 = vmatpush.msra.mxu0 %v76_v13  ;;  %421 = vmatpush.msra.mxu3 %v76_v13  ;;  %v25_v30 = vld [vmem:[%s961_s0 + $0x40] sm:$0xff]  ;;  %v68_v31 = vld [vmem:[%s960_s1 + $0x18] sm:$0xff]  ;;  %v67_v33 = vld [vmem:[%s960_s1 + $0x10] sm:$0xff] }
   0xc   :  { %223 = vmatpush.msra.mxu1 %v546_v14  ;;  %v627_v32 = vld [vmem:[%s960_s1 + $0x98] sm:$0xff]  ;;  %v83_v34 = vld [vmem:[%s960_s1 + $0x90] sm:$0xff]  ;;  %v66_v35 = vld [vmem:[%s960_s1 + $0x8] sm:$0xff] }
   0xd   :  { %159 = vmatpush.msra.mxu0 %v75_v15  ;;  %422 = vmatpush.msra.mxu3 %v75_v15  ;;  %v82_v36 = vld [vmem:[%s960_s1 + $0x88] sm:$0xff]  ;;  %v65_v37 = vld [vmem:[%s960_s1] sm:$0xff]  ;;  %v28_v40 = vld [vmem:[%s961_s0 + $0x58] sm:$0xff] }
   0xe   :  { %224 = vmatpush.msra.mxu1 %v557_v16  ;;  %v17_v38 = vld [vmem:[%s961_s0] sm:$0xff]  ;;  %v18_v42 = vld [vmem:[%s961_s0 + $0x8] sm:$0xff]  ;;  %v20_v43 = vld [vmem:[%s961_s0 + $0x18] sm:$0xff] }
   0xf   :  { %160 = vmatpush.msra.mxu0 %v74_v17  ;;  %423 = vmatpush.msra.mxu3 %v74_v17  ;;  %v53_v39 = vld [vmem:[%s961_s0 + $0x120] sm:$0xff]  ;;  %v56_v44 = vld [vmem:[%s961_s0 + $0x138] sm:$0xff]  ;;  %v31_v45 = vld [vmem:[%s961_s0 + $0x70] sm:$0xff] }
  0x10   :  { %225 = vmatpush.msra.mxu1 %v566_v18  ;;  %v81_v41 = vld [vmem:[%s960_s1 + $0x80] sm:$0xff]  ;;  %v23_v47 = vld [vmem:[%s961_s0 + $0x30] sm:$0xff]  ;;  %v34_v49 = vld [vmem:[%s961_s0 + $0x88] sm:$0xff] }
  0x11   :  { %161 = vmatpush.msra.mxu0 %v73_v19  ;;  %424 = vmatpush.msra.mxu3 %v73_v19  ;;  %v21_v46 = vld [vmem:[%s961_s0 + $0x20] sm:$0xff]  ;;  %v59_v48 = vld [vmem:[%s961_s0 + $0x150] sm:$0xff]  ;;  %v24_v50 = vld [vmem:[%s961_s0 + $0x38] sm:$0xff] }
  0x12   :  { %226 = vmatpush.msra.mxu1 %v575_v20  ;;  %402 = vmatmul.msk.f32.gmra.mxu2 %vm105_vm0, %v22_v21  ;;  %v26_v51 = vld [vmem:[%s961_s0 + $0x48] sm:$0xff]  ;;  %v37_v53 = vld [vmem:[%s961_s0 + $0xa0] sm:$0xff]  ;;  %v27_v54 = vld [vmem:[%s961_s0 + $0x50] sm:$0xff] }
  0x13   :  { %162 = vmatpush.msra.mxu0 %v72_v22  ;;  %425 = vmatpush.msra.mxu3 %v72_v22  ;;  %v62_v52 = vld [vmem:[%s961_s0 + $0x168] sm:$0xff]  ;;  %v29_v55 = vld [vmem:[%s961_s0 + $0x60] sm:$0xff]  ;;  %v40_v57 = vld [vmem:[%s961_s0 + $0xb8] sm:$0xff] }
  0x14   :  { %227 = vmatpush.msra.mxu1 %v587_v23  ;;  %v54_v56 = vld [vmem:[%s961_s0 + $0x128] sm:$0xff]  ;;  %v32_v59 = vld [vmem:[%s961_s0 + $0x78] sm:$0xff]  ;;  %v57_v60 = vld [vmem:[%s961_s0 + $0x140] sm:$0xff] }
  0x15   :  { %163 = vmatpush.msra.mxu0 %v71_v24  ;;  %426 = vmatpush.msra.mxu3 %v71_v24  ;;  %v30_v58 = vld [vmem:[%s961_s0 + $0x68] sm:$0xff]  ;;  %v43_v61 = vld [vmem:[%s961_s0 + $0xd0] sm:$0xff]  ;;  %v33_v62 = vld [vmem:[%s961_s0 + $0x80] sm:$0xff] }
  0x16   :  { %228 = vmatpush.msra.mxu1 %v597_v25  ;;  %v35_v63 = vld [vmem:[%s961_s0 + $0x90] sm:$0xff]  ;;  %v60_v0 = vld [vmem:[%s961_s0 + $0x158] sm:$0xff]  ;;  %v49_v5 = vld [vmem:[%s961_s0 + $0x100] sm:$0xff] }
  0x17   :  { %164 = vmatpush.msra.mxu0 %v70_v26  ;;  %427 = vmatpush.msra.mxu3 %v70_v26  ;;  %v36_v2 = vld [vmem:[%s961_s0 + $0x98] sm:$0xff]  ;;  %v55_v12 = vld [vmem:[%s961_s0 + $0x130] sm:$0xff]  ;;  %v45_v13 = vld [vmem:[%s961_s0 + $0xe0] sm:$0xff] }
  0x18   :  { %229 = vmatpush.msra.mxu1 %v606_v27  ;;  %v64_v9 = vld [vmem:[%s961_s0 + $0x178] sm:$0xff]  ;;  %v58_v15 = vld [vmem:[%s961_s0 + $0x148] sm:$0xff]  ;;  %v51_v19 = vld [vmem:[%s961_s0 + $0x110] sm:$0xff] }
  0x19   :  { %165 = vmatpush.msra.mxu0 %v69_v28  ;;  %428 = vmatpush.msra.mxu3 %v69_v28  ;;  %v50_v17 = vld [vmem:[%s961_s0 + $0x108] sm:$0xff]  ;;  %v818_v22 = vld [vmem:[%s962_s2] ss:$0 sm:$0xff] }
  0x1a   :  { %230 = vmatpush.msra.mxu1 %v615_v29  ;;  %403 = vmatmul.msk.f32.gmra.mxu2 %vm105_vm0, %v25_v30  ;;  %v349_v28 = vld [vmem:[%s963_s3] sm:$0xff] }
  0x1b   :  { %166 = vmatpush.msra.mxu0 %v68_v31  ;;  %429 = vmatpush.msra.mxu3 %v68_v31 }
  0x1c   :  { %231 = vmatpush.msra.mxu1 %v627_v32 }
  0x1d   :  { %167 = vmatpush.msra.mxu0 %v67_v33  ;;  %430 = vmatpush.msra.mxu3 %v67_v33 }
  0x1e   :  { %232 = vmatpush.msra.mxu1 %v83_v34 }
  0x1f   :  { %168 = vmatpush.msra.mxu0 %v66_v35  ;;  %431 = vmatpush.msra.mxu3 %v66_v35 }
  0x20   :  { %233 = vmatpush.msra.mxu1 %v82_v36 }
  0x21   :  { %169 = vmatpush.msra.mxu0 %v65_v37  ;;  %432 = vmatpush.msra.mxu3 %v65_v37  ;;  %v350_v37 = vld [vmem:[%s963_s3 + $0x8] sm:$0xff] }
  0x22   :  { %170 = vmatmul.f32.vlgmr.msra.gmra.mxu0 %v17_v38  ;;  %206 = vmatmul.f32.vlgmr.msra.gmra.mxu3 %v53_v39 }
  0x23   :  { %404 = vmatmul.msk.f32.gmra.mxu2 %vm105_vm0, %v28_v40  ;;  %433 = vmatpush.msrb.mxu3 %v493_v3  ;;  %v38_v3 = vld [vmem:[%s961_s0 + $0xa8] sm:$0xff] }
  0x24   :  { %234 = vmatpush.msra.mxu1 %v81_v41 }
  0x25   :  { %235 = vmatmul.f32.vlgmr.msra.gmra.mxu1 %v18_v42  ;;  %434 = vmatpush.msrb.mxu3 %v508_v6  ;;  %v39_v6 = vld [vmem:[%s961_s0 + $0xb0] sm:$0xff] }
  0x27   :  { %435 = vmatpush.msrb.mxu3 %v518_v8  ;;  %v52_v8 = vld [vmem:[%s961_s0 + $0x118] sm:$0xff] }
  0x29   :  { %436 = vmatpush.msrb.mxu3 %v533_v11  ;;  %v44_v11 = vld [vmem:[%s961_s0 + $0xd8] sm:$0xff] }
  0x2a   :  { %173 = vmatmul.f32.gmra.mxu0 %v20_v43  ;;  %209 = vmatmul.f32.gmra.mxu3 %v56_v44 }
  0x2b   :  { %405 = vmatmul.msk.f32.gmra.mxu2 %vm105_vm0, %v31_v45  ;;  %437 = vmatpush.msrb.mxu3 %v546_v14  ;;  %v47_v14 = vld [vmem:[%s961_s0 + $0xf0] sm:$0xff] }
  0x2d   :  { %238 = vmatmul.f32.gmra.mxu1 %v21_v46  ;;  %438 = vmatpush.msrb.mxu3 %v557_v16  ;;  %v48_v16 = vld [vmem:[%s961_s0 + $0xf8] sm:$0xff]  ;;  %v351_v46 = vld [vmem:[%s963_s3 + $0x10] sm:$0xff] }
  0x2f   :  { %439 = vmatpush.msrb.mxu3 %v566_v18  ;;  %v61_v18 = vld [vmem:[%s961_s0 + $0x160] sm:$0xff] }
  0x31   :  { %440 = vmatpush.msrb.mxu3 %v575_v20 }
  0x32   :  { %176 = vmatmul.f32.gmra.mxu0 %v23_v47  ;;  %212 = vmatmul.f32.gmra.mxu3 %v59_v48 }
  0x33   :  { %406 = vmatmul.msk.f32.gmra.mxu2 %vm105_vm0, %v34_v49  ;;  %441 = vmatpush.msrb.mxu3 %v587_v23 }
  0x35   :  { %241 = vmatmul.f32.gmra.mxu1 %v24_v50  ;;  %442 = vmatpush.msrb.mxu3 %v597_v25 }
  0x37   :  { %443 = vmatpush.msrb.mxu3 %v606_v27 }
  0x39   :  { %444 = vmatpush.msrb.mxu3 %v615_v29 }
  0x3a   :  { %179 = vmatmul.f32.gmra.mxu0 %v26_v51  ;;  %215 = vmatmul.f32.gmra.mxu3 %v62_v52 }
  0x3b   :  { %407 = vmatmul.msk.f32.gmra.mxu2 %vm105_vm0, %v37_v53  ;;  %445 = vmatpush.msrb.mxu3 %v627_v32 }
  0x3d   :  { %244 = vmatmul.f32.gmra.mxu1 %v27_v54  ;;  %446 = vmatpush.msrb.mxu3 %v83_v34 }
  0x3f   :  { %447 = vmatpush.msrb.mxu3 %v82_v36 }
  0x41   :  { %448 = vmatpush.msrb.mxu3 %v81_v41 }
  0x42   :  { %182 = vmatmul.f32.gmra.mxu0 %v29_v55  ;;  %271 = vmatmul.f32.vlgmr.msrb.gmra.mxu3 %v54_v56  ;;  %v352_v55 = vld [vmem:[%s963_s3 + $0x18] sm:$0xff] }
  0x43   :  { %408 = vmatmul.msk.f32.gmra.mxu2 %vm105_vm0, %v40_v57  ;;  %449 = vmatpush.msra.mxu3 %v485_v1  ;;  %v46_v1 = vld [vmem:[%s961_s0 + $0xe8] sm:$0xff] }
  0x45   :  { %247 = vmatmul.f32.gmra.mxu1 %v30_v58  ;;  %450 = vmatpush.msra.mxu3 %v498_v4  ;;  %v63_v4 = vld [vmem:[%s961_s0 + $0x170] sm:$0xff] }
  0x47   :  { %451 = vmatpush.msra.mxu3 %v513_v7  ;;  %v41_v7 = vld [vmem:[%s961_s0 + $0xc0] sm:$0xff] }
  0x49   :  { %452 = vmatpush.msra.mxu3 %v528_v10  ;;  %v42_v10 = vld [vmem:[%s961_s0 + $0xc8] sm:$0xff] }
  0x4a   :  { %185 = vmatmul.f32.gmra.mxu0 %v32_v59  ;;  %274 = vmatmul.f32.gmra.mxu3 %v57_v60 }
  0x4b   :  { %409 = vmatmul.msk.f32.gmra.mxu2 %vm105_vm0, %v43_v61 }
  0x4d   :  { %250 = vmatmul.f32.gmra.mxu1 %v33_v62 }
  0x52   :  { %188 = vmatmul.f32.gmra.mxu0 %v35_v63  ;;  %277 = vmatmul.f32.gmra.mxu3 %v60_v0  ;;  %v353_v0 = vld [vmem:[%s963_s3 + $0x20] sm:$0xff] }
  0x53   :  { %410 = vmatmul.msk.f32.gmra.mxu2 %vm105_vm0, %v46_v1 }
  0x55   :  { %253 = vmatmul.f32.gmra.mxu1 %v36_v2 }
  0x5a   :  { %191 = vmatmul.f32.gmra.mxu0 %v38_v3  ;;  %280 = vmatmul.f32.gmra.mxu3 %v63_v4 }
  0x5b   :  { %411 = vmatmul.msk.f32.gmra.mxu2 %vm105_vm0, %v49_v5 }
  0x5d   :  { %256 = vmatmul.f32.gmra.mxu1 %v39_v6 }
  0x62   :  { %194 = vmatmul.f32.gmra.mxu0 %v41_v7  ;;  %416 = vmatmul.msk.f32.vlgmr.msra.gmra.mxu3 %vm105_vm0, %v64_v9  ;;  %v354_v9 = vld [vmem:[%s963_s3 + $0x28] sm:$0xff] }
  0x63   :  { %412 = vmatmul.msk.f32.gmra.mxu2 %vm105_vm0, %v52_v8 }
  0x65   :  { %259 = vmatmul.f32.gmra.mxu1 %v42_v10 }
  0x6a   :  { %197 = vmatmul.f32.gmra.mxu0 %v44_v11 }
  0x6b   :  { %413 = vmatmul.msk.f32.gmra.mxu2 %vm105_vm0, %v55_v12 }
  0x6d   :  { %262 = vmatmul.f32.gmra.mxu1 %v45_v13 }
  0x72   :  { %200 = vmatmul.f32.gmra.mxu0 %v47_v14 }
  0x73   :  { %414 = vmatmul.msk.f32.gmra.mxu2 %vm105_vm0, %v58_v15 }
  0x75   :  { %265 = vmatmul.f32.gmra.mxu1 %v48_v16 }
  0x7a   :  { %203 = vmatmul.f32.gmra.mxu0 %v50_v17 }
  0x7b   :  { %415 = vmatmul.msk.f32.gmra.mxu2 %vm105_vm0, %v61_v18  ;;  %v355_v18 = vld [vmem:[%s963_s3 + $0x30] sm:$0xff] }
  0x7d   :  { %268 = vmatmul.f32.gmra.mxu1 %v51_v19 }
  0x8d   :  { %v301_v20 = vpop.f32.mrf.mxu2 }
  0x95   :  { %v304_v21 = vpop.f32.mrf.mxu2 }
  0x9d   :  { %v307_v23 = vpop.f32.mrf.mxu2 }
  0x9f   :  { %v171_v24 = vpop.f32.mrf.mxu0 }
  0xa0   :  { %v172_v25 = vadd.f32 %v818_v22, %v171_v24 }
  0xa2   :  { %v236_v26 = vpop.f32.mrf.mxu1 }
  0xa3   :  { %v237_v27 = vadd.f32 %v236_v26, %v172_v25 }
  0xa5   :  { %v302_v29 = vadd.f32 %v301_v20, %v237_v27  ;;  %v824_v30 = vpop.f32.mrf.mxu3 }
  0xa6   :  { %v310_v31 = vpop.f32.mrf.mxu2 }
  0xa7   :  { %v365_v32 = vadd.f32 %v349_v28, %v302_v29  ;;  %v174_v33 = vpop.f32.mrf.mxu0  ;;  %v356_v28 = vld [vmem:[%s963_s3 + $0x38] sm:$0xff] }
  0xa8   :  { %v175_v34 = vadd.f32 %v818_v22, %v174_v33 }
  0xa9   :  { %381 = vst.msk [vmem:[%s964_s4] sm:$0xff] %vm105_vm0, %v365_v32 }
  0xaa   :  { %v239_v35 = vpop.f32.mrf.mxu1 }
  0xab   :  { %v240_v36 = vadd.f32 %v239_v35, %v175_v34 }
  0xad   :  { %v305_v38 = vadd.f32 %v304_v21, %v240_v36  ;;  %v834_v39 = vpop.f32.mrf.mxu3 }
  0xae   :  { %v313_v40 = vpop.f32.mrf.mxu2 }
  0xaf   :  { %v366_v41 = vadd.f32 %v350_v37, %v305_v38  ;;  %v177_v42 = vpop.f32.mrf.mxu0 }
  0xb0   :  { %v178_v43 = vadd.f32 %v818_v22, %v177_v42 }
  0xb1   :  { %382 = vst.msk [vmem:[%s964_s4 + $0x8] sm:$0xff] %vm105_vm0, %v366_v41 }
  0xb2   :  { %v242_v44 = vpop.f32.mrf.mxu1 }
  0xb3   :  { %v243_v45 = vadd.f32 %v242_v44, %v178_v43 }
  0xb5   :  { %v308_v47 = vadd.f32 %v307_v23, %v243_v45  ;;  %v844_v48 = vpop.f32.mrf.mxu3  ;;  %v364_v45 = vld [vmem:[%s963_s3 + $0x78] sm:$0xff] }
  0xb6   :  { %v316_v49 = vpop.f32.mrf.mxu2 }
  0xb7   :  { %v367_v50 = vadd.f32 %v351_v46, %v308_v47  ;;  %v180_v51 = vpop.f32.mrf.mxu0 }
  0xb8   :  { %v181_v52 = vadd.f32 %v818_v22, %v180_v51 }
  0xb9   :  { %383 = vst.msk [vmem:[%s964_s4 + $0x10] sm:$0xff] %vm105_vm0, %v367_v50 }
  0xba   :  { %v245_v53 = vpop.f32.mrf.mxu1 }
  0xbb   :  { %v246_v54 = vadd.f32 %v245_v53, %v181_v52  ;;  %v208_v53 = vadd.f32 %v818_v22, %v824_v30 }
  0xbd   :  { %v311_v56 = vadd.f32 %v310_v31, %v246_v54  ;;  %v216_v57 = vpop.f32.mrf.mxu3 }
  0xbe   :  { %v319_v58 = vpop.f32.mrf.mxu2  ;;  %v217_v37 = vadd.f32 %v818_v22, %v216_v57 }
  0xbf   :  { %v368_v59 = vadd.f32 %v352_v55, %v311_v56  ;;  %v183_v60 = vpop.f32.mrf.mxu0  ;;  %v358_v55 = vld [vmem:[%s963_s3 + $0x48] sm:$0xff] }
  0xc0   :  { %v184_v61 = vadd.f32 %v818_v22, %v183_v60 }
  0xc1   :  { %384 = vst.msk [vmem:[%s964_s4 + $0x18] sm:$0xff] %vm105_vm0, %v368_v59  ;;  %v361_v59 = vld [vmem:[%s963_s3 + $0x60] sm:$0xff] }
  0xc2   :  { %v248_v62 = vpop.f32.mrf.mxu1 }
  0xc3   :  { %v249_v63 = vadd.f32 %v248_v62, %v184_v61 }
  0xc5   :  { %v314_v1 = vadd.f32 %v313_v40, %v249_v63  ;;  %v272_v2 = vpop.f32.mrf.mxu3  ;;  %v357_v40 = vld [vmem:[%s963_s3 + $0x40] sm:$0xff] }
  0xc6   :  { %v322_v3 = vpop.f32.mrf.mxu2  ;;  %v273_v56 = vadd.f32 %v272_v2, %v208_v53 }
  0xc7   :  { %v369_v4 = vadd.f32 %v353_v0, %v314_v1  ;;  %v186_v5 = vpop.f32.mrf.mxu0  ;;  %v211_v1 = vadd.f32 %v818_v22, %v834_v39 }
  0xc8   :  { %v187_v6 = vadd.f32 %v818_v22, %v186_v5 }
  0xc9   :  { %385 = vst.msk [vmem:[%s964_s4 + $0x20] sm:$0xff] %vm105_vm0, %v369_v4 }
  0xca   :  { %v251_v7 = vpop.f32.mrf.mxu1 }
  0xcb   :  { %v252_v8 = vadd.f32 %v251_v7, %v187_v6  ;;  %v362_v7 = vld [vmem:[%s963_s3 + $0x68] sm:$0xff] }
  0xcd   :  { %v317_v10 = vadd.f32 %v316_v49, %v252_v8  ;;  %v275_v11 = vpop.f32.mrf.mxu3 }
  0xce   :  { %v325_v12 = vpop.f32.mrf.mxu2  ;;  %v276_v4 = vadd.f32 %v275_v11, %v211_v1  ;;  %v214_v11 = vadd.f32 %v818_v22, %v844_v48 }
  0xcf   :  { %v370_v13 = vadd.f32 %v354_v9, %v317_v10  ;;  %v189_v14 = vpop.f32.mrf.mxu0 }
  0xd0   :  { %v190_v15 = vadd.f32 %v818_v22, %v189_v14 }
  0xd1   :  { %386 = vst.msk [vmem:[%s964_s4 + $0x28] sm:$0xff] %vm105_vm0, %v370_v13 }
  0xd2   :  { %v254_v16 = vpop.f32.mrf.mxu1 }
  0xd3   :  { %v255_v17 = vadd.f32 %v254_v16, %v190_v15  ;;  %v360_v15 = vld [vmem:[%s963_s3 + $0x58] sm:$0xff] }
  0xd5   :  { %v320_v19 = vadd.f32 %v319_v58, %v255_v17  ;;  %v878_v20 = vpop.f32.mrf.mxu3 }
  0xd6   :  { %v328_v21 = vpop.f32.mrf.mxu2  ;;  %v279_v16 = vadd.f32 %v878_v20, %v214_v11 }
  0xd7   :  { %v371_v23 = vadd.f32 %v355_v18, %v320_v19  ;;  %v192_v24 = vpop.f32.mrf.mxu0  ;;  %v363_v19 = vld [vmem:[%s963_s3 + $0x70] sm:$0xff] }
  0xd8   :  { %v193_v25 = vadd.f32 %v818_v22, %v192_v24 }
  0xd9   :  { %387 = vst.msk [vmem:[%s964_s4 + $0x30] sm:$0xff] %vm105_vm0, %v371_v23 }
  0xda   :  { %v257_v26 = vpop.f32.mrf.mxu1 }
  0xdb   :  { %v258_v27 = vadd.f32 %v257_v26, %v193_v25 }
  0xdd   :  { %v323_v29 = vadd.f32 %v322_v3, %v258_v27  ;;  %v281_v31 = vpop.f32.mrf.mxu3  ;;  %v359_v3 = vld [vmem:[%s963_s3 + $0x50] sm:$0xff] }
  0xde   :  { %v331_v32 = vpop.f32.mrf.mxu2  ;;  %v282_v41 = vadd.f32 %v281_v31, %v217_v37 }
  0xdf   :  { %v372_v33 = vadd.f32 %v356_v28, %v323_v29  ;;  %v195_v34 = vpop.f32.mrf.mxu0 }
  0xe0   :  { %v196_v35 = vadd.f32 %v818_v22, %v195_v34 }
  0xe1   :  { %388 = vst.msk [vmem:[%s964_s4 + $0x38] sm:$0xff] %vm105_vm0, %v372_v33 }
  0xe2   :  { %v260_v36 = vpop.f32.mrf.mxu1 }
  0xe3   :  { %v261_v38 = vadd.f32 %v260_v36, %v196_v35 }
  0xe5   :  { %v326_v42 = vadd.f32 %v325_v12, %v261_v38  ;;  %v346_v44 = vpop.f32.mrf.mxu3 }
  0xe6   :  { %v334_v43 = vpop.f32.mrf.mxu2  ;;  %v347_v47 = vadd.f32 %v346_v44, %v282_v41 }
  0xe7   :  { %v373_v46 = vadd.f32 %v357_v40, %v326_v42  ;;  %v198_v49 = vpop.f32.mrf.mxu0 }
  0xe8   :  { %v199_v50 = vadd.f32 %v818_v22, %v198_v49  ;;  %v380_v51 = vadd.f32 %v364_v45, %v347_v47 }
  0xe9   :  { %389 = vst.msk [vmem:[%s964_s4 + $0x40] sm:$0xff] %vm105_vm0, %v373_v46 }
  0xea   :  { %v263_v52 = vpop.f32.mrf.mxu1  ;;  %396 = vst.msk [vmem:[%s964_s4 + $0x78] sm:$0xff] %vm105_vm0, %v380_v51 }
  0xeb   :  { %v264_v54 = vadd.f32 %v263_v52, %v199_v50 }
  0xed   :  { %v329_v57 = vadd.f32 %v328_v21, %v264_v54 }
  0xee   :  { %v337_v58 = vpop.f32.mrf.mxu2 }
  0xef   :  { %v374_v60 = vadd.f32 %v358_v55, %v329_v57  ;;  %v338_v61 = vadd.f32 %v337_v58, %v273_v56  ;;  %v201_v30 = vpop.f32.mrf.mxu0 }
  0xf0   :  { %v202_v62 = vadd.f32 %v818_v22, %v201_v30 }
  0xf1   :  { %390 = vst.msk [vmem:[%s964_s4 + $0x48] sm:$0xff] %vm105_vm0, %v374_v60  ;;  %v377_v63 = vadd.f32 %v361_v59, %v338_v61 }
  0xf2   :  { %v266_v0 = vpop.f32.mrf.mxu1 }
  0xf3   :  { %393 = vst.msk [vmem:[%s964_s4 + $0x60] sm:$0xff] %vm105_vm0, %v377_v63  ;;  %v267_v2 = vadd.f32 %v266_v0, %v202_v62 }
  0xf5   :  { %v332_v5 = vadd.f32 %v331_v32, %v267_v2 }
  0xf6   :  { %v340_v6 = vpop.f32.mrf.mxu2 }
  0xf7   :  { %v375_v8 = vadd.f32 %v359_v3, %v332_v5  ;;  %v341_v9 = vadd.f32 %v340_v6, %v276_v4  ;;  %v204_v39 = vpop.f32.mrf.mxu0 }
  0xf8   :  { %v205_v10 = vadd.f32 %v818_v22, %v204_v39 }
  0xf9   :  { %391 = vst.msk [vmem:[%s964_s4 + $0x50] sm:$0xff] %vm105_vm0, %v375_v8  ;;  %v378_v12 = vadd.f32 %v362_v7, %v341_v9 }
  0xfa   :  { %v269_v13 = vpop.f32.mrf.mxu1 }
  0xfb   :  { %394 = vst.msk [vmem:[%s964_s4 + $0x68] sm:$0xff] %vm105_vm0, %v378_v12  ;;  %v270_v14 = vadd.f32 %v269_v13, %v205_v10 }
  0xfd   :  { %v335_v17 = vadd.f32 %v334_v43, %v270_v14 }
  0xfe   :  { %v343_v18 = vpop.f32.mrf.mxu2 }
  0xff   :  { %v376_v21 = vadd.f32 %v360_v15, %v335_v17  ;;  %v344_v22 = vadd.f32 %v343_v18, %v279_v16 }
 0x101   :  { %392 = vst.msk [vmem:[%s964_s4 + $0x58] sm:$0xff] %vm105_vm0, %v376_v21  ;;  %v379_v48 = vadd.f32 %v363_v19, %v344_v22 }
 0x103   :  { %395 = vst.msk [vmem:[%s964_s4 + $0x70] sm:$0xff] %vm105_vm0, %v379_v48 }

// kernel: _lambda_.19
= control target key start
LH: loop header
LB: loop body
LE: loop exit
PB: predicated region body
PF: predicated region fallthrough
CT: control target
= control target key end

     0   :  { %vm30_vm0 = vcmask 261120   ;;  %v487_v32 = vmov 32.0   ;;  %s1012_s0 = inlined_call_operand.vmem [shape: f32[128,32], index: 0, kind: input, shape index: {}]   ;;  %s1013_s1 = inlined_call_operand.vmem [shape: f32[1,32], index: 1, kind: input, shape index: {}]   ;;  %s1014_s2 = inlined_call_operand.vmem [shape: f32[1,32], index: 2, kind: input, shape index: {}]   ;;  %s1015_s3 = inlined_call_operand.vmem [shape: f32[128,32], index: 3, kind: output, shape index: {}]  }
   0x1   :  { %v511_v0 = vld [vmem:[%s1012_s0 + $0x20] sm:$0xff]  ;;  %v516_v1 = vld [vmem:[%s1012_s0 + $0x10] sm:$0xff]  ;;  %v532_v6 = vld [vmem:[%s1012_s0 + $0x28] sm:$0xff]  ;;  %453 = vrcp.f32 %v487_v32 }
   0x2   :  { %v521_v2 = vld [vmem:[%s1012_s0] sm:$0xff]  ;;  %v43_v3 = vsel %vm30_vm0, %v511_v0, 0.0  ;;  %v37_v4 = vsel %vm30_vm0, %v516_v1, 0.0  ;;  %v537_v7 = vld [vmem:[%s1012_s0 + $0x18] sm:$0xff]  ;;  %v542_v8 = vld [vmem:[%s1012_s0 + $0x8] sm:$0xff]  ;;  %v46_v9 = vsel %vm30_vm0, %v532_v6, 0.0 }
   0x3   :  { %v31_v5 = vsel %vm30_vm0, %v521_v2, 0.0  ;;  %44 = vadd.xlane.f32.xlu2 %v43_v3  ;;  %38 = vadd.xlane.f32.xlu1 %v37_v4  ;;  %v40_v10 = vsel %vm30_vm0, %v537_v7, 0.0  ;;  %v34_v11 = vsel %vm30_vm0, %v542_v8, 0.0  ;;  %v553_v12 = vld [vmem:[%s1012_s0 + $0x40] sm:$0xff]  ;;  %v558_v13 = vld [vmem:[%s1012_s0 + $0x38] sm:$0xff]  ;;  %v563_v14 = vld [vmem:[%s1012_s0 + $0x30] sm:$0xff] }
   0x4   :  { %32 = vadd.xlane.f32.xlu0 %v31_v5  ;;  %v55_v15 = vsel %vm30_vm0, %v553_v12, 0.0  ;;  %v52_v16 = vsel %vm30_vm0, %v558_v13, 0.0  ;;  %v49_v17 = vsel %vm30_vm0, %v563_v14, 0.0  ;;  %v574_v18 = vld [vmem:[%s1012_s0 + $0x58] sm:$0xff]  ;;  %v579_v19 = vld [vmem:[%s1012_s0 + $0x50] sm:$0xff]  ;;  %v584_v20 = vld [vmem:[%s1012_s0 + $0x48] sm:$0xff] }
   0x5   :  { %v64_v21 = vsel %vm30_vm0, %v574_v18, 0.0  ;;  %v61_v22 = vsel %vm30_vm0, %v579_v19, 0.0  ;;  %v58_v23 = vsel %vm30_vm0, %v584_v20, 0.0  ;;  %v595_v24 = vld [vmem:[%s1012_s0 + $0x70] sm:$0xff]  ;;  %v600_v25 = vld [vmem:[%s1012_s0 + $0x68] sm:$0xff]  ;;  %v605_v26 = vld [vmem:[%s1012_s0 + $0x60] sm:$0xff] }
   0x6   :  { %v73_v27 = vsel %vm30_vm0, %v595_v24, 0.0  ;;  %v70_v28 = vsel %vm30_vm0, %v600_v25, 0.0  ;;  %v67_v29 = vsel %vm30_vm0, %v605_v26, 0.0  ;;  %v616_v30 = vld [vmem:[%s1012_s0 + $0x78] sm:$0xff] }
   0x7   :  { %v76_v31 = vsel %vm30_vm0, %v616_v30, 0.0  ;;  %v454_v33 = vpop.eup %453 }
   0x8   :  { %v80_v34 = vmul.f32 32.0, %v454_v33  ;;  %vm84_vm1 = vweird.f32 %v454_v33 }
   0xa   :  { %v81_v35 = vsub.f32 1.0, %v80_v34 }
   0xb   :  { %47 = vadd.xlane.f32.xlu2 %v46_v9  ;;  %41 = vadd.xlane.f32.xlu1 %v40_v10 }
   0xc   :  { %35 = vadd.xlane.f32.xlu0 %v34_v11  ;;  %v82_v36 = vmul.f32 %v454_v33, %v81_v35 }
   0xe   :  { %v83_v37 = vadd.f32 %v454_v33, %v82_v36 }
  0x10   :  { %v620_v38 = vsel %vm84_vm1, %v454_v33, %v83_v37 }
  0x13   :  { %56 = vadd.xlane.f32.xlu2 %v55_v15  ;;  %53 = vadd.xlane.f32.xlu1 %v52_v16 }
  0x14   :  { %50 = vadd.xlane.f32.xlu0 %v49_v17 }
  0x1b   :  { %65 = vadd.xlane.f32.xlu2 %v64_v21  ;;  %62 = vadd.xlane.f32.xlu1 %v61_v22 }
  0x1c   :  { %59 = vadd.xlane.f32.xlu0 %v58_v23 }
  0x23   :  { %74 = vadd.xlane.f32.xlu2 %v73_v27  ;;  %71 = vadd.xlane.f32.xlu1 %v70_v28 }
  0x24   :  { %68 = vadd.xlane.f32.xlu0 %v67_v29 }
  0x2c   :  { %77 = vadd.xlane.f32.xlu0 %v76_v31 }
  0x76   :  { %v45_v39 = vpop.xlane.xlu2 %44  ;;  %v39_v40 = vpop.xlane.xlu1 %38 }
  0x77   :  { %v88_v41 = vmul.f32 %v620_v38, %v39_v40  ;;  %v33_v42 = vpop.xlane.xlu0 %32  ;;  %v90_v58 = vmul.f32 %v620_v38, %v45_v39 }
  0x78   :  { %v86_v43 = vmul.f32 %v620_v38, %v33_v42 }
  0x79   :  { %v625_v44 = vsub.f32 %v516_v1, %v88_v41 }
  0x7a   :  { %v628_v45 = vsub.f32 %v521_v2, %v86_v43  ;;  %v658_v2 = vsub.f32 %v511_v0, %v90_v58 }
  0x7b   :  { %v120_v46 = vmul.f32 %v625_v44, %v625_v44 }
  0x7c   :  { %v118_v47 = vmul.f32 %v628_v45, %v628_v45  ;;  %v122_v11 = vmul.f32 %v658_v2, %v658_v2 }
  0x7d   :  { %v140_v48 = vsel %vm30_vm0, %v120_v46, 0.0 }
  0x7e   :  { %v48_v49 = vpop.xlane.xlu2 %47  ;;  %v42_v50 = vpop.xlane.xlu1 %41  ;;  %141 = vadd.xlane.f32.xlu0 %v140_v48  ;;  %v134_v51 = vsel %vm30_vm0, %v118_v47, 0.0 }
  0x7f   :  { %v91_v52 = vmul.f32 %v620_v38, %v48_v49  ;;  %v89_v53 = vmul.f32 %v620_v38, %v42_v50  ;;  %135 = vadd.xlane.f32.xlu1 %v134_v51  ;;  %v36_v54 = vpop.xlane.xlu0 %35 }
  0x80   :  { %v87_v55 = vmul.f32 %v620_v38, %v36_v54 }
  0x81   :  { %v640_v56 = vsub.f32 %v532_v6, %v91_v52  ;;  %v643_v57 = vsub.f32 %v537_v7, %v89_v53 }
  0x82   :  { %v647_v59 = vsub.f32 %v542_v8, %v87_v55 }
  0x83   :  { %v123_v60 = vmul.f32 %v640_v56, %v640_v56  ;;  %v121_v61 = vmul.f32 %v643_v57, %v643_v57 }
  0x84   :  { %v119_v62 = vmul.f32 %v647_v59, %v647_v59 }
  0x85   :  { %v149_v63 = vsel %vm30_vm0, %v123_v60, 0.0  ;;  %v143_v1 = vsel %vm30_vm0, %v121_v61, 0.0 }
  0x86   :  { %v57_v3 = vpop.xlane.xlu2 %56  ;;  %150 = vadd.xlane.f32.xlu0 %v149_v63  ;;  %v137_v4 = vsel %vm30_vm0, %v119_v62, 0.0  ;;  %v54_v5 = vpop.xlane.xlu1 %53 }
  0x87   :  { %v94_v6 = vmul.f32 %v620_v38, %v57_v3  ;;  %144 = vadd.xlane.f32.xlu1 %v143_v1  ;;  %138 = vadd.xlane.f32.xlu2 %v137_v4  ;;  %v51_v7 = vpop.xlane.xlu0 %50  ;;  %v93_v9 = vmul.f32 %v620_v38, %v54_v5 }
  0x88   :  { %v92_v8 = vmul.f32 %v620_v38, %v51_v7 }
  0x89   :  { %v665_v10 = vsub.f32 %v553_v12, %v94_v6  ;;  %v675_v16 = vsub.f32 %v558_v13, %v93_v9  ;;  %v146_v12 = vsel %vm30_vm0, %v122_v11, 0.0 }
  0x8a   :  { %v668_v0 = vsub.f32 %v563_v14, %v92_v8 }
  0x8b   :  { %v126_v15 = vmul.f32 %v665_v10, %v665_v10  ;;  %v125_v31 = vmul.f32 %v675_v16, %v675_v16 }
  0x8c   :  { %v124_v17 = vmul.f32 %v668_v0, %v668_v0 }
  0x8d   :  { %v158_v21 = vsel %vm30_vm0, %v126_v15, 0.0  ;;  %v155_v36 = vsel %vm30_vm0, %v125_v31, 0.0 }
  0x8e   :  { %v66_v22 = vpop.xlane.xlu2 %65  ;;  %159 = vadd.xlane.f32.xlu0 %v158_v21  ;;  %v152_v14 = vsel %vm30_vm0, %v124_v17, 0.0  ;;  %v63_v23 = vpop.xlane.xlu1 %62 }
  0x8f   :  { %v97_v27 = vmul.f32 %v620_v38, %v66_v22  ;;  %147 = vadd.xlane.f32.xlu2 %v146_v12  ;;  %153 = vadd.xlane.f32.xlu1 %v152_v14  ;;  %v60_v28 = vpop.xlane.xlu0 %59  ;;  %v96_v29 = vmul.f32 %v620_v38, %v63_v23 }
  0x90   :  { %v95_v13 = vmul.f32 %v620_v38, %v60_v28 }
  0x91   :  { %v688_v32 = vsub.f32 %v574_v18, %v97_v27  ;;  %v696_v35 = vsub.f32 %v579_v19, %v96_v29 }
  0x92   :  { %v691_v33 = vsub.f32 %v584_v20, %v95_v13 }
  0x93   :  { %v129_v34 = vmul.f32 %v688_v32, %v688_v32  ;;  %v128_v46 = vmul.f32 %v696_v35, %v696_v35 }
  0x94   :  { %v127_v37 = vmul.f32 %v691_v33, %v691_v33 }
  0x95   :  { %v167_v39 = vsel %vm30_vm0, %v129_v34, 0.0  ;;  %v164_v51 = vsel %vm30_vm0, %v128_v46, 0.0 }
  0x96   :  { %v75_v40 = vpop.xlane.xlu2 %74  ;;  %168 = vadd.xlane.f32.xlu0 %v167_v39  ;;  %v161_v18 = vsel %vm30_vm0, %v127_v37, 0.0  ;;  %v72_v41 = vpop.xlane.xlu1 %71 }
  0x97   :  { %v100_v20 = vmul.f32 %v620_v38, %v75_v40  ;;  %156 = vadd.xlane.f32.xlu2 %v155_v36  ;;  %162 = vadd.xlane.f32.xlu1 %v161_v18  ;;  %v69_v42 = vpop.xlane.xlu0 %68  ;;  %v99_v43 = vmul.f32 %v620_v38, %v72_v41 }
  0x98   :  { %v98_v19 = vmul.f32 %v620_v38, %v69_v42 }
  0x99   :  { %v709_v47 = vsub.f32 %v595_v24, %v100_v20  ;;  %v717_v50 = vsub.f32 %v600_v25, %v99_v43 }
  0x9a   :  { %v712_v48 = vsub.f32 %v605_v26, %v98_v19 }
  0x9b   :  { %v132_v49 = vmul.f32 %v709_v47, %v709_v47  ;;  %v131_v55 = vmul.f32 %v717_v50, %v717_v50 }
  0x9c   :  { %v130_v52 = vmul.f32 %v712_v48, %v712_v48 }
  0x9d   :  { %v176_v53 = vsel %vm30_vm0, %v132_v49, 0.0  ;;  %v173_v58 = vsel %vm30_vm0, %v131_v55, 0.0 }
  0x9e   :  { %177 = vadd.xlane.f32.xlu0 %v176_v53  ;;  %v170_v24 = vsel %vm30_vm0, %v130_v52, 0.0 }
  0x9f   :  { %165 = vadd.xlane.f32.xlu2 %v164_v51  ;;  %171 = vadd.xlane.f32.xlu1 %v170_v24  ;;  %v78_v26 = vpop.xlane.xlu0 %77  ;;  %v764_v51 = vld [vmem:[%s1013_s1] ss:$0 sm:$0xff] }
  0xa0   :  { %v101_v54 = vmul.f32 %v620_v38, %v78_v26 }
  0xa2   :  { %v728_v25 = vsub.f32 %v616_v30, %v101_v54 }
  0xa4   :  { %v133_v60 = vmul.f32 %v728_v25, %v728_v25 }
  0xa6   :  { %v179_v61 = vsel %vm30_vm0, %v133_v60, 0.0  ;;  %v779_v60 = vld [vmem:[%s1014_s2] ss:$0 sm:$0xff] }
  0xa7   :  { %174 = vadd.xlane.f32.xlu2 %v173_v58  ;;  %180 = vadd.xlane.f32.xlu1 %v179_v61 }
  0xf1   :  { %v142_v62 = vpop.xlane.xlu0 %141 }
  0xf2   :  { %v136_v63 = vpop.xlane.xlu1 %135  ;;  %v184_v1 = vmul.f32 %v142_v62, %v620_v38 }
  0xf3   :  { %v182_v3 = vmul.f32 %v136_v63, %v620_v38 }
  0xf4   :  { %v200_v4 = vadd.f32 1e-05, %v184_v1 }
  0xf5   :  { %v198_v5 = vadd.f32 1e-05, %v182_v3 }
  0xf6   :  { %455 = vrsqrt.f32 %v200_v4  ;;  %vm240_vm4 = vweird.f32 %v200_v4 }
  0xf7   :  { %457 = vrsqrt.f32 %v198_v5  ;;  %vm220_vm5 = vweird.f32 %v198_v5 }
  0xf9   :  { %v151_v30 = vpop.xlane.xlu0 %150 }
  0xfa   :  { %v145_v6 = vpop.xlane.xlu1 %144  ;;  %v139_v7 = vpop.xlane.xlu2 %138  ;;  %v187_v8 = vmul.f32 %v151_v30, %v620_v38 }
  0xfb   :  { %v185_v9 = vmul.f32 %v145_v6, %v620_v38  ;;  %v183_v11 = vmul.f32 %v139_v7, %v620_v38 }
  0xfc   :  { %v456_v15 = vpop.eup %455  ;;  %v739_v17 = vadd.f32 1e-05, %v187_v8 }
  0xfd   :  { %v458_v21 = vpop.eup %457  ;;  %v235_v22 = vmul.f32 %v456_v15, %v200_v4  ;;  %v741_v12 = vadd.f32 1e-05, %v185_v9  ;;  %v743_v14 = vadd.f32 1e-05, %v183_v11  ;;  %vm241_vm2 = vweird.f32 %v456_v15 }
  0xfe   :  { %v215_v23 = vmul.f32 %v458_v21, %v198_v5  ;;  %459 = vrsqrt.f32 %v739_v17  ;;  %vm221_vm3 = vweird.f32 %v458_v21  ;;  %vm242_vm6 = vmor %vm240_vm4, %vm241_vm2  ;;  %vm270_vm8 = vweird.f32 %v739_v17 }
  0xff   :  { %v236_v27 = vmul.f32 %v456_v15, %v235_v22  ;;  %461 = vrsqrt.f32 %v741_v12  ;;  %vm222_vm7 = vmor %vm220_vm5, %vm221_vm3  ;;  %vm250_vm12 = vweird.f32 %v741_v12  ;;  %vm230_vm13 = vweird.f32 %v743_v14 }
 0x100   :  { %v216_v28 = vmul.f32 %v458_v21, %v215_v23  ;;  %463 = vrsqrt.f32 %v743_v14 }
 0x101   :  { %v237_v13 = vmul.f32 0.5, %v236_v27  ;;  %v160_v29 = vpop.xlane.xlu0 %159 }
 0x102   :  { %v217_v31 = vmul.f32 0.5, %v216_v28  ;;  %v148_v34 = vpop.xlane.xlu2 %147  ;;  %v154_v36 = vpop.xlane.xlu1 %153  ;;  %v190_v18 = vmul.f32 %v160_v29, %v620_v38 }
 0x103   :  { %v238_v37 = vsub.f32 1.5, %v237_v13  ;;  %v186_v39 = vmul.f32 %v148_v34, %v620_v38  ;;  %v188_v40 = vmul.f32 %v154_v36, %v620_v38 }
 0x104   :  { %v751_v41 = vpop.eup %459  ;;  %v218_v20 = vsub.f32 1.5, %v217_v31  ;;  %v774_v58 = vadd.f32 1e-05, %v190_v18 }
 0x105   :  { %v753_v42 = vpop.eup %461  ;;  %v239_v19 = vmul.f32 %v456_v15, %v238_v37  ;;  %v265_v43 = vmul.f32 %v751_v41, %v739_v17  ;;  %v757_v46 = vadd.f32 1e-05, %v186_v39  ;;  %v769_v24 = vadd.f32 1e-05, %v188_v40 }
 0x106   :  { %v759_v49 = vpop.eup %463  ;;  %v219_v52 = vmul.f32 %v458_v21, %v218_v20  ;;  %v245_v53 = vmul.f32 %v753_v42, %v741_v12  ;;  %vm271_vm9 = vweird.f32 %v751_v41  ;;  %vm251_vm10 = vweird.f32 %v753_v42 }
 0x107   :  { %v243_v26 = vsel %vm242_vm6, %v456_v15, %v239_v19  ;;  %v225_v54 = vmul.f32 %v759_v49, %v743_v14  ;;  %v266_v55 = vmul.f32 %v751_v41, %v265_v43  ;;  %465 = vrsqrt.f32 %v757_v46  ;;  %vm272_vm14 = vmor %vm270_vm8, %vm271_vm9 }
 0x108   :  { %v223_v61 = vsel %vm222_vm7, %v458_v21, %v219_v52  ;;  %v376_v62 = vmul.f32 %v243_v26, %v625_v44  ;;  %v246_v63 = vmul.f32 %v753_v42, %v245_v53  ;;  %467 = vrsqrt.f32 %v769_v24  ;;  %vm252_vm15 = vmor %vm250_vm12, %vm251_vm10 }
 0x109   :  { %v374_v1 = vmul.f32 %v223_v61, %v628_v45  ;;  %v226_v3 = vmul.f32 %v759_v49, %v225_v54  ;;  %v267_v4 = vmul.f32 0.5, %v266_v55  ;;  %469 = vrsqrt.f32 %v774_v58  ;;  %v169_v27 = vpop.xlane.xlu0 %168 }
 0x10a   :  { %v396_v5 = vmul.f32 %v764_v51, %v376_v62  ;;  %v247_v30 = vmul.f32 0.5, %v246_v63  ;;  %v157_v6 = vpop.xlane.xlu2 %156  ;;  %v163_v15 = vpop.xlane.xlu1 %162  ;;  %vm231_vm11 = vweird.f32 %v759_v49  ;;  %vm260_vm1 = vweird.f32 %v757_v46 }
 0x10b   :  { %v394_v44 = vmul.f32 %v764_v51, %v374_v1  ;;  %v227_v7 = vmul.f32 0.5, %v226_v3  ;;  %v268_v8 = vsub.f32 1.5, %v267_v4  ;;  %v189_v11 = vmul.f32 %v157_v6, %v620_v38  ;;  %vm232_vm2 = vmor %vm230_vm13, %vm231_vm11 }
 0x10c   :  { %v416_v45 = vadd.f32 %v779_v60, %v396_v5  ;;  %v248_v9 = vsub.f32 1.5, %v247_v30  ;;  %v191_v17 = vmul.f32 %v163_v15, %v620_v38  ;;  %v193_v39 = vmul.f32 %v169_v27, %v620_v38 }
 0x10d   :  { %v414_v21 = vadd.f32 %v779_v60, %v394_v44  ;;  %v228_v22 = vsub.f32 1.5, %v227_v7  ;;  %v269_v23 = vmul.f32 %v751_v41, %v268_v8  ;;  %v798_v28 = vpop.eup %465  ;;  %v811_v29 = vadd.f32 1e-05, %v189_v11 }
 0x10e   :  { %432 = vst.msk [vmem:[%s1015_s3 + $0x10] sm:$0xff] %vm30_vm0, %v416_v45  ;;  %v249_v13 = vmul.f32 %v753_v42, %v248_v9  ;;  %v255_v14 = vmul.f32 %v798_v28, %v757_v46  ;;  %v825_v34 = vpop.eup %467  ;;  %vm280_vm3 = vweird.f32 %v769_v24  ;;  %vm261_vm4 = vweird.f32 %v798_v28 }
 0x10f   :  { %430 = vst.msk [vmem:[%s1015_s3] sm:$0xff] %vm30_vm0, %v414_v21  ;;  %v229_v31 = vmul.f32 %v759_v49, %v228_v22  ;;  %v273_v12 = vsel %vm272_vm14, %v751_v41, %v269_v23  ;;  %471 = vrsqrt.f32 %v811_v29  ;;  %v470_v40 = vpop.eup %469  ;;  %v275_v19 = vmul.f32 %v825_v34, %v769_v24  ;;  %vm262_vm7 = vmor %vm260_vm1, %vm261_vm4 }
 0x110   :  { %v253_v36 = vsel %vm252_vm15, %v753_v42, %v249_v13  ;;  %v379_v37 = vmul.f32 %v273_v12, %v640_v56  ;;  %v256_v20 = vmul.f32 %v798_v28, %v255_v14  ;;  %v295_v56 = vmul.f32 %v470_v40, %v774_v58 }
 0x111   :  { %v377_v18 = vmul.f32 %v253_v36, %v643_v57  ;;  %v233_v41 = vsel %vm232_vm2, %v759_v49, %v229_v31  ;;  %v276_v57 = vmul.f32 %v825_v34, %v275_v19  ;;  %v850_v1 = vadd.f32 1e-05, %v193_v39  ;;  %v178_v9 = vpop.xlane.xlu0 %177 }
 0x112   :  { %v375_v42 = vmul.f32 %v233_v41, %v647_v59  ;;  %v399_v43 = vmul.f32 %v764_v51, %v379_v37  ;;  %v166_v52 = vpop.xlane.xlu2 %165  ;;  %v257_v26 = vmul.f32 0.5, %v256_v20  ;;  %v296_v55 = vmul.f32 %v470_v40, %v295_v56  ;;  %v172_v30 = vpop.xlane.xlu1 %171 }
 0x113   :  { %v397_v53 = vmul.f32 %v764_v51, %v377_v18  ;;  %v847_v59 = vadd.f32 1e-05, %v191_v17  ;;  %v277_v63 = vmul.f32 0.5, %v276_v57  ;;  %vm300_vm5 = vweird.f32 %v774_v58 }
 0x114   :  { %v395_v49 = vmul.f32 %v764_v51, %v375_v42  ;;  %v419_v54 = vadd.f32 %v779_v60, %v399_v43  ;;  %v258_v62 = vsub.f32 1.5, %v257_v26  ;;  %v297_v5 = vmul.f32 0.5, %v296_v55 }
 0x115   :  { %v417_v61 = vadd.f32 %v779_v60, %v397_v53  ;;  %v852_v3 = vpop.eup %471  ;;  %473 = vrsqrt.f32 %v847_v59  ;;  %v278_v44 = vsub.f32 1.5, %v277_v63  ;;  %vm281_vm6 = vweird.f32 %v825_v34 }
 0x116   :  { %v415_v4 = vadd.f32 %v779_v60, %v395_v49  ;;  %435 = vst.msk [vmem:[%s1015_s3 + $0x28] sm:$0xff] %vm30_vm0, %v419_v54  ;;  %v259_v6 = vmul.f32 %v798_v28, %v258_v62  ;;  %v285_v7 = vmul.f32 %v852_v3, %v811_v29  ;;  %v298_v8 = vsub.f32 1.5, %v297_v5  ;;  %vm282_vm9 = vmor %vm280_vm3, %vm281_vm6 }
 0x117   :  { %433 = vst.msk [vmem:[%s1015_s3 + $0x18] sm:$0xff] %vm30_vm0, %v417_v61  ;;  %vm301_vm8 = vweird.f32 %v470_v40  ;;  %475 = vrsqrt.f32 %v850_v1  ;;  %v192_v45 = vmul.f32 %v166_v52, %v620_v38  ;;  %v279_v15 = vmul.f32 %v825_v34, %v278_v44 }
 0x118   :  { %431 = vst.msk [vmem:[%s1015_s3 + $0x8] sm:$0xff] %vm30_vm0, %v415_v4  ;;  %v263_v11 = vsel %vm262_vm7, %v798_v28, %v259_v6  ;;  %v286_v21 = vmul.f32 %v852_v3, %v285_v7  ;;  %v194_v22 = vmul.f32 %v172_v30, %v620_v38  ;;  %v299_v46 = vmul.f32 %v470_v40, %v298_v8  ;;  %vm302_vm11 = vmor %vm300_vm5, %vm301_vm8 }
 0x119   :  { %v378_v23 = vmul.f32 %v263_v11, %v658_v2  ;;  %vm290_vm10 = vweird.f32 %v811_v29  ;;  %v887_v27 = vadd.f32 1e-05, %v192_v45  ;;  %v283_v13 = vsel %vm282_vm9, %v825_v34, %v279_v15 }
 0x11a   :  { %v287_v28 = vmul.f32 0.5, %v286_v21  ;;  %v892_v31 = vadd.f32 1e-05, %v194_v22  ;;  %v196_v12 = vmul.f32 %v178_v9, %v620_v38  ;;  %v175_v14 = vpop.xlane.xlu2 %174  ;;  %v380_v17 = vmul.f32 %v283_v13, %v668_v0  ;;  %v181_v57 = vpop.xlane.xlu1 %180 }
 0x11b   :  { %v474_v2 = vpop.eup %473  ;;  %v398_v24 = vmul.f32 %v764_v51, %v378_v23  ;;  %v303_v36 = vsel %vm302_vm11, %v470_v40, %v299_v46  ;;  %477 = vrsqrt.f32 %v887_v27  ;;  %vm291_vm12 = vweird.f32 %v852_v3 }
 0x11c   :  { %v382_v37 = vmul.f32 %v303_v36, %v665_v10  ;;  %v288_v34 = vsub.f32 1.5, %v287_v28  ;;  %v305_v58 = vmul.f32 %v474_v2, %v847_v59  ;;  %v400_v41 = vmul.f32 %v764_v51, %v380_v17  ;;  %vm292_vm13 = vmor %vm290_vm10, %vm291_vm12 }
 0x11d   :  { %v476_v39 = vpop.eup %475  ;;  %v418_v18 = vadd.f32 %v779_v60, %v398_v24  ;;  %479 = vrsqrt.f32 %v892_v31  ;;  %v195_v20 = vmul.f32 %v175_v14, %v620_v38  ;;  %vm310_vm14 = vweird.f32 %v847_v59 }
 0x11e   :  { %v402_v0 = vmul.f32 %v764_v51, %v382_v37  ;;  %v289_v40 = vmul.f32 %v852_v3, %v288_v34  ;;  %v306_v19 = vmul.f32 %v474_v2, %v305_v58  ;;  %v325_v10 = vmul.f32 %v476_v39, %v850_v1 }
 0x11f   :  { %434 = vst.msk [vmem:[%s1015_s3 + $0x20] sm:$0xff] %vm30_vm0, %v418_v18  ;;  %v420_v42 = vadd.f32 %v779_v60, %v400_v41  ;;  %v916_v43 = vadd.f32 1e-05, %v196_v12  ;;  %vm330_vm15 = vweird.f32 %v850_v1  ;;  %v927_v54 = vadd.f32 1e-05, %v195_v20 }
 0x120   :  { %v422_v56 = vadd.f32 %v779_v60, %v402_v0  ;;  %v293_v52 = vsel %vm292_vm13, %v852_v3, %v289_v40  ;;  %v307_v53 = vmul.f32 0.5, %v306_v19  ;;  %v326_v26 = vmul.f32 %v476_v39, %v325_v10 }
 0x121   :  { %v478_v49 = vpop.eup %477  ;;  %436 = vst.msk [vmem:[%s1015_s3 + $0x30] sm:$0xff] %vm30_vm0, %v420_v42  ;;  %v381_v29 = vmul.f32 %v293_v52, %v675_v16  ;;  %481 = vrsqrt.f32 %v916_v43  ;;  %vm311_vm1 = vweird.f32 %v474_v2  ;;  %vm331_vm2 = vweird.f32 %v476_v39 }
 0x122   :  { %438 = vst.msk [vmem:[%s1015_s3 + $0x40] sm:$0xff] %vm30_vm0, %v422_v56  ;;  %v308_v55 = vsub.f32 1.5, %v307_v53  ;;  %v327_v61 = vmul.f32 0.5, %v326_v26  ;;  %v315_v62 = vmul.f32 %v478_v49, %v887_v27  ;;  %483 = vrsqrt.f32 %v927_v54  ;;  %vm312_vm3 = vmor %vm310_vm14, %vm311_vm1 }
 0x123   :  { %v480_v63 = vpop.eup %479  ;;  %v401_v3 = vmul.f32 %v764_v51, %v381_v29  ;;  %v197_v16 = vmul.f32 %v181_v57, %v620_v38  ;;  %vm332_vm4 = vmor %vm330_vm15, %vm331_vm2  ;;  %vm321_vm5 = vweird.f32 %v478_v49  ;;  %vm320_vm6 = vweird.f32 %v887_v27 }
 0x124   :  { %v309_v4 = vmul.f32 %v474_v2, %v308_v55  ;;  %v328_v5 = vsub.f32 1.5, %v327_v61  ;;  %v316_v30 = vmul.f32 %v478_v49, %v315_v62  ;;  %v335_v6 = vmul.f32 %v480_v63, %v892_v31  ;;  %vm322_vm8 = vmor %vm320_vm6, %vm321_vm5 }
 0x125   :  { %v421_v44 = vadd.f32 %v779_v60, %v401_v3  ;;  %v941_v7 = vadd.f32 1e-05, %v197_v16  ;;  %vm341_vm7 = vweird.f32 %v480_v63  ;;  %vm340_vm9 = vweird.f32 %v892_v31 }
 0x126   :  { %v313_v8 = vsel %vm312_vm3, %v474_v2, %v309_v4  ;;  %v329_v45 = vmul.f32 %v476_v39, %v328_v5  ;;  %v317_v9 = vmul.f32 0.5, %v316_v30  ;;  %v336_v11 = vmul.f32 %v480_v63, %v335_v6  ;;  %vm342_vm10 = vmor %vm340_vm9, %vm341_vm7 }
 0x127   :  { %v482_v15 = vpop.eup %481  ;;  %437 = vst.msk [vmem:[%s1015_s3 + $0x38] sm:$0xff] %vm30_vm0, %v421_v44  ;;  %v383_v38 = vmul.f32 %v313_v8, %v691_v33  ;;  %485 = vrsqrt.f32 %v941_v7  ;;  %vm360_vm11 = vweird.f32 %v916_v43  ;;  %vm350_vm15 = vweird.f32 %v927_v54 }
 0x128   :  { %v333_v59 = vsel %vm332_vm4, %v476_v39, %v329_v45  ;;  %v318_v21 = vsub.f32 1.5, %v317_v9  ;;  %v337_v22 = vmul.f32 0.5, %v336_v11  ;;  %v355_v23 = vmul.f32 %v482_v15, %v916_v43  ;;  %v484_v46 = vpop.eup %483 }
 0x129   :  { %v403_v13 = vmul.f32 %v764_v51, %v383_v38  ;;  %v385_v28 = vmul.f32 %v333_v59, %v688_v32  ;;  %v345_v14 = vmul.f32 %v484_v46, %v927_v54  ;;  %vm361_vm12 = vweird.f32 %v482_v15 }
 0x12a   :  { %v319_v33 = vmul.f32 %v478_v49, %v318_v21  ;;  %v338_v12 = vsub.f32 1.5, %v337_v22  ;;  %v356_v1 = vmul.f32 %v482_v15, %v355_v23  ;;  %vm351_vm13 = vweird.f32 %v484_v46  ;;  %vm362_vm14 = vmor %vm360_vm11, %vm361_vm12 }
 0x12b   :  { %v423_v2 = vadd.f32 %v779_v60, %v403_v13  ;;  %v405_v24 = vmul.f32 %v764_v51, %v385_v28  ;;  %v346_v32 = vmul.f32 %v484_v46, %v345_v14  ;;  %vm352_vm1 = vmor %vm350_vm15, %vm351_vm13  ;;  %vm370_vm3 = vweird.f32 %v941_v7 }
 0x12c   :  { %v323_v17 = vsel %vm322_vm8, %v478_v49, %v319_v33  ;;  %v339_v36 = vmul.f32 %v480_v63, %v338_v12  ;;  %v357_v37 = vmul.f32 0.5, %v356_v1 }
 0x12d   :  { %v486_v34 = vpop.eup %485  ;;  %439 = vst.msk [vmem:[%s1015_s3 + $0x48] sm:$0xff] %vm30_vm0, %v423_v2  ;;  %v425_v27 = vadd.f32 %v779_v60, %v405_v24  ;;  %v384_v58 = vmul.f32 %v323_v17, %v696_v35  ;;  %v347_v18 = vmul.f32 0.5, %v346_v32 }
 0x12e   :  { %v343_v31 = vsel %vm342_vm10, %v480_v63, %v339_v36  ;;  %v358_v39 = vsub.f32 1.5, %v357_v37  ;;  %v365_v41 = vmul.f32 %v486_v34, %v941_v7  ;;  %vm371_vm2 = vweird.f32 %v486_v34 }
 0x12f   :  { %441 = vst.msk [vmem:[%s1015_s3 + $0x58] sm:$0xff] %vm30_vm0, %v425_v27  ;;  %v404_v20 = vmul.f32 %v764_v51, %v384_v58  ;;  %v386_v0 = vmul.f32 %v343_v31, %v712_v48  ;;  %v348_v40 = vsub.f32 1.5, %v347_v18  ;;  %vm372_vm4 = vmor %vm370_vm3, %vm371_vm2 }
 0x130   :  { %v359_v35 = vmul.f32 %v482_v15, %v358_v39  ;;  %v366_v19 = vmul.f32 %v486_v34, %v365_v41 }
 0x131   :  { %v424_v10 = vadd.f32 %v779_v60, %v404_v20  ;;  %v406_v42 = vmul.f32 %v764_v51, %v386_v0  ;;  %v349_v52 = vmul.f32 %v484_v46, %v348_v40 }
 0x132   :  { %v363_v56 = vsel %vm362_vm14, %v482_v15, %v359_v35  ;;  %v367_v53 = vmul.f32 0.5, %v366_v19 }
 0x133   :  { %440 = vst.msk [vmem:[%s1015_s3 + $0x50] sm:$0xff] %vm30_vm0, %v424_v10  ;;  %v426_v48 = vadd.f32 %v779_v60, %v406_v42  ;;  %v388_v26 = vmul.f32 %v363_v56, %v709_v47  ;;  %v353_v57 = vsel %vm352_vm1, %v484_v46, %v349_v52 }
 0x134   :  { %v368_v49 = vsub.f32 1.5, %v367_v53  ;;  %v387_v29 = vmul.f32 %v353_v57, %v717_v50 }
 0x135   :  { %442 = vst.msk [vmem:[%s1015_s3 + $0x60] sm:$0xff] %vm30_vm0, %v426_v48  ;;  %v408_v43 = vmul.f32 %v764_v51, %v388_v26 }
 0x136   :  { %v369_v54 = vmul.f32 %v486_v34, %v368_v49  ;;  %v407_v47 = vmul.f32 %v764_v51, %v387_v29 }
 0x137   :  { %v428_v55 = vadd.f32 %v779_v60, %v408_v43 }
 0x138   :  { %v373_v61 = vsel %vm372_vm4, %v486_v34, %v369_v54  ;;  %v427_v62 = vadd.f32 %v779_v60, %v407_v47 }
 0x139   :  { %444 = vst.msk [vmem:[%s1015_s3 + $0x70] sm:$0xff] %vm30_vm0, %v428_v55  ;;  %v389_v63 = vmul.f32 %v373_v61, %v728_v25 }
 0x13a   :  { %443 = vst.msk [vmem:[%s1015_s3 + $0x68] sm:$0xff] %vm30_vm0, %v427_v62 }
 0x13b   :  { %v409_v50 = vmul.f32 %v764_v51, %v389_v63 }
 0x13d   :  { %v429_v3 = vadd.f32 %v779_v60, %v409_v50 }
 0x13f   :  { %445 = vst.msk [vmem:[%s1015_s3 + $0x78] sm:$0xff] %vm30_vm0, %v429_v3 }

// kernel: _lambda_.21
= control target key start
LH: loop header
LB: loop body
LE: loop exit
PB: predicated region body
PF: predicated region fallthrough
CT: control target
= control target key end

     0   :  { %vm105_vm0 = vcmask 261120   ;;  %vm381_vm1 = vcmask 23552   ;;  %s961_s1 = inlined_call_operand.vmem [shape: f32[288,3], index: 1, kind: input, shape index: {}]   ;;  %s962_s0 = inlined_call_operand.vmem [shape: f32[128,288], index: 0, kind: input, shape index: {}]   ;;  %s963_s2 = inlined_call_operand.vmem [shape: f32[1,3], index: 2, kind: input, shape index: {}]   ;;  %s964_s3 = inlined_call_operand.vmem [shape: f32[128,3], index: 3, kind: input, shape index: {}]   ;;  %s965_s4 = inlined_call_operand.vmem [shape: f32[128,3], index: 4, kind: output, shape index: {}]  }
   0x1   :  { %v80_v0 = vld [vmem:[%s961_s1 + $0x78] sm:$0xff]  ;;  %v79_v2 = vld [vmem:[%s961_s1 + $0x70] sm:$0xff]  ;;  %v78_v5 = vld [vmem:[%s961_s1 + $0x68] sm:$0xff] }
   0x2   :  { %v486_v1 = vld [vmem:[%s961_s1 + $0x118] sm:$0xff]  ;;  %154 = vmatpush.msra.mxu0 %v80_v0  ;;  %418 = vmatpush.msra.mxu3 %v80_v0  ;;  %v499_v4 = vld [vmem:[%s961_s1 + $0x110] sm:$0xff]  ;;  %v514_v7 = vld [vmem:[%s961_s1 + $0x108] sm:$0xff] }
   0x3   :  { %v494_v3 = vld [vmem:[%s961_s1 + $0xf8] sm:$0xff]  ;;  %296 = vmatpush.msra.mxu2 %v486_v1  ;;  %v509_v6 = vld [vmem:[%s961_s1 + $0xf0] sm:$0xff]  ;;  %v519_v8 = vld [vmem:[%s961_s1 + $0xe8] sm:$0xff] }
   0x4   :  { %219 = vmatpush.msra.mxu1 %v494_v3  ;;  %155 = vmatpush.msra.mxu0 %v79_v2  ;;  %v77_v9 = vld [vmem:[%s961_s1 + $0x60] sm:$0xff]  ;;  %v19_v12 = vld [vmem:[%s962_s0 + $0x10] sm:$0xff]  ;;  %v76_v13 = vld [vmem:[%s961_s1 + $0x58] sm:$0xff] }
   0x5   :  { %419 = vmatpush.msra.mxu3 %v79_v2  ;;  %297 = vmatpush.msra.mxu2 %v499_v4  ;;  %v529_v10 = vld [vmem:[%s961_s1 + $0x100] sm:$0xff]  ;;  %v547_v14 = vld [vmem:[%s961_s1 + $0xd8] sm:$0xff]  ;;  %v75_v15 = vld [vmem:[%s961_s1 + $0x50] sm:$0xff] }
   0x6   :  { %220 = vmatpush.msra.mxu1 %v509_v6  ;;  %156 = vmatpush.msra.mxu0 %v78_v5  ;;  %v534_v11 = vld [vmem:[%s961_s1 + $0xe0] sm:$0xff]  ;;  %v558_v16 = vld [vmem:[%s961_s1 + $0xd0] sm:$0xff]  ;;  %v74_v17 = vld [vmem:[%s961_s1 + $0x48] sm:$0xff] }
   0x7   :  { %420 = vmatpush.msra.mxu3 %v78_v5  ;;  %298 = vmatpush.msra.mxu2 %v514_v7  ;;  %v567_v18 = vld [vmem:[%s961_s1 + $0xc8] sm:$0xff]  ;;  %v73_v19 = vld [vmem:[%s961_s1 + $0x40] sm:$0xff]  ;;  %v72_v22 = vld [vmem:[%s961_s1 + $0x38] sm:$0xff] }
   0x8   :  { %221 = vmatpush.msra.mxu1 %v519_v8  ;;  %157 = vmatpush.msra.mxu0 %v77_v9  ;;  %v576_v20 = vld [vmem:[%s961_s1 + $0xc0] sm:$0xff]  ;;  %v22_v21 = vld [vmem:[%s962_s0 + $0x28] sm:$0xff]  ;;  %v588_v23 = vld [vmem:[%s961_s1 + $0xb8] sm:$0xff] }
   0x9   :  { %421 = vmatpush.msra.mxu3 %v77_v9  ;;  %299 = vmatpush.msra.mxu2 %v529_v10  ;;  %v71_v24 = vld [vmem:[%s961_s1 + $0x30] sm:$0xff]  ;;  %v70_v26 = vld [vmem:[%s961_s1 + $0x28] sm:$0xff]  ;;  %v69_v28 = vld [vmem:[%s961_s1 + $0x20] sm:$0xff] }
   0xa   :  { %222 = vmatpush.msra.mxu1 %v534_v11  ;;  %402 = vmatmul.msk.f32.vlgmr.msra.gmra.mxu2 %vm105_vm0, %v19_v12  ;;  %v598_v25 = vld [vmem:[%s961_s1 + $0xb0] sm:$0xff]  ;;  %v607_v27 = vld [vmem:[%s961_s1 + $0xa8] sm:$0xff]  ;;  %v616_v29 = vld [vmem:[%s961_s1 + $0xa0] sm:$0xff] }
   0xb   :  { %158 = vmatpush.msra.mxu0 %v76_v13  ;;  %422 = vmatpush.msra.mxu3 %v76_v13  ;;  %v25_v30 = vld [vmem:[%s962_s0 + $0x40] sm:$0xff]  ;;  %v68_v31 = vld [vmem:[%s961_s1 + $0x18] sm:$0xff]  ;;  %v67_v33 = vld [vmem:[%s961_s1 + $0x10] sm:$0xff] }
   0xc   :  { %223 = vmatpush.msra.mxu1 %v547_v14  ;;  %v628_v32 = vld [vmem:[%s961_s1 + $0x98] sm:$0xff]  ;;  %v83_v34 = vld [vmem:[%s961_s1 + $0x90] sm:$0xff]  ;;  %v66_v35 = vld [vmem:[%s961_s1 + $0x8] sm:$0xff] }
   0xd   :  { %159 = vmatpush.msra.mxu0 %v75_v15  ;;  %423 = vmatpush.msra.mxu3 %v75_v15  ;;  %v82_v36 = vld [vmem:[%s961_s1 + $0x88] sm:$0xff]  ;;  %v65_v37 = vld [vmem:[%s961_s1] sm:$0xff]  ;;  %v28_v40 = vld [vmem:[%s962_s0 + $0x58] sm:$0xff] }
   0xe   :  { %224 = vmatpush.msra.mxu1 %v558_v16  ;;  %v17_v38 = vld [vmem:[%s962_s0] sm:$0xff]  ;;  %v18_v42 = vld [vmem:[%s962_s0 + $0x8] sm:$0xff]  ;;  %v20_v43 = vld [vmem:[%s962_s0 + $0x18] sm:$0xff] }
   0xf   :  { %160 = vmatpush.msra.mxu0 %v74_v17  ;;  %424 = vmatpush.msra.mxu3 %v74_v17  ;;  %v53_v39 = vld [vmem:[%s962_s0 + $0x120] sm:$0xff]  ;;  %v56_v44 = vld [vmem:[%s962_s0 + $0x138] sm:$0xff]  ;;  %v31_v45 = vld [vmem:[%s962_s0 + $0x70] sm:$0xff] }
  0x10   :  { %225 = vmatpush.msra.mxu1 %v567_v18  ;;  %v81_v41 = vld [vmem:[%s961_s1 + $0x80] sm:$0xff]  ;;  %v23_v47 = vld [vmem:[%s962_s0 + $0x30] sm:$0xff]  ;;  %v34_v49 = vld [vmem:[%s962_s0 + $0x88] sm:$0xff] }
  0x11   :  { %161 = vmatpush.msra.mxu0 %v73_v19  ;;  %425 = vmatpush.msra.mxu3 %v73_v19  ;;  %v21_v46 = vld [vmem:[%s962_s0 + $0x20] sm:$0xff]  ;;  %v59_v48 = vld [vmem:[%s962_s0 + $0x150] sm:$0xff]  ;;  %v24_v50 = vld [vmem:[%s962_s0 + $0x38] sm:$0xff] }
  0x12   :  { %226 = vmatpush.msra.mxu1 %v576_v20  ;;  %403 = vmatmul.msk.f32.gmra.mxu2 %vm105_vm0, %v22_v21  ;;  %v26_v51 = vld [vmem:[%s962_s0 + $0x48] sm:$0xff]  ;;  %v37_v53 = vld [vmem:[%s962_s0 + $0xa0] sm:$0xff]  ;;  %v27_v54 = vld [vmem:[%s962_s0 + $0x50] sm:$0xff] }
  0x13   :  { %162 = vmatpush.msra.mxu0 %v72_v22  ;;  %426 = vmatpush.msra.mxu3 %v72_v22  ;;  %v62_v52 = vld [vmem:[%s962_s0 + $0x168] sm:$0xff]  ;;  %v29_v55 = vld [vmem:[%s962_s0 + $0x60] sm:$0xff]  ;;  %v40_v57 = vld [vmem:[%s962_s0 + $0xb8] sm:$0xff] }
  0x14   :  { %227 = vmatpush.msra.mxu1 %v588_v23  ;;  %v54_v56 = vld [vmem:[%s962_s0 + $0x128] sm:$0xff]  ;;  %v32_v59 = vld [vmem:[%s962_s0 + $0x78] sm:$0xff]  ;;  %v57_v60 = vld [vmem:[%s962_s0 + $0x140] sm:$0xff] }
  0x15   :  { %163 = vmatpush.msra.mxu0 %v71_v24  ;;  %427 = vmatpush.msra.mxu3 %v71_v24  ;;  %v30_v58 = vld [vmem:[%s962_s0 + $0x68] sm:$0xff]  ;;  %v43_v61 = vld [vmem:[%s962_s0 + $0xd0] sm:$0xff]  ;;  %v33_v62 = vld [vmem:[%s962_s0 + $0x80] sm:$0xff] }
  0x16   :  { %228 = vmatpush.msra.mxu1 %v598_v25  ;;  %v35_v63 = vld [vmem:[%s962_s0 + $0x90] sm:$0xff]  ;;  %v60_v0 = vld [vmem:[%s962_s0 + $0x158] sm:$0xff]  ;;  %v49_v5 = vld [vmem:[%s962_s0 + $0x100] sm:$0xff] }
  0x17   :  { %164 = vmatpush.msra.mxu0 %v70_v26  ;;  %428 = vmatpush.msra.mxu3 %v70_v26  ;;  %v36_v2 = vld [vmem:[%s962_s0 + $0x98] sm:$0xff]  ;;  %v55_v12 = vld [vmem:[%s962_s0 + $0x130] sm:$0xff]  ;;  %v45_v13 = vld [vmem:[%s962_s0 + $0xe0] sm:$0xff] }
  0x18   :  { %229 = vmatpush.msra.mxu1 %v607_v27  ;;  %v64_v9 = vld [vmem:[%s962_s0 + $0x178] sm:$0xff]  ;;  %v58_v15 = vld [vmem:[%s962_s0 + $0x148] sm:$0xff]  ;;  %v51_v19 = vld [vmem:[%s962_s0 + $0x110] sm:$0xff] }
  0x19   :  { %165 = vmatpush.msra.mxu0 %v69_v28  ;;  %429 = vmatpush.msra.mxu3 %v69_v28  ;;  %v50_v17 = vld [vmem:[%s962_s0 + $0x108] sm:$0xff]  ;;  %v819_v22 = vld [vmem:[%s963_s2] ss:$0 sm:$0xff] }
  0x1a   :  { %230 = vmatpush.msra.mxu1 %v616_v29  ;;  %404 = vmatmul.msk.f32.gmra.mxu2 %vm105_vm0, %v25_v30  ;;  %v349_v28 = vld [vmem:[%s964_s3] sm:$0xff] }
  0x1b   :  { %166 = vmatpush.msra.mxu0 %v68_v31  ;;  %430 = vmatpush.msra.mxu3 %v68_v31 }
  0x1c   :  { %231 = vmatpush.msra.mxu1 %v628_v32 }
  0x1d   :  { %167 = vmatpush.msra.mxu0 %v67_v33  ;;  %431 = vmatpush.msra.mxu3 %v67_v33 }
  0x1e   :  { %232 = vmatpush.msra.mxu1 %v83_v34 }
  0x1f   :  { %168 = vmatpush.msra.mxu0 %v66_v35  ;;  %432 = vmatpush.msra.mxu3 %v66_v35 }
  0x20   :  { %233 = vmatpush.msra.mxu1 %v82_v36 }
  0x21   :  { %169 = vmatpush.msra.mxu0 %v65_v37  ;;  %433 = vmatpush.msra.mxu3 %v65_v37  ;;  %v350_v37 = vld [vmem:[%s964_s3 + $0x8] sm:$0xff] }
  0x22   :  { %170 = vmatmul.f32.vlgmr.msra.gmra.mxu0 %v17_v38  ;;  %206 = vmatmul.f32.vlgmr.msra.gmra.mxu3 %v53_v39 }
  0x23   :  { %405 = vmatmul.msk.f32.gmra.mxu2 %vm105_vm0, %v28_v40  ;;  %434 = vmatpush.msrb.mxu3 %v494_v3  ;;  %v38_v3 = vld [vmem:[%s962_s0 + $0xa8] sm:$0xff] }
  0x24   :  { %234 = vmatpush.msra.mxu1 %v81_v41 }
  0x25   :  { %235 = vmatmul.f32.vlgmr.msra.gmra.mxu1 %v18_v42  ;;  %435 = vmatpush.msrb.mxu3 %v509_v6  ;;  %v39_v6 = vld [vmem:[%s962_s0 + $0xb0] sm:$0xff] }
  0x27   :  { %436 = vmatpush.msrb.mxu3 %v519_v8  ;;  %v52_v8 = vld [vmem:[%s962_s0 + $0x118] sm:$0xff] }
  0x29   :  { %437 = vmatpush.msrb.mxu3 %v534_v11  ;;  %v44_v11 = vld [vmem:[%s962_s0 + $0xd8] sm:$0xff] }
  0x2a   :  { %173 = vmatmul.f32.gmra.mxu0 %v20_v43  ;;  %209 = vmatmul.f32.gmra.mxu3 %v56_v44 }
  0x2b   :  { %406 = vmatmul.msk.f32.gmra.mxu2 %vm105_vm0, %v31_v45  ;;  %438 = vmatpush.msrb.mxu3 %v547_v14  ;;  %v47_v14 = vld [vmem:[%s962_s0 + $0xf0] sm:$0xff] }
  0x2d   :  { %238 = vmatmul.f32.gmra.mxu1 %v21_v46  ;;  %439 = vmatpush.msrb.mxu3 %v558_v16  ;;  %v48_v16 = vld [vmem:[%s962_s0 + $0xf8] sm:$0xff]  ;;  %v351_v46 = vld [vmem:[%s964_s3 + $0x10] sm:$0xff] }
  0x2f   :  { %440 = vmatpush.msrb.mxu3 %v567_v18  ;;  %v61_v18 = vld [vmem:[%s962_s0 + $0x160] sm:$0xff] }
  0x31   :  { %441 = vmatpush.msrb.mxu3 %v576_v20 }
  0x32   :  { %176 = vmatmul.f32.gmra.mxu0 %v23_v47  ;;  %212 = vmatmul.f32.gmra.mxu3 %v59_v48 }
  0x33   :  { %407 = vmatmul.msk.f32.gmra.mxu2 %vm105_vm0, %v34_v49  ;;  %442 = vmatpush.msrb.mxu3 %v588_v23 }
  0x35   :  { %241 = vmatmul.f32.gmra.mxu1 %v24_v50  ;;  %443 = vmatpush.msrb.mxu3 %v598_v25 }
  0x37   :  { %444 = vmatpush.msrb.mxu3 %v607_v27 }
  0x39   :  { %445 = vmatpush.msrb.mxu3 %v616_v29 }
  0x3a   :  { %179 = vmatmul.f32.gmra.mxu0 %v26_v51  ;;  %215 = vmatmul.f32.gmra.mxu3 %v62_v52 }
  0x3b   :  { %408 = vmatmul.msk.f32.gmra.mxu2 %vm105_vm0, %v37_v53  ;;  %446 = vmatpush.msrb.mxu3 %v628_v32 }
  0x3d   :  { %244 = vmatmul.f32.gmra.mxu1 %v27_v54  ;;  %447 = vmatpush.msrb.mxu3 %v83_v34 }
  0x3f   :  { %448 = vmatpush.msrb.mxu3 %v82_v36 }
  0x41   :  { %449 = vmatpush.msrb.mxu3 %v81_v41 }
  0x42   :  { %182 = vmatmul.f32.gmra.mxu0 %v29_v55  ;;  %271 = vmatmul.f32.vlgmr.msrb.gmra.mxu3 %v54_v56  ;;  %v352_v55 = vld [vmem:[%s964_s3 + $0x18] sm:$0xff] }
  0x43   :  { %409 = vmatmul.msk.f32.gmra.mxu2 %vm105_vm0, %v40_v57  ;;  %450 = vmatpush.msra.mxu3 %v486_v1  ;;  %v46_v1 = vld [vmem:[%s962_s0 + $0xe8] sm:$0xff] }
  0x45   :  { %247 = vmatmul.f32.gmra.mxu1 %v30_v58  ;;  %451 = vmatpush.msra.mxu3 %v499_v4  ;;  %v63_v4 = vld [vmem:[%s962_s0 + $0x170] sm:$0xff] }
  0x47   :  { %452 = vmatpush.msra.mxu3 %v514_v7  ;;  %v41_v7 = vld [vmem:[%s962_s0 + $0xc0] sm:$0xff] }
  0x49   :  { %453 = vmatpush.msra.mxu3 %v529_v10  ;;  %v42_v10 = vld [vmem:[%s962_s0 + $0xc8] sm:$0xff] }
  0x4a   :  { %185 = vmatmul.f32.gmra.mxu0 %v32_v59  ;;  %274 = vmatmul.f32.gmra.mxu3 %v57_v60 }
  0x4b   :  { %410 = vmatmul.msk.f32.gmra.mxu2 %vm105_vm0, %v43_v61 }
  0x4d   :  { %250 = vmatmul.f32.gmra.mxu1 %v33_v62 }
  0x52   :  { %188 = vmatmul.f32.gmra.mxu0 %v35_v63  ;;  %277 = vmatmul.f32.gmra.mxu3 %v60_v0  ;;  %v353_v0 = vld [vmem:[%s964_s3 + $0x20] sm:$0xff] }
  0x53   :  { %411 = vmatmul.msk.f32.gmra.mxu2 %vm105_vm0, %v46_v1 }
  0x55   :  { %253 = vmatmul.f32.gmra.mxu1 %v36_v2 }
  0x5a   :  { %191 = vmatmul.f32.gmra.mxu0 %v38_v3  ;;  %280 = vmatmul.f32.gmra.mxu3 %v63_v4 }
  0x5b   :  { %412 = vmatmul.msk.f32.gmra.mxu2 %vm105_vm0, %v49_v5 }
  0x5d   :  { %256 = vmatmul.f32.gmra.mxu1 %v39_v6 }
  0x62   :  { %194 = vmatmul.f32.gmra.mxu0 %v41_v7  ;;  %417 = vmatmul.msk.f32.vlgmr.msra.gmra.mxu3 %vm105_vm0, %v64_v9  ;;  %v354_v9 = vld [vmem:[%s964_s3 + $0x28] sm:$0xff] }
  0x63   :  { %413 = vmatmul.msk.f32.gmra.mxu2 %vm105_vm0, %v52_v8 }
  0x65   :  { %259 = vmatmul.f32.gmra.mxu1 %v42_v10 }
  0x6a   :  { %197 = vmatmul.f32.gmra.mxu0 %v44_v11 }
  0x6b   :  { %414 = vmatmul.msk.f32.gmra.mxu2 %vm105_vm0, %v55_v12 }
  0x6d   :  { %262 = vmatmul.f32.gmra.mxu1 %v45_v13 }
  0x72   :  { %200 = vmatmul.f32.gmra.mxu0 %v47_v14 }
  0x73   :  { %415 = vmatmul.msk.f32.gmra.mxu2 %vm105_vm0, %v58_v15 }
  0x75   :  { %265 = vmatmul.f32.gmra.mxu1 %v48_v16 }
  0x7a   :  { %203 = vmatmul.f32.gmra.mxu0 %v50_v17 }
  0x7b   :  { %416 = vmatmul.msk.f32.gmra.mxu2 %vm105_vm0, %v61_v18  ;;  %v355_v18 = vld [vmem:[%s964_s3 + $0x30] sm:$0xff] }
  0x7d   :  { %268 = vmatmul.f32.gmra.mxu1 %v51_v19 }
  0x8d   :  { %v301_v20 = vpop.f32.mrf.mxu2 }
  0x95   :  { %v304_v21 = vpop.f32.mrf.mxu2 }
  0x9d   :  { %v307_v23 = vpop.f32.mrf.mxu2 }
  0x9f   :  { %v171_v24 = vpop.f32.mrf.mxu0 }
  0xa0   :  { %v172_v25 = vadd.f32 %v819_v22, %v171_v24 }
  0xa2   :  { %v236_v26 = vpop.f32.mrf.mxu1 }
  0xa3   :  { %v237_v27 = vadd.f32 %v236_v26, %v172_v25 }
  0xa5   :  { %v302_v29 = vadd.f32 %v301_v20, %v237_v27  ;;  %v825_v30 = vpop.f32.mrf.mxu3 }
  0xa6   :  { %v310_v31 = vpop.f32.mrf.mxu2 }
  0xa7   :  { %v365_v32 = vadd.f32 %v349_v28, %v302_v29  ;;  %v174_v33 = vpop.f32.mrf.mxu0  ;;  %v356_v28 = vld [vmem:[%s964_s3 + $0x38] sm:$0xff] }
  0xa8   :  { %v175_v34 = vadd.f32 %v819_v22, %v174_v33 }
  0xa9   :  { %382 = vst.msk [vmem:[%s965_s4] sm:$0xff] %vm381_vm1, %v365_v32 }
  0xaa   :  { %v239_v35 = vpop.f32.mrf.mxu1 }
  0xab   :  { %v240_v36 = vadd.f32 %v239_v35, %v175_v34 }
  0xad   :  { %v305_v38 = vadd.f32 %v304_v21, %v240_v36  ;;  %v835_v39 = vpop.f32.mrf.mxu3 }
  0xae   :  { %v313_v40 = vpop.f32.mrf.mxu2 }
  0xaf   :  { %v366_v41 = vadd.f32 %v350_v37, %v305_v38  ;;  %v177_v42 = vpop.f32.mrf.mxu0 }
  0xb0   :  { %v178_v43 = vadd.f32 %v819_v22, %v177_v42 }
  0xb1   :  { %383 = vst.msk [vmem:[%s965_s4 + $0x8] sm:$0xff] %vm381_vm1, %v366_v41 }
  0xb2   :  { %v242_v44 = vpop.f32.mrf.mxu1 }
  0xb3   :  { %v243_v45 = vadd.f32 %v242_v44, %v178_v43 }
  0xb5   :  { %v308_v47 = vadd.f32 %v307_v23, %v243_v45  ;;  %v845_v48 = vpop.f32.mrf.mxu3  ;;  %v364_v45 = vld [vmem:[%s964_s3 + $0x78] sm:$0xff] }
  0xb6   :  { %v316_v49 = vpop.f32.mrf.mxu2 }
  0xb7   :  { %v367_v50 = vadd.f32 %v351_v46, %v308_v47  ;;  %v180_v51 = vpop.f32.mrf.mxu0 }
  0xb8   :  { %v181_v52 = vadd.f32 %v819_v22, %v180_v51 }
  0xb9   :  { %384 = vst.msk [vmem:[%s965_s4 + $0x10] sm:$0xff] %vm381_vm1, %v367_v50 }
  0xba   :  { %v245_v53 = vpop.f32.mrf.mxu1 }
  0xbb   :  { %v246_v54 = vadd.f32 %v245_v53, %v181_v52  ;;  %v208_v53 = vadd.f32 %v819_v22, %v825_v30 }
  0xbd   :  { %v311_v56 = vadd.f32 %v310_v31, %v246_v54  ;;  %v216_v57 = vpop.f32.mrf.mxu3 }
  0xbe   :  { %v319_v58 = vpop.f32.mrf.mxu2  ;;  %v217_v37 = vadd.f32 %v819_v22, %v216_v57 }
  0xbf   :  { %v368_v59 = vadd.f32 %v352_v55, %v311_v56  ;;  %v183_v60 = vpop.f32.mrf.mxu0  ;;  %v358_v55 = vld [vmem:[%s964_s3 + $0x48] sm:$0xff] }
  0xc0   :  { %v184_v61 = vadd.f32 %v819_v22, %v183_v60 }
  0xc1   :  { %385 = vst.msk [vmem:[%s965_s4 + $0x18] sm:$0xff] %vm381_vm1, %v368_v59  ;;  %v361_v59 = vld [vmem:[%s964_s3 + $0x60] sm:$0xff] }
  0xc2   :  { %v248_v62 = vpop.f32.mrf.mxu1 }
  0xc3   :  { %v249_v63 = vadd.f32 %v248_v62, %v184_v61 }
  0xc5   :  { %v314_v1 = vadd.f32 %v313_v40, %v249_v63  ;;  %v272_v2 = vpop.f32.mrf.mxu3  ;;  %v357_v40 = vld [vmem:[%s964_s3 + $0x40] sm:$0xff] }
  0xc6   :  { %v322_v3 = vpop.f32.mrf.mxu2  ;;  %v273_v56 = vadd.f32 %v272_v2, %v208_v53 }
  0xc7   :  { %v369_v4 = vadd.f32 %v353_v0, %v314_v1  ;;  %v186_v5 = vpop.f32.mrf.mxu0  ;;  %v211_v1 = vadd.f32 %v819_v22, %v835_v39 }
  0xc8   :  { %v187_v6 = vadd.f32 %v819_v22, %v186_v5 }
  0xc9   :  { %386 = vst.msk [vmem:[%s965_s4 + $0x20] sm:$0xff] %vm381_vm1, %v369_v4 }
  0xca   :  { %v251_v7 = vpop.f32.mrf.mxu1 }
  0xcb   :  { %v252_v8 = vadd.f32 %v251_v7, %v187_v6  ;;  %v362_v7 = vld [vmem:[%s964_s3 + $0x68] sm:$0xff] }
  0xcd   :  { %v317_v10 = vadd.f32 %v316_v49, %v252_v8  ;;  %v275_v11 = vpop.f32.mrf.mxu3 }
  0xce   :  { %v325_v12 = vpop.f32.mrf.mxu2  ;;  %v276_v4 = vadd.f32 %v275_v11, %v211_v1  ;;  %v214_v11 = vadd.f32 %v819_v22, %v845_v48 }
  0xcf   :  { %v370_v13 = vadd.f32 %v354_v9, %v317_v10  ;;  %v189_v14 = vpop.f32.mrf.mxu0 }
  0xd0   :  { %v190_v15 = vadd.f32 %v819_v22, %v189_v14 }
  0xd1   :  { %387 = vst.msk [vmem:[%s965_s4 + $0x28] sm:$0xff] %vm381_vm1, %v370_v13 }
  0xd2   :  { %v254_v16 = vpop.f32.mrf.mxu1 }
  0xd3   :  { %v255_v17 = vadd.f32 %v254_v16, %v190_v15  ;;  %v360_v15 = vld [vmem:[%s964_s3 + $0x58] sm:$0xff] }
  0xd5   :  { %v320_v19 = vadd.f32 %v319_v58, %v255_v17  ;;  %v879_v20 = vpop.f32.mrf.mxu3 }
  0xd6   :  { %v328_v21 = vpop.f32.mrf.mxu2  ;;  %v279_v16 = vadd.f32 %v879_v20, %v214_v11 }
  0xd7   :  { %v371_v23 = vadd.f32 %v355_v18, %v320_v19  ;;  %v192_v24 = vpop.f32.mrf.mxu0  ;;  %v363_v19 = vld [vmem:[%s964_s3 + $0x70] sm:$0xff] }
  0xd8   :  { %v193_v25 = vadd.f32 %v819_v22, %v192_v24 }
  0xd9   :  { %388 = vst.msk [vmem:[%s965_s4 + $0x30] sm:$0xff] %vm381_vm1, %v371_v23 }
  0xda   :  { %v257_v26 = vpop.f32.mrf.mxu1 }
  0xdb   :  { %v258_v27 = vadd.f32 %v257_v26, %v193_v25 }
  0xdd   :  { %v323_v29 = vadd.f32 %v322_v3, %v258_v27  ;;  %v281_v31 = vpop.f32.mrf.mxu3  ;;  %v359_v3 = vld [vmem:[%s964_s3 + $0x50] sm:$0xff] }
  0xde   :  { %v331_v32 = vpop.f32.mrf.mxu2  ;;  %v282_v41 = vadd.f32 %v281_v31, %v217_v37 }
  0xdf   :  { %v372_v33 = vadd.f32 %v356_v28, %v323_v29  ;;  %v195_v34 = vpop.f32.mrf.mxu0 }
  0xe0   :  { %v196_v35 = vadd.f32 %v819_v22, %v195_v34 }
  0xe1   :  { %389 = vst.msk [vmem:[%s965_s4 + $0x38] sm:$0xff] %vm381_vm1, %v372_v33 }
  0xe2   :  { %v260_v36 = vpop.f32.mrf.mxu1 }
  0xe3   :  { %v261_v38 = vadd.f32 %v260_v36, %v196_v35 }
  0xe5   :  { %v326_v42 = vadd.f32 %v325_v12, %v261_v38  ;;  %v346_v44 = vpop.f32.mrf.mxu3 }
  0xe6   :  { %v334_v43 = vpop.f32.mrf.mxu2  ;;  %v347_v47 = vadd.f32 %v346_v44, %v282_v41 }
  0xe7   :  { %v373_v46 = vadd.f32 %v357_v40, %v326_v42  ;;  %v198_v49 = vpop.f32.mrf.mxu0 }
  0xe8   :  { %v199_v50 = vadd.f32 %v819_v22, %v198_v49  ;;  %v380_v51 = vadd.f32 %v364_v45, %v347_v47 }
  0xe9   :  { %390 = vst.msk [vmem:[%s965_s4 + $0x40] sm:$0xff] %vm381_vm1, %v373_v46 }
  0xea   :  { %v263_v52 = vpop.f32.mrf.mxu1  ;;  %397 = vst.msk [vmem:[%s965_s4 + $0x78] sm:$0xff] %vm381_vm1, %v380_v51 }
  0xeb   :  { %v264_v54 = vadd.f32 %v263_v52, %v199_v50 }
  0xed   :  { %v329_v57 = vadd.f32 %v328_v21, %v264_v54 }
  0xee   :  { %v337_v58 = vpop.f32.mrf.mxu2 }
  0xef   :  { %v374_v60 = vadd.f32 %v358_v55, %v329_v57  ;;  %v338_v61 = vadd.f32 %v337_v58, %v273_v56  ;;  %v201_v30 = vpop.f32.mrf.mxu0 }
  0xf0   :  { %v202_v62 = vadd.f32 %v819_v22, %v201_v30 }
  0xf1   :  { %391 = vst.msk [vmem:[%s965_s4 + $0x48] sm:$0xff] %vm381_vm1, %v374_v60  ;;  %v377_v63 = vadd.f32 %v361_v59, %v338_v61 }
  0xf2   :  { %v266_v0 = vpop.f32.mrf.mxu1 }
  0xf3   :  { %394 = vst.msk [vmem:[%s965_s4 + $0x60] sm:$0xff] %vm381_vm1, %v377_v63  ;;  %v267_v2 = vadd.f32 %v266_v0, %v202_v62 }
  0xf5   :  { %v332_v5 = vadd.f32 %v331_v32, %v267_v2 }
  0xf6   :  { %v340_v6 = vpop.f32.mrf.mxu2 }
  0xf7   :  { %v375_v8 = vadd.f32 %v359_v3, %v332_v5  ;;  %v341_v9 = vadd.f32 %v340_v6, %v276_v4  ;;  %v204_v39 = vpop.f32.mrf.mxu0 }
  0xf8   :  { %v205_v10 = vadd.f32 %v819_v22, %v204_v39 }
  0xf9   :  { %392 = vst.msk [vmem:[%s965_s4 + $0x50] sm:$0xff] %vm381_vm1, %v375_v8  ;;  %v378_v12 = vadd.f32 %v362_v7, %v341_v9 }
  0xfa   :  { %v269_v13 = vpop.f32.mrf.mxu1 }
  0xfb   :  { %395 = vst.msk [vmem:[%s965_s4 + $0x68] sm:$0xff] %vm381_vm1, %v378_v12  ;;  %v270_v14 = vadd.f32 %v269_v13, %v205_v10 }
  0xfd   :  { %v335_v17 = vadd.f32 %v334_v43, %v270_v14 }
  0xfe   :  { %v343_v18 = vpop.f32.mrf.mxu2 }
  0xff   :  { %v376_v21 = vadd.f32 %v360_v15, %v335_v17  ;;  %v344_v22 = vadd.f32 %v343_v18, %v279_v16 }
 0x101   :  { %393 = vst.msk [vmem:[%s965_s4 + $0x58] sm:$0xff] %vm381_vm1, %v376_v21  ;;  %v379_v48 = vadd.f32 %v363_v19, %v344_v22 }
 0x103   :  { %396 = vst.msk [vmem:[%s965_s4 + $0x70] sm:$0xff] %vm381_vm1, %v379_v48 }

</bundles_post_ra>
